<compile_context>
chip_gen: v7x
topology: tpu7x:2x2x1
jax: 0.10.0
libtpu: 0.0.40
codegen_flags: <defaults>
</compile_context>

<pallas_src>
import functools

import jax
import jax.numpy as jnp
import numpy as np
from jax.experimental import pallas as pl
from jax.experimental.pallas import tpu as pltpu

EPS = 1e-5


# ---------------------------------------------------------------------------
# helpers
# ---------------------------------------------------------------------------
def _round_up(x, m):
    return (x + m - 1) // m * m


def _pick_row_tile(ho, wp2, cin, cout):
    """Largest even divisor of `ho` whose double-buffered tiles fit well in VMEM."""
    budget = 8 * 1024 * 1024
    best = 2
    for tr in range(2, ho + 1, 2):
        if ho % tr:
            continue
        rows = tr * wp2
        bytes_a = 2 * tr * wp2 * (2 * cin) * 4 + tr * wp2 * cout * 4
        bytes_b = (tr + 2) * wp2 * cout * 4 + tr * wp2 * cout * 4
        patches = rows * 9 * max(cin, cout) * 2
        if rows <= 2048 and 2 * max(bytes_a, bytes_b) + patches <= budget:
            best = tr
    return best


# ---------------------------------------------------------------------------
# in-kernel building blocks
# ---------------------------------------------------------------------------
def _conv3x3_flat(qf, w_ref, tr, wp2, wo, lead=0):
    """3x3 'same' conv from a flattened haloed tile.

    qf: (L, cin) f32; logical element (r, c) of the zero-ring-padded haloed tile
    lives at flattened row `lead + r*wp2 + c` after the single concat below.
    Output (r, c) = sum_{dy,dx} w[dy,dx] * tile[r+dy, c+dx] (with `lead=1` the
    read is shifted one column left, supplying conv2's left zero-pad column for
    free since the wrapped element is always a zeroed padding column).
    im2col is built in VMEM: 9 shifted row-slices, lane-concatenated, one bf16
    MXU matmul with f32 accumulation.  Columns >= wo of the result are zeroed.
    """
    cin = qf.shape[-1]
    m = tr * wp2
    parts = []
    if lead:
        parts.append(jnp.zeros((lead, cin), qf.dtype))
    parts.append(qf)
    parts.append(jnp.zeros((8, cin), qf.dtype))          # slack so slices stay in-bounds
    qf = jnp.concatenate(parts, axis=0)
    patches = jnp.concatenate(
        [qf[dy * wp2 + dx:dy * wp2 + dx + m, :]
         for dy in range(3) for dx in range(3)],
        axis=-1).astype(jnp.bfloat16)                    # (m, 9*cin)
    acc = jnp.dot(patches, w_ref[...], preferred_element_type=jnp.float32)
    acc3 = acc.reshape(tr, wp2, acc.shape[-1])
    col = jax.lax.broadcasted_iota(jnp.int32, (tr, wp2, 1), 1)
    return jnp.where(col < wo, acc3, 0.0)


def _store_with_stats(acc3, y_ref, st_ref):
    """Store conv tile and its per-channel partial sum / sum-of-squares."""
    y_ref[0] = acc3
    flat = acc3.reshape(-1, acc3.shape[-1])
    s1 = jnp.sum(flat, axis=0, keepdims=True)
    s2 = jnp.sum(flat * flat, axis=0, keepdims=True)
    st_ref[...] = jnp.concatenate([s1, s2], axis=0).reshape(st_ref.shape)


# ---------------------------------------------------------------------------
# Pallas kernels
# ---------------------------------------------------------------------------
def _pool_conv1_kernel(xm_ref, xh_ref, w_ref, y_ref, st_ref, *, wo):
    # xm: (1, 2*TR, Wp2, 2*Cin) main tile, xh: (1, 4, Wp2, 2*Cin) bottom halo.
    # W-pooling phase is folded into the lane axis (free HBM reshape in wrapper).
    cin2 = xm_ref.shape[-1]
    cin = cin2 // 2
    tr, wp2 = y_ref.shape[1], y_ref.shape[2]

    def pool(v):                                          # (2r, wp2, 2cin) -> (r, wp2, cin)
        v = v.reshape(v.shape[0] // 2, 2, wp2, cin2)
        v = jnp.maximum(v[:, 0], v[:, 1])                 # max over H pair
        return jnp.maximum(v[..., :cin], v[..., cin:])    # max over W pair (lane halves)

    q = jnp.concatenate([pool(xm_ref[0]), pool(xh_ref[0])], axis=0)   # (tr+2, wp2, cin)
    acc3 = _conv3x3_flat(q.reshape((tr + 2) * wp2, cin), w_ref, tr, wp2, wo)
    _store_with_stats(acc3, y_ref, st_ref)


def _bn_relu_conv2_kernel(ym_ref, yt_ref, yb_ref, sc_ref, sh_ref, w_ref,
                          y_ref, st_ref, *, wo):
    # ym: (1, TR, Wp2, C) main tile of pre-BN conv1 output; yt/yb: 1-row halos
    # loaded straight from y1 with clamped index_maps (masked at image borders).
    tr, wp2 = y_ref.shape[1], y_ref.shape[2]
    c = ym_ref.shape[-1]
    t = pl.program_id(1)
    nt = pl.num_programs(1)

    a = jnp.concatenate([yt_ref[0], ym_ref[0], yb_ref[0]], axis=0)    # (tr+2, wp2, c)
    a = jnp.maximum(a * sc_ref[...] + sh_ref[...], 0.0)               # BN1 affine + ReLU
    # zero out-of-image halo rows (first/last tile) and lane-padding columns so
    # the conv sees an exact zero ring.
    row = jax.lax.broadcasted_iota(jnp.int32, (tr + 2, wp2, 1), 0)
    col = jax.lax.broadcasted_iota(jnp.int32, (tr + 2, wp2, 1), 1)
    valid = ((row > 0) | (t > 0)) & ((row < tr + 1) | (t < nt - 1)) & (col < wo)
    a = jnp.where(valid, a, 0.0)

    acc3 = _conv3x3_flat(a.reshape((tr + 2) * wp2, c), w_ref, tr, wp2, wo, lead=1)
    _store_with_stats(acc3, y_ref, st_ref)


def _bn_relu_kernel(y_ref, sc_ref, sh_ref, o_ref):
    o_ref[...] = jnp.maximum(y_ref[...] * sc_ref[...] + sh_ref[...], 0.0)


# ---------------------------------------------------------------------------
# wrapper
# ---------------------------------------------------------------------------
def _bn_affine(partial_stats, count, gamma, beta):
    """Per-channel (scale, shift) from per-tile (sum, sumsq) partials."""
    s = jnp.sum(partial_stats, axis=(0, 1))               # (2, Cout)
    mean = s[0] / count
    var = jnp.maximum(s[1] / count - mean * mean, 0.0)     # biased var (training BN)
    scale = gamma * jax.lax.rsqrt(var + EPS)
    shift = beta - mean * scale
    cout = gamma.shape[0]
    return (scale.reshape(1, cout).astype(jnp.float32),
            shift.reshape(1, cout).astype(jnp.float32))


def unet2d_down_forward(x_nchw, params):
    N, Cin, H, W = x_nchw.shape
    assert H % 4 == 0 and W % 2 == 0, "expects even pooled spatial dims"
    Ho, Wo = H // 2, W // 2
    Cout = params["w1"].shape[0]
    Wp2 = _round_up(Wo + 2, 8)          # pooled width incl. conv pad, 8-aligned
    TR = _pick_row_tile(Ho, Wp2, Cin, Cout)
    T = Ho // TR
    grid = (N, T)
    cparams = pltpu.CompilerParams(
        dimension_semantics=("parallel", "parallel"),
        vmem_limit_bytes=48 * 1024 * 1024)

    # NCHW -> NHWC; pad so (a) the 2x2 maxpool of the zero border supplies conv1's
    # zero-padding ring and (b) the pooled width is 8-aligned; then fold the W
    # pooling phase into the lane axis (contiguous reshape, free in HBM).
    x_nhwc = jnp.transpose(x_nchw, (0, 2, 3, 1))
    xp = jnp.pad(x_nhwc, ((0, 0), (2, 2), (2, 2 * Wp2 - W - 2), (0, 0)))
    xp = xp.reshape(N, H + 4, Wp2, 2 * Cin)

    # PyTorch (Cout, Cin, 3, 3) -> (dy, dx, ci)-major (9*Cin, Cout), bf16 for MXU.
    w1 = jnp.transpose(params["w1"], (2, 3, 1, 0)).reshape(9 * Cin, Cout)
    w1 = w1.astype(jnp.bfloat16)
    w2 = jnp.transpose(params["w2"], (2, 3, 1, 0)).reshape(9 * Cout, Cout)
    w2 = w2.astype(jnp.bfloat16)
    # Conv biases are omitted in-kernel: training-mode BN's mean subtraction
    # cancels a constant per-channel bias exactly.
    # TODO(synk): BatchNorm running_mean/running_var updates (training-mode side
    # effect) are not modeled; only the forward output is reproduced.

    # ---- pass 1: fused 2x2 maxpool + conv1 (+ per-tile BN1 partial stats) ----
    y1, st1 = pl.pallas_call(
        functools.partial(_pool_conv1_kernel, wo=Wo),
        grid=grid,
        in_specs=[
            pl.BlockSpec((1, 2 * TR, Wp2, 2 * Cin), lambda n, t: (n, t, 0, 0)),
            pl.BlockSpec((1, 4, Wp2, 2 * Cin),
                         lambda n, t: (n, (t + 1) * (TR // 2), 0, 0)),
            pl.BlockSpec((9 * Cin, Cout), lambda n, t: (0, 0)),
        ],
        out_specs=[
            pl.BlockSpec((1, TR, Wp2, Cout), lambda n, t: (n, t, 0, 0)),
            pl.BlockSpec((1, 1, 2, Cout), lambda n, t: (n, t, 0, 0)),
        ],
        out_shape=(
            jax.ShapeDtypeStruct((N, Ho, Wp2, Cout), jnp.float32),
            jax.ShapeDtypeStruct((N, T, 2, Cout), jnp.float32),
        ),
        compiler_params=cparams,
    )(xp, xp, w1)

    scale1, shift1 = _bn_affine(st1, N * Ho * Wo, params["g1"], params["be1"])

    # ---- pass 2: BN1 affine + ReLU + conv2 (+ per-tile BN2 partial stats) ----
    # Halos are read directly from y1 (no HBM re-pad of the intermediate).
    y2, st2 = pl.pallas_call(
        functools.partial(_bn_relu_conv2_kernel, wo=Wo),
        grid=grid,
        in_specs=[
            pl.BlockSpec((1, TR, Wp2, Cout), lambda n, t: (n, t, 0, 0)),
            pl.BlockSpec((1, 1, Wp2, Cout),
                         lambda n, t: (n, jnp.maximum(t * TR - 1, 0), 0, 0)),
            pl.BlockSpec((1, 1, Wp2, Cout),
                         lambda n, t: (n, jnp.minimum((t + 1) * TR, Ho - 1), 0, 0)),
            pl.BlockSpec((1, Cout), lambda n, t: (0, 0)),
            pl.BlockSpec((1, Cout), lambda n, t: (0, 0)),
            pl.BlockSpec((9 * Cout, Cout), lambda n, t: (0, 0)),
        ],
        out_specs=[
            pl.BlockSpec((1, TR, Wp2, Cout), lambda n, t: (n, t, 0, 0)),
            pl.BlockSpec((1, 1, 2, Cout), lambda n, t: (n, t, 0, 0)),
        ],
        out_shape=(
            jax.ShapeDtypeStruct((N, Ho, Wp2, Cout), jnp.float32),
            jax.ShapeDtypeStruct((N, T, 2, Cout), jnp.float32),
        ),
        compiler_params=cparams,
    )(y1, y1, y1, scale1, shift1, w2)

    scale2, shift2 = _bn_affine(st2, N * Ho * Wo, params["g2"], params["be2"])

    # ---- pass 3: BN2 affine + ReLU ----
    out = pl.pallas_call(
        _bn_relu_kernel,
        grid=grid,
        in_specs=[
            pl.BlockSpec((1, TR, Wp2, Cout), lambda n, t: (n, t, 0, 0)),
            pl.BlockSpec((1, Cout), lambda n, t: (0, 0)),
            pl.BlockSpec((1, Cout), lambda n, t: (0, 0)),
        ],
        out_specs=pl.BlockSpec((1, TR, Wp2, Cout), lambda n, t: (n, t, 0, 0)),
        out_shape=jax.ShapeDtypeStruct((N, Ho, Wp2, Cout), jnp.float32),
        compiler_params=cparams,
    )(y2, scale2, shift2)

    return jnp.transpose(out[:, :, :Wo, :], (0, 3, 1, 2))   # NHWC -> NCHW


def init_params(key, cin, cout):
    k1, k2, k3, k4 = jax.random.split(key, 4)
    return {
        "w1": 0.1 * jax.random.normal(k1, (cout, cin, 3, 3), jnp.float32),
        "b1": 0.01 * jax.random.normal(k2, (cout,), jnp.float32),
        "g1": jnp.ones((cout,), jnp.float32),
        "be1": jnp.zeros((cout,), jnp.float32),
        "w2": 0.1 * jax.random.normal(k3, (cout, cout, 3, 3), jnp.float32),
        "b2": 0.01 * jax.random.normal(k4, (cout,), jnp.float32),
        "g2": jnp.ones((cout,), jnp.float32),
        "be2": jnp.zeros((cout,), jnp.float32),
    }


# ---------------------------------------------------------------------------
# pure-JAX reference (for correctness check; includes conv bias)
# ---------------------------------------------------------------------------
def _ref_conv_bn_relu(x, w, b, g, be):
    y = jax.lax.conv_general_dilated(x, w, (1, 1), ((1, 1), (1, 1)),
                                     dimension_numbers=("NCHW", "OIHW", "NCHW"))
    y = y + b[None, :, None, None]
    mean = jnp.mean(y, axis=(0, 2, 3), keepdims=True)
    var = jnp.mean(jnp.square(y - mean), axis=(0, 2, 3), keepdims=True)
    y = g[None, :, None, None] * (y - mean) * jax.lax.rsqrt(var + EPS) \
        + be[None, :, None, None]
    return jnp.maximum(y, 0.0)


def ref_forward(x, params):
    y = jax.lax.reduce_window(x, -jnp.inf, jax.lax.max,
                              (1, 1, 2, 2), (1, 1, 2, 2), "VALID")
    y = _ref_conv_bn_relu(y, params["w1"], params["b1"], params["g1"], params["be1"])
    y = _ref_conv_bn_relu(y, params["w2"], params["b2"], params["g2"], params["be2"])
    return y


if __name__ == "__main__":
    key = jax.random.PRNGKey(0)
    kx, kp = jax.random.split(key)
    N, Cin, H, W, Cout = 2, 4, 16, 16, 8
    x = jax.random.normal(kx, (N, Cin, H, W), jnp.float32)
    params = init_params(kp, Cin, Cout)

    fwd = jax.jit(unet2d_down_forward)
    out = jax.block_until_ready(fwd(x, params))
    assert out.shape == (N, Cout, H // 2, W // 2), out.shape
    assert bool(jnp.all(jnp.isfinite(out)))

    ref = jax.block_until_ready(ref_forward(x, params))
    # bf16 MXU operands (f32 accumulation) -> slightly looser tolerance than f32.
    np.testing.assert_allclose(np.asarray(out), np.asarray(ref),
                               rtol=2e-2, atol=2e-2)
    print("KERNEL_OK")
</pallas_src>

<mosaic_0001>
module attributes {stable_mosaic.version = 11 : i64} {
  func.func @_pool_conv1_kernel(%arg0: i32, %arg1: i32, %arg2: memref<1x16x16x8xf32, #tpu.memory_space<vmem>>, %arg3: memref<1x4x16x8xf32, #tpu.memory_space<vmem>>, %arg4: memref<36x8xbf16, #tpu.memory_space<vmem>>, %arg5: memref<1x8x16x8xf32, #tpu.memory_space<vmem>>, %arg6: memref<1x1x2x8xf32, #tpu.memory_space<vmem>>) attributes {dimension_semantics = [#tpu.dimension_semantics<parallel>, #tpu.dimension_semantics<parallel>], iteration_bounds = array<i64: 2, 1>, scalar_prefetch = 0 : i64, scratch_operands = 0 : i64, tpu.core_type = #tpu.core_type<tc>, window_params = [{transform_indices = @transform_0, window_bounds = array<i64: 1, 16, 16, 8>}, {transform_indices = @transform_1, window_bounds = array<i64: 1, 4, 16, 8>}, {pipeline_mode = #tpu.pipeline_mode<synchronous>, transform_indices = @transform_2, window_bounds = array<i64: 36, 8>}, {transform_indices = @transform_3, window_bounds = array<i64: 1, 8, 16, 8>}, {transform_indices = @transform_4, window_bounds = array<i64: 1, 1, 2, 8>}]} {
    %c0 = arith.constant 0 : index
    %c0_0 = arith.constant 0 : index
    %c0_1 = arith.constant 0 : index
    %c0_2 = arith.constant 0 : index
    %0 = vector.load %arg2[%c0, %c0_0, %c0_1, %c0_2] : memref<1x16x16x8xf32, #tpu.memory_space<vmem>>, vector<1x16x16x8xf32>
    %1 = vector.shape_cast %0 : vector<1x16x16x8xf32> to vector<16x16x8xf32>
    %2 = vector.shape_cast %1 : vector<16x16x8xf32> to vector<8x2x16x8xf32>
    %3 = vector.extract_strided_slice %2 {offsets = [0, 0, 0, 0], sizes = [8, 1, 16, 8], strides = [1, 1, 1, 1]} : vector<8x2x16x8xf32> to vector<8x1x16x8xf32>
    %4 = vector.shape_cast %3 : vector<8x1x16x8xf32> to vector<8x16x8xf32>
    %5 = vector.extract_strided_slice %2 {offsets = [0, 1, 0, 0], sizes = [8, 1, 16, 8], strides = [1, 1, 1, 1]} : vector<8x2x16x8xf32> to vector<8x1x16x8xf32>
    %6 = vector.shape_cast %5 : vector<8x1x16x8xf32> to vector<8x16x8xf32>
    %7 = arith.maximumf %4, %6 : vector<8x16x8xf32>
    %8 = vector.extract_strided_slice %7 {offsets = [0, 0, 0], sizes = [8, 16, 4], strides = [1, 1, 1]} : vector<8x16x8xf32> to vector<8x16x4xf32>
    %9 = vector.extract_strided_slice %7 {offsets = [0, 0, 4], sizes = [8, 16, 4], strides = [1, 1, 1]} : vector<8x16x8xf32> to vector<8x16x4xf32>
    %10 = arith.maximumf %8, %9 : vector<8x16x4xf32>
    %c0_3 = arith.constant 0 : index
    %c0_4 = arith.constant 0 : index
    %c0_5 = arith.constant 0 : index
    %c0_6 = arith.constant 0 : index
    %11 = vector.load %arg3[%c0_3, %c0_4, %c0_5, %c0_6] : memref<1x4x16x8xf32, #tpu.memory_space<vmem>>, vector<1x4x16x8xf32>
    %12 = vector.shape_cast %11 : vector<1x4x16x8xf32> to vector<4x16x8xf32>
    %13 = vector.shape_cast %12 : vector<4x16x8xf32> to vector<2x2x16x8xf32>
    %14 = vector.extract_strided_slice %13 {offsets = [0, 0, 0, 0], sizes = [2, 1, 16, 8], strides = [1, 1, 1, 1]} : vector<2x2x16x8xf32> to vector<2x1x16x8xf32>
    %15 = vector.shape_cast %14 : vector<2x1x16x8xf32> to vector<2x16x8xf32>
    %16 = vector.extract_strided_slice %13 {offsets = [0, 1, 0, 0], sizes = [2, 1, 16, 8], strides = [1, 1, 1, 1]} : vector<2x2x16x8xf32> to vector<2x1x16x8xf32>
    %17 = vector.shape_cast %16 : vector<2x1x16x8xf32> to vector<2x16x8xf32>
    %18 = arith.maximumf %15, %17 : vector<2x16x8xf32>
    %19 = vector.extract_strided_slice %18 {offsets = [0, 0, 0], sizes = [2, 16, 4], strides = [1, 1, 1]} : vector<2x16x8xf32> to vector<2x16x4xf32>
    %20 = vector.extract_strided_slice %18 {offsets = [0, 0, 4], sizes = [2, 16, 4], strides = [1, 1, 1]} : vector<2x16x8xf32> to vector<2x16x4xf32>
    %21 = arith.maximumf %19, %20 : vector<2x16x4xf32>
    %22 = tpu.concatenate %10, %21 in 0 : vector<8x16x4xf32>, vector<2x16x4xf32> -> vector<10x16x4xf32>
    %23 = vector.shape_cast %22 : vector<10x16x4xf32> to vector<160x4xf32>
    %cst = arith.constant 0.000000e+00 : f32
    %24 = vector.broadcast %cst : f32 to vector<8x4xf32>
    %25 = tpu.concatenate %23, %24 in 0 : vector<160x4xf32>, vector<8x4xf32> -> vector<168x4xf32>
    %26 = vector.extract_strided_slice %25 {offsets = [0, 0], sizes = [128, 4], strides = [1, 1]} : vector<168x4xf32> to vector<128x4xf32>
    %27 = vector.extract_strided_slice %25 {offsets = [1, 0], sizes = [128, 4], strides = [1, 1]} : vector<168x4xf32> to vector<128x4xf32>
    %28 = vector.extract_strided_slice %25 {offsets = [2, 0], sizes = [128, 4], strides = [1, 1]} : vector<168x4xf32> to vector<128x4xf32>
    %29 = vector.extract_strided_slice %25 {offsets = [16, 0], sizes = [128, 4], strides = [1, 1]} : vector<168x4xf32> to vector<128x4xf32>
    %30 = vector.extract_strided_slice %25 {offsets = [17, 0], sizes = [128, 4], strides = [1, 1]} : vector<168x4xf32> to vector<128x4xf32>
    %31 = vector.extract_strided_slice %25 {offsets = [18, 0], sizes = [128, 4], strides = [1, 1]} : vector<168x4xf32> to vector<128x4xf32>
    %32 = vector.extract_strided_slice %25 {offsets = [32, 0], sizes = [128, 4], strides = [1, 1]} : vector<168x4xf32> to vector<128x4xf32>
    %33 = vector.extract_strided_slice %25 {offsets = [33, 0], sizes = [128, 4], strides = [1, 1]} : vector<168x4xf32> to vector<128x4xf32>
    %34 = vector.extract_strided_slice %25 {offsets = [34, 0], sizes = [128, 4], strides = [1, 1]} : vector<168x4xf32> to vector<128x4xf32>
    %35 = tpu.concatenate %26, %27, %28, %29, %30, %31, %32, %33, %34 in 1 : vector<128x4xf32>, vector<128x4xf32>, vector<128x4xf32>, vector<128x4xf32>, vector<128x4xf32>, vector<128x4xf32>, vector<128x4xf32>, vector<128x4xf32>, vector<128x4xf32> -> vector<128x36xf32>
    %36 = arith.truncf %35 : vector<128x36xf32> to vector<128x36xbf16>
    %c0_7 = arith.constant 0 : index
    %c0_8 = arith.constant 0 : index
    %37 = vector.load %arg4[%c0_7, %c0_8] : memref<36x8xbf16, #tpu.memory_space<vmem>>, vector<36x8xbf16>
    %cst_9 = arith.constant dense<0.000000e+00> : vector<128x8xf32>
    %38 = tpu.matmul %36, %37, %cst_9 {dimension_numbers = #tpu.dot_dimension_numbers<[1], [0], [0], [1], [0, 0, 1, 1], [], []>} : vector<128x36xbf16>, vector<36x8xbf16>, vector<128x8xf32> -> vector<128x8xf32>
    %39 = vector.shape_cast %38 : vector<128x8xf32> to vector<8x16x8xf32>
    %40 = tpu.iota {dimensions = array<i32: 1>} : vector<8x16x1xi32>
    %c8_i32 = arith.constant 8 : i32
    %41 = vector.broadcast %c8_i32 : i32 to vector<8x16x1xi32>
    %42 = arith.cmpi slt, %40, %41 : vector<8x16x1xi32>
    %cst_10 = arith.constant 0.000000e+00 : f32
    %43 = vector.shape_cast %42 : vector<8x16x1xi1> to vector<8x16x1xi1>
    %44 = vector.broadcast %43 : vector<8x16x1xi1> to vector<8x16x8xi1>
    %45 = vector.broadcast %cst_10 : f32 to vector<8x16x8xf32>
    %46 = arith.select %44, %39, %45 : vector<8x16x8xi1>, vector<8x16x8xf32>
    %c0_11 = arith.constant 0 : index
    %c0_12 = arith.constant 0 : index
    %c0_13 = arith.constant 0 : index
    %c0_14 = arith.constant 0 : index
    %47 = vector.load %arg5[%c0_11, %c0_12, %c0_13, %c0_14] : memref<1x8x16x8xf32, #tpu.memory_space<vmem>>, vector<1x8x16x8xf32>
    %48 = vector.shape_cast %47 : vector<1x8x16x8xf32> to vector<8x16x8xf32>
    %49 = vector.shape_cast %46 : vector<8x16x8xf32> to vector<1x8x16x8xf32>
    tpu.vector_store %arg5[%c0_11, %c0_12, %c0_13, %c0_14], %49 {strides = array<i32>} : memref<1x8x16x8xf32, #tpu.memory_space<vmem>>, vector<1x8x16x8xf32>,
    %50 = vector.shape_cast %46 : vector<8x16x8xf32> to vector<128x8xf32>
    %cst_15 = arith.constant dense<0.000000e+00> : vector<8xf32>
    %51 = vector.multi_reduction <add>, %50, %cst_15 [0] : vector<128x8xf32> to vector<8xf32>
    %52 = vector.shape_cast %51 : vector<8xf32> to vector<1x8xf32>
    %53 = arith.mulf %50, %50 : vector<128x8xf32>
    %cst_16 = arith.constant dense<0.000000e+00> : vector<8xf32>
    %54 = vector.multi_reduction <add>, %53, %cst_16 [0] : vector<128x8xf32> to vector<8xf32>
    %55 = vector.shape_cast %54 : vector<8xf32> to vector<1x8xf32>
    %56 = tpu.concatenate %52, %55 in 0 : vector<1x8xf32>, vector<1x8xf32> -> vector<2x8xf32>
    %57 = vector.shape_cast %56 : vector<2x8xf32> to vector<1x1x2x8xf32>
    %c0_17 = arith.constant 0 : index
    %c0_18 = arith.constant 0 : index
    %c0_19 = arith.constant 0 : index
    %c0_20 = arith.constant 0 : index
    %58 = vector.load %arg6[%c0_17, %c0_18, %c0_19, %c0_20] : memref<1x1x2x8xf32, #tpu.memory_space<vmem>>, vector<1x1x2x8xf32>
    tpu.vector_store %arg6[%c0_17, %c0_18, %c0_19, %c0_20], %57 {strides = array<i32>} : memref<1x1x2x8xf32, #tpu.memory_space<vmem>>, vector<1x1x2x8xf32>,
    return
  }
  func.func @transform_0(%arg0: i32, %arg1: i32) -> (i32, i32, i32, i32) {
    %c0_i32 = arith.constant 0 : i32
    %c0_i32_0 = arith.constant 0 : i32
    %c0_i32_1 = arith.constant 0 : i32
    return %arg0, %arg1, %c0_i32, %c0_i32_0 : i32, i32, i32, i32
  }
  func.func @transform_1(%arg0: i32, %arg1: i32) -> (i32, i32, i32, i32) {
    %c1_i32 = arith.constant 1 : i32
    %0 = arith.addi %arg1, %c1_i32 : i32
    %c4_i32 = arith.constant 4 : i32
    %1 = arith.muli %0, %c4_i32 : i32
    %c0_i32 = arith.constant 0 : i32
    %c0_i32_0 = arith.constant 0 : i32
    %c0_i32_1 = arith.constant 0 : i32
    return %arg0, %1, %c0_i32, %c0_i32_0 : i32, i32, i32, i32
  }
  func.func @transform_2(%arg0: i32, %arg1: i32) -> (i32, i32) {
    %c0_i32 = arith.constant 0 : i32
    %c0_i32_0 = arith.constant 0 : i32
    %c0_i32_1 = arith.constant 0 : i32
    return %c0_i32, %c0_i32_0 : i32, i32
  }
  func.func @transform_3(%arg0: i32, %arg1: i32) -> (i32, i32, i32, i32) {
    %c0_i32 = arith.constant 0 : i32
    %c0_i32_0 = arith.constant 0 : i32
    %c0_i32_1 = arith.constant 0 : i32
    return %arg0, %arg1, %c0_i32, %c0_i32_0 : i32, i32, i32, i32
  }
  func.func @transform_4(%arg0: i32, %arg1: i32) -> (i32, i32, i32, i32) {
    %c0_i32 = arith.constant 0 : i32
    %c0_i32_0 = arith.constant 0 : i32
    %c0_i32_1 = arith.constant 0 : i32
    return %arg0, %arg1, %c0_i32, %c0_i32_0 : i32, i32, i32, i32
  }
}

module attributes {stable_mosaic.version = 11 : i64} {
  func.func @_bn_relu_conv2_kernel(%arg0: i32, %arg1: i32, %arg2: memref<1x8x16x8xf32, #tpu.memory_space<vmem>>, %arg3: memref<1x1x16x8xf32, #tpu.memory_space<vmem>>, %arg4: memref<1x1x16x8xf32, #tpu.memory_space<vmem>>, %arg5: memref<1x8xf32, #tpu.memory_space<vmem>>, %arg6: memref<1x8xf32, #tpu.memory_space<vmem>>, %arg7: memref<72x8xbf16, #tpu.memory_space<vmem>>, %arg8: memref<1x8x16x8xf32, #tpu.memory_space<vmem>>, %arg9: memref<1x1x2x8xf32, #tpu.memory_space<vmem>>) attributes {dimension_semantics = [#tpu.dimension_semantics<parallel>, #tpu.dimension_semantics<parallel>], iteration_bounds = array<i64: 2, 1>, scalar_prefetch = 0 : i64, scratch_operands = 0 : i64, tpu.core_type = #tpu.core_type<tc>, window_params = [{transform_indices = @transform_0, window_bounds = array<i64: 1, 8, 16, 8>}, {transform_indices = @transform_1, window_bounds = array<i64: 1, 1, 16, 8>}, {transform_indices = @transform_2, window_bounds = array<i64: 1, 1, 16, 8>}, {pipeline_mode = #tpu.pipeline_mode<synchronous>, transform_indices = @transform_3, window_bounds = array<i64: 1, 8>}, {pipeline_mode = #tpu.pipeline_mode<synchronous>, transform_indices = @transform_4, window_bounds = array<i64: 1, 8>}, {pipeline_mode = #tpu.pipeline_mode<synchronous>, transform_indices = @transform_5, window_bounds = array<i64: 72, 8>}, {transform_indices = @transform_6, window_bounds = array<i64: 1, 8, 16, 8>}, {transform_indices = @transform_7, window_bounds = array<i64: 1, 1, 2, 8>}]} {
    %c0 = arith.constant 0 : index
    %c0_0 = arith.constant 0 : index
    %c0_1 = arith.constant 0 : index
    %c0_2 = arith.constant 0 : index
    %0 = vector.load %arg3[%c0, %c0_0, %c0_1, %c0_2] : memref<1x1x16x8xf32, #tpu.memory_space<vmem>>, vector<1x1x16x8xf32>
    %1 = vector.shape_cast %0 : vector<1x1x16x8xf32> to vector<1x16x8xf32>
    %c0_3 = arith.constant 0 : index
    %c0_4 = arith.constant 0 : index
    %c0_5 = arith.constant 0 : index
    %c0_6 = arith.constant 0 : index
    %2 = vector.load %arg2[%c0_3, %c0_4, %c0_5, %c0_6] : memref<1x8x16x8xf32, #tpu.memory_space<vmem>>, vector<1x8x16x8xf32>
    %3 = vector.shape_cast %2 : vector<1x8x16x8xf32> to vector<8x16x8xf32>
    %c0_7 = arith.constant 0 : index
    %c0_8 = arith.constant 0 : index
    %c0_9 = arith.constant 0 : index
    %c0_10 = arith.constant 0 : index
    %4 = vector.load %arg4[%c0_7, %c0_8, %c0_9, %c0_10] : memref<1x1x16x8xf32, #tpu.memory_space<vmem>>, vector<1x1x16x8xf32>
    %5 = vector.shape_cast %4 : vector<1x1x16x8xf32> to vector<1x16x8xf32>
    %6 = tpu.concatenate %1, %3, %5 in 0 : vector<1x16x8xf32>, vector<8x16x8xf32>, vector<1x16x8xf32> -> vector<10x16x8xf32>
    %c0_11 = arith.constant 0 : index
    %c0_12 = arith.constant 0 : index
    %7 = vector.load %arg5[%c0_11, %c0_12] : memref<1x8xf32, #tpu.memory_space<vmem>>, vector<1x8xf32>
    %8 = vector.shape_cast %7 : vector<1x8xf32> to vector<1x1x8xf32>
    %9 = vector.broadcast %8 : vector<1x1x8xf32> to vector<10x16x8xf32>
    %10 = arith.mulf %6, %9 : vector<10x16x8xf32>
    %c0_13 = arith.constant 0 : index
    %c0_14 = arith.constant 0 : index
    %11 = vector.load %arg6[%c0_13, %c0_14] : memref<1x8xf32, #tpu.memory_space<vmem>>, vector<1x8xf32>
    %12 = vector.shape_cast %11 : vector<1x8xf32> to vector<1x1x8xf32>
    %13 = vector.broadcast %12 : vector<1x1x8xf32> to vector<10x16x8xf32>
    %14 = arith.addf %10, %13 : vector<10x16x8xf32>
    %cst = arith.constant 0.000000e+00 : f32
    %15 = vector.broadcast %cst : f32 to vector<10x16x8xf32>
    %16 = arith.maximumf %14, %15 : vector<10x16x8xf32>
    %17 = tpu.iota {dimensions = array<i32: 0>} : vector<10x16x1xi32>
    %18 = tpu.iota {dimensions = array<i32: 1>} : vector<10x16x1xi32>
    %c0_i32 = arith.constant 0 : i32
    %19 = vector.broadcast %c0_i32 : i32 to vector<10x16x1xi32>
    %20 = arith.cmpi sgt, %17, %19 : vector<10x16x1xi32>
    %c0_i32_15 = arith.constant 0 : i32
    %21 = arith.cmpi sgt, %arg1, %c0_i32_15 : i32
    %22 = vector.broadcast %21 : i1 to vector<10x16x1xi1>
    %23 = arith.ori %20, %22 : vector<10x16x1xi1>
    %c9_i32 = arith.constant 9 : i32
    %24 = vector.broadcast %c9_i32 : i32 to vector<10x16x1xi32>
    %25 = arith.cmpi slt, %17, %24 : vector<10x16x1xi32>
    %c0_i32_16 = arith.constant 0 : i32
    %26 = arith.cmpi slt, %arg1, %c0_i32_16 : i32
    %27 = vector.broadcast %26 : i1 to vector<10x16x1xi1>
    %28 = arith.ori %25, %27 : vector<10x16x1xi1>
    %29 = arith.andi %23, %28 : vector<10x16x1xi1>
    %c8_i32 = arith.constant 8 : i32
    %30 = vector.broadcast %c8_i32 : i32 to vector<10x16x1xi32>
    %31 = arith.cmpi slt, %18, %30 : vector<10x16x1xi32>
    %32 = arith.andi %29, %31 : vector<10x16x1xi1>
    %cst_17 = arith.constant 0.000000e+00 : f32
    %33 = vector.shape_cast %32 : vector<10x16x1xi1> to vector<10x16x1xi1>
    %34 = vector.broadcast %33 : vector<10x16x1xi1> to vector<10x16x8xi1>
    %35 = vector.broadcast %cst_17 : f32 to vector<10x16x8xf32>
    %36 = arith.select %34, %16, %35 : vector<10x16x8xi1>, vector<10x16x8xf32>
    %37 = vector.shape_cast %36 : vector<10x16x8xf32> to vector<160x8xf32>
    %cst_18 = arith.constant 0.000000e+00 : f32
    %38 = vector.broadcast %cst_18 : f32 to vector<1x8xf32>
    %cst_19 = arith.constant 0.000000e+00 : f32
    %39 = vector.broadcast %cst_19 : f32 to vector<8x8xf32>
    %40 = tpu.concatenate %38, %37, %39 in 0 : vector<1x8xf32>, vector<160x8xf32>, vector<8x8xf32> -> vector<169x8xf32>
    %41 = vector.extract_strided_slice %40 {offsets = [0, 0], sizes = [128, 8], strides = [1, 1]} : vector<169x8xf32> to vector<128x8xf32>
    %42 = vector.extract_strided_slice %40 {offsets = [1, 0], sizes = [128, 8], strides = [1, 1]} : vector<169x8xf32> to vector<128x8xf32>
    %43 = vector.extract_strided_slice %40 {offsets = [2, 0], sizes = [128, 8], strides = [1, 1]} : vector<169x8xf32> to vector<128x8xf32>
    %44 = vector.extract_strided_slice %40 {offsets = [16, 0], sizes = [128, 8], strides = [1, 1]} : vector<169x8xf32> to vector<128x8xf32>
    %45 = vector.extract_strided_slice %40 {offsets = [17, 0], sizes = [128, 8], strides = [1, 1]} : vector<169x8xf32> to vector<128x8xf32>
    %46 = vector.extract_strided_slice %40 {offsets = [18, 0], sizes = [128, 8], strides = [1, 1]} : vector<169x8xf32> to vector<128x8xf32>
    %47 = vector.extract_strided_slice %40 {offsets = [32, 0], sizes = [128, 8], strides = [1, 1]} : vector<169x8xf32> to vector<128x8xf32>
    %48 = vector.extract_strided_slice %40 {offsets = [33, 0], sizes = [128, 8], strides = [1, 1]} : vector<169x8xf32> to vector<128x8xf32>
    %49 = vector.extract_strided_slice %40 {offsets = [34, 0], sizes = [128, 8], strides = [1, 1]} : vector<169x8xf32> to vector<128x8xf32>
    %50 = tpu.concatenate %41, %42, %43, %44, %45, %46, %47, %48, %49 in 1 : vector<128x8xf32>, vector<128x8xf32>, vector<128x8xf32>, vector<128x8xf32>, vector<128x8xf32>, vector<128x8xf32>, vector<128x8xf32>, vector<128x8xf32>, vector<128x8xf32> -> vector<128x72xf32>
    %51 = arith.truncf %50 : vector<128x72xf32> to vector<128x72xbf16>
    %c0_20 = arith.constant 0 : index
    %c0_21 = arith.constant 0 : index
    %52 = vector.load %arg7[%c0_20, %c0_21] : memref<72x8xbf16, #tpu.memory_space<vmem>>, vector<72x8xbf16>
    %cst_22 = arith.constant dense<0.000000e+00> : vector<128x8xf32>
    %53 = tpu.matmul %51, %52, %cst_22 {dimension_numbers = #tpu.dot_dimension_numbers<[1], [0], [0], [1], [0, 0, 1, 1], [], []>} : vector<128x72xbf16>, vector<72x8xbf16>, vector<128x8xf32> -> vector<128x8xf32>
    %54 = vector.shape_cast %53 : vector<128x8xf32> to vector<8x16x8xf32>
    %55 = tpu.iota {dimensions = array<i32: 1>} : vector<8x16x1xi32>
    %c8_i32_23 = arith.constant 8 : i32
    %56 = vector.broadcast %c8_i32_23 : i32 to vector<8x16x1xi32>
    %57 = arith.cmpi slt, %55, %56 : vector<8x16x1xi32>
    %cst_24 = arith.constant 0.000000e+00 : f32
    %58 = vector.shape_cast %57 : vector<8x16x1xi1> to vector<8x16x1xi1>
    %59 = vector.broadcast %58 : vector<8x16x1xi1> to vector<8x16x8xi1>
    %60 = vector.broadcast %cst_24 : f32 to vector<8x16x8xf32>
    %61 = arith.select %59, %54, %60 : vector<8x16x8xi1>, vector<8x16x8xf32>
    %c0_25 = arith.constant 0 : index
    %c0_26 = arith.constant 0 : index
    %c0_27 = arith.constant 0 : index
    %c0_28 = arith.constant 0 : index
    %62 = vector.load %arg8[%c0_25, %c0_26, %c0_27, %c0_28] : memref<1x8x16x8xf32, #tpu.memory_space<vmem>>, vector<1x8x16x8xf32>
    %63 = vector.shape_cast %62 : vector<1x8x16x8xf32> to vector<8x16x8xf32>
    %64 = vector.shape_cast %61 : vector<8x16x8xf32> to vector<1x8x16x8xf32>
    tpu.vector_store %arg8[%c0_25, %c0_26, %c0_27, %c0_28], %64 {strides = array<i32>} : memref<1x8x16x8xf32, #tpu.memory_space<vmem>>, vector<1x8x16x8xf32>,
    %65 = vector.shape_cast %61 : vector<8x16x8xf32> to vector<128x8xf32>
    %cst_29 = arith.constant dense<0.000000e+00> : vector<8xf32>
    %66 = vector.multi_reduction <add>, %65, %cst_29 [0] : vector<128x8xf32> to vector<8xf32>
    %67 = vector.shape_cast %66 : vector<8xf32> to vector<1x8xf32>
    %68 = arith.mulf %65, %65 : vector<128x8xf32>
    %cst_30 = arith.constant dense<0.000000e+00> : vector<8xf32>
    %69 = vector.multi_reduction <add>, %68, %cst_30 [0] : vector<128x8xf32> to vector<8xf32>
    %70 = vector.shape_cast %69 : vector<8xf32> to vector<1x8xf32>
    %71 = tpu.concatenate %67, %70 in 0 : vector<1x8xf32>, vector<1x8xf32> -> vector<2x8xf32>
    %72 = vector.shape_cast %71 : vector<2x8xf32> to vector<1x1x2x8xf32>
    %c0_31 = arith.constant 0 : index
    %c0_32 = arith.constant 0 : index
    %c0_33 = arith.constant 0 : index
    %c0_34 = arith.constant 0 : index
    %73 = vector.load %arg9[%c0_31, %c0_32, %c0_33, %c0_34] : memref<1x1x2x8xf32, #tpu.memory_space<vmem>>, vector<1x1x2x8xf32>
    tpu.vector_store %arg9[%c0_31, %c0_32, %c0_33, %c0_34], %72 {strides = array<i32>} : memref<1x1x2x8xf32, #tpu.memory_space<vmem>>, vector<1x1x2x8xf32>,
    return
  }
  func.func @transform_0(%arg0: i32, %arg1: i32) -> (i32, i32, i32, i32) {
    %c0_i32 = arith.constant 0 : i32
    %c0_i32_0 = arith.constant 0 : i32
    %c0_i32_1 = arith.constant 0 : i32
    return %arg0, %arg1, %c0_i32, %c0_i32_0 : i32, i32, i32, i32
  }
  func.func @transform_1(%arg0: i32, %arg1: i32) -> (i32, i32, i32, i32) {
    %c8_i32 = arith.constant 8 : i32
    %0 = arith.muli %arg1, %c8_i32 : i32
    %c1_i32 = arith.constant 1 : i32
    %1 = arith.subi %0, %c1_i32 : i32
    %c0_i32 = arith.constant 0 : i32
    %2 = arith.maxsi %1, %c0_i32 : i32
    %c0_i32_0 = arith.constant 0 : i32
    %c0_i32_1 = arith.constant 0 : i32
    %c0_i32_2 = arith.constant 0 : i32
    return %arg0, %2, %c0_i32_0, %c0_i32_1 : i32, i32, i32, i32
  }
  func.func @transform_2(%arg0: i32, %arg1: i32) -> (i32, i32, i32, i32) {
    %c1_i32 = arith.constant 1 : i32
    %0 = arith.addi %arg1, %c1_i32 : i32
    %c8_i32 = arith.constant 8 : i32
    %1 = arith.muli %0, %c8_i32 : i32
    %c7_i32 = arith.constant 7 : i32
    %2 = arith.minsi %1, %c7_i32 : i32
    %c0_i32 = arith.constant 0 : i32
    %c0_i32_0 = arith.constant 0 : i32
    %c0_i32_1 = arith.constant 0 : i32
    return %arg0, %2, %c0_i32, %c0_i32_0 : i32, i32, i32, i32
  }
  func.func @transform_3(%arg0: i32, %arg1: i32) -> (i32, i32) {
    %c0_i32 = arith.constant 0 : i32
    %c0_i32_0 = arith.constant 0 : i32
    %c0_i32_1 = arith.constant 0 : i32
    return %c0_i32, %c0_i32_0 : i32, i32
  }
  func.func @transform_4(%arg0: i32, %arg1: i32) -> (i32, i32) {
    %c0_i32 = arith.constant 0 : i32
    %c0_i32_0 = arith.constant 0 : i32
    %c0_i32_1 = arith.constant 0 : i32
    return %c0_i32, %c0_i32_0 : i32, i32
  }
  func.func @transform_5(%arg0: i32, %arg1: i32) -> (i32, i32) {
    %c0_i32 = arith.constant 0 : i32
    %c0_i32_0 = arith.constant 0 : i32
    %c0_i32_1 = arith.constant 0 : i32
    return %c0_i32, %c0_i32_0 : i32, i32
  }
  func.func @transform_6(%arg0: i32, %arg1: i32) -> (i32, i32, i32, i32) {
    %c0_i32 = arith.constant 0 : i32
    %c0_i32_0 = arith.constant 0 : i32
    %c0_i32_1 = arith.constant 0 : i32
    return %arg0, %arg1, %c0_i32, %c0_i32_0 : i32, i32, i32, i32
  }
  func.func @transform_7(%arg0: i32, %arg1: i32) -> (i32, i32, i32, i32) {
    %c0_i32 = arith.constant 0 : i32
    %c0_i32_0 = arith.constant 0 : i32
    %c0_i32_1 = arith.constant 0 : i32
    return %arg0, %arg1, %c0_i32, %c0_i32_0 : i32, i32, i32, i32
  }
}

module attributes {stable_mosaic.version = 11 : i64} {
  func.func @_bn_relu_kernel(%arg0: i32, %arg1: i32, %arg2: memref<1x8x16x8xf32, #tpu.memory_space<vmem>>, %arg3: memref<1x8xf32, #tpu.memory_space<vmem>>, %arg4: memref<1x8xf32, #tpu.memory_space<vmem>>, %arg5: memref<1x8x16x8xf32, #tpu.memory_space<vmem>>) attributes {dimension_semantics = [#tpu.dimension_semantics<parallel>, #tpu.dimension_semantics<parallel>], iteration_bounds = array<i64: 2, 1>, scalar_prefetch = 0 : i64, scratch_operands = 0 : i64, tpu.core_type = #tpu.core_type<tc>, window_params = [{transform_indices = @transform_0, window_bounds = array<i64: 1, 8, 16, 8>}, {pipeline_mode = #tpu.pipeline_mode<synchronous>, transform_indices = @transform_1, window_bounds = array<i64: 1, 8>}, {pipeline_mode = #tpu.pipeline_mode<synchronous>, transform_indices = @transform_2, window_bounds = array<i64: 1, 8>}, {transform_indices = @transform_3, window_bounds = array<i64: 1, 8, 16, 8>}]} {
    %c0 = arith.constant 0 : index
    %c0_0 = arith.constant 0 : index
    %c0_1 = arith.constant 0 : index
    %c0_2 = arith.constant 0 : index
    %0 = vector.load %arg2[%c0, %c0_0, %c0_1, %c0_2] : memref<1x8x16x8xf32, #tpu.memory_space<vmem>>, vector<1x8x16x8xf32>
    %c0_3 = arith.constant 0 : index
    %c0_4 = arith.constant 0 : index
    %1 = vector.load %arg3[%c0_3, %c0_4] : memref<1x8xf32, #tpu.memory_space<vmem>>, vector<1x8xf32>
    %2 = vector.shape_cast %1 : vector<1x8xf32> to vector<1x1x1x8xf32>
    %3 = vector.broadcast %2 : vector<1x1x1x8xf32> to vector<1x8x16x8xf32>
    %4 = arith.mulf %0, %3 : vector<1x8x16x8xf32>
    %c0_5 = arith.constant 0 : index
    %c0_6 = arith.constant 0 : index
    %5 = vector.load %arg4[%c0_5, %c0_6] : memref<1x8xf32, #tpu.memory_space<vmem>>, vector<1x8xf32>
    %6 = vector.shape_cast %5 : vector<1x8xf32> to vector<1x1x1x8xf32>
    %7 = vector.broadcast %6 : vector<1x1x1x8xf32> to vector<1x8x16x8xf32>
    %8 = arith.addf %4, %7 : vector<1x8x16x8xf32>
    %cst = arith.constant 0.000000e+00 : f32
    %9 = vector.broadcast %cst : f32 to vector<1x8x16x8xf32>
    %10 = arith.maximumf %8, %9 : vector<1x8x16x8xf32>
    %c0_7 = arith.constant 0 : index
    %c0_8 = arith.constant 0 : index
    %c0_9 = arith.constant 0 : index
    %c0_10 = arith.constant 0 : index
    %11 = vector.load %arg5[%c0_7, %c0_8, %c0_9, %c0_10] : memref<1x8x16x8xf32, #tpu.memory_space<vmem>>, vector<1x8x16x8xf32>
    tpu.vector_store %arg5[%c0_7, %c0_8, %c0_9, %c0_10], %10 {strides = array<i32>} : memref<1x8x16x8xf32, #tpu.memory_space<vmem>>, vector<1x8x16x8xf32>,
    return
  }
  func.func @transform_0(%arg0: i32, %arg1: i32) -> (i32, i32, i32, i32) {
    %c0_i32 = arith.constant 0 : i32
    %c0_i32_0 = arith.constant 0 : i32
    %c0_i32_1 = arith.constant 0 : i32
    return %arg0, %arg1, %c0_i32, %c0_i32_0 : i32, i32, i32, i32
  }
  func.func @transform_1(%arg0: i32, %arg1: i32) -> (i32, i32) {
    %c0_i32 = arith.constant 0 : i32
    %c0_i32_0 = arith.constant 0 : i32
    %c0_i32_1 = arith.constant 0 : i32
    return %c0_i32, %c0_i32_0 : i32, i32
  }
  func.func @transform_2(%arg0: i32, %arg1: i32) -> (i32, i32) {
    %c0_i32 = arith.constant 0 : i32
    %c0_i32_0 = arith.constant 0 : i32
    %c0_i32_1 = arith.constant 0 : i32
    return %c0_i32, %c0_i32_0 : i32, i32
  }
  func.func @transform_3(%arg0: i32, %arg1: i32) -> (i32, i32, i32, i32) {
    %c0_i32 = arith.constant 0 : i32
    %c0_i32_0 = arith.constant 0 : i32
    %c0_i32_1 = arith.constant 0 : i32
    return %arg0, %arg1, %c0_i32, %c0_i32_0 : i32, i32, i32, i32
  }
}

</mosaic_0001>

<bundles_post_ra>
// kernel: unet2d_down_forward.5
= control target key start
LH: loop header
LB: loop body
LE: loop exit
PB: predicated region body
PF: predicated region fallthrough
CT: control target
= control target key end

     0   :  { %s489_s12 = smov 0   ;;  %s491_s13 = smov 0   ;;  %s616_s0 = inlined_call_operand.vmem [shape: f32[2,8,16,8], index: 0, kind: input, shape index: {}]   ;;  %s617_s1 = inlined_call_operand.vmem [shape: f32[1,8], index: 1, kind: input, shape index: {}]   ;;  %s618_s2 = inlined_call_operand.vmem [shape: f32[1,8], index: 2, kind: input, shape index: {}]   ;;  %s619_s3 = inlined_call_operand.vmem [shape: f32[2,8,16,8], index: 3, kind: output, shape index: {}]  }
   0x1   :  { %s493_s14 = smov 0  }
   0x2 LB: > { %s25_s15 = sadd.s32 1, %s463_s13  ;;  %p410_p0 = scmp.ge.s32.totalorder %s467_s14, 1  ;;  %s467_s14 = sphi %s493_s14, %s13_s14   ;;  %s463_s13 = sphi %s491_s13, %s621_s13   ;;  %s459_s12 = sphi %s489_s12, %s620_s12  }
   0x3   : > { %p27_p1 = scmp.ge.s32.totalorder %s25_s15, 2  ;;  %p159_p2 = scmp.lt.s32.totalorder %s467_s14, 3 }
   0x5   : > { %s623_s15 = smov (%p27_p1, %s25_s15), 0  ;;  %p160_p3 = pnand %p410_p0, %p159_p2 }
   0x6   : > { %p194_p4 = scmp.lt.s32.totalorder (!%p160_p3), %s459_s12, 1  ;;  %v510_v0 = vld [vmem:[%s617_s1] ss:$0 sm:$0xff] (!%p160_p3)  ;;  %vm293_vm0 = vcmask (!%p160_p3), 64512  }
   0x7   : > { %163 = sbr.rel (%p160_p3) target bundleno = 35 (0x23), region = 32  ;;  %v520_v1 = vld [vmem:[%s618_s2] ss:$0 sm:$0xff] (!%p160_p3) }
   0xe   : > { %s625_s12 = smov (!%p194_p4, %s459_s12), 1 }
   0xf   : > { %s419_s16 = sshll.u32 %s625_s12, 7 }
  0x10   : > { %s515_s21 = scalar_lea.vmem %s616_s0, %s419_s16  ;;  %s543_s26 = scalar_lea.vmem %s619_s3, %s419_s16 }
  0x11   : > { %v215_v2 = vld [vmem:[%s515_s21] sm:$0xff]  ;;  %v216_v3 = vld [vmem:[%s515_s21 + $0x8] sm:$0xff]  ;;  %v217_v4 = vld [vmem:[%s515_s21 + $0x10] sm:$0xff] }
  0x12   : > { %v238_v5 = vmul.f32 %v510_v0, %v215_v2  ;;  %v239_v6 = vmul.f32 %v510_v0, %v216_v3  ;;  %v240_v7 = vmul.f32 %v510_v0, %v217_v4  ;;  %v218_v8 = vld [vmem:[%s515_s21 + $0x18] sm:$0xff]  ;;  %v219_v9 = vld [vmem:[%s515_s21 + $0x20] sm:$0xff]  ;;  %v220_v10 = vld [vmem:[%s515_s21 + $0x28] sm:$0xff] }
  0x13   : > { %v241_v11 = vmul.f32 %v510_v0, %v218_v8  ;;  %v242_v12 = vmul.f32 %v510_v0, %v219_v9  ;;  %v243_v13 = vmul.f32 %v510_v0, %v220_v10  ;;  %v221_v14 = vld [vmem:[%s515_s21 + $0x30] sm:$0xff]  ;;  %v222_v15 = vld [vmem:[%s515_s21 + $0x38] sm:$0xff]  ;;  %v223_v24 = vld [vmem:[%s515_s21 + $0x40] sm:$0xff] }
  0x14   : > { %v261_v16 = vadd.f32 %v520_v1, %v238_v5  ;;  %v262_v17 = vadd.f32 %v520_v1, %v239_v6  ;;  %v263_v18 = vadd.f32 %v520_v1, %v240_v7  ;;  %v244_v19 = vmul.f32 %v510_v0, %v221_v14  ;;  %v224_v25 = vld [vmem:[%s515_s21 + $0x48] sm:$0xff]  ;;  %v225_v26 = vld [vmem:[%s515_s21 + $0x50] sm:$0xff]  ;;  %v226_v31 = vld [vmem:[%s515_s21 + $0x58] sm:$0xff] }
  0x15   : > { %v264_v20 = vadd.f32 %v520_v1, %v241_v11  ;;  %v265_v21 = vadd.f32 %v520_v1, %v242_v12  ;;  %v266_v22 = vadd.f32 %v520_v1, %v243_v13  ;;  %v245_v23 = vmul.f32 %v510_v0, %v222_v15  ;;  %v227_v32 = vld [vmem:[%s515_s21 + $0x60] sm:$0xff]  ;;  %v228_v33 = vld [vmem:[%s515_s21 + $0x68] sm:$0xff]  ;;  %v229_v38 = vld [vmem:[%s515_s21 + $0x70] sm:$0xff] }
  0x16   : > { %v277_v27 = vmax.f32 %v261_v16, 0.0  ;;  %v278_v28 = vmax.f32 %v262_v17, 0.0  ;;  %v279_v29 = vmax.f32 %v263_v18, 0.0  ;;  %v267_v30 = vadd.f32 %v520_v1, %v244_v19  ;;  %v230_v43 = vld [vmem:[%s515_s21 + $0x78] sm:$0xff] }
  0x17   : > { %v280_v34 = vmax.f32 %v264_v20, 0.0  ;;  %v281_v35 = vmax.f32 %v265_v21, 0.0  ;;  %v282_v36 = vmax.f32 %v266_v22, 0.0  ;;  %v268_v37 = vadd.f32 %v520_v1, %v245_v23 }
  0x18   : > { %294 = vst.msk [vmem:[%s543_s26] sm:$0xff] %vm293_vm0, %v277_v27  ;;  %295 = vst.msk [vmem:[%s543_s26 + $0x8] sm:$0xff] %vm293_vm0, %v278_v28  ;;  %v283_v39 = vmax.f32 %v267_v30, 0.0  ;;  %v246_v40 = vmul.f32 %v510_v0, %v223_v24  ;;  %v247_v41 = vmul.f32 %v510_v0, %v224_v25  ;;  %v248_v42 = vmul.f32 %v510_v0, %v225_v26 }
  0x19   : > { %296 = vst.msk [vmem:[%s543_s26 + $0x10] sm:$0xff] %vm293_vm0, %v279_v29  ;;  %297 = vst.msk [vmem:[%s543_s26 + $0x18] sm:$0xff] %vm293_vm0, %v280_v34  ;;  %v284_v44 = vmax.f32 %v268_v37, 0.0  ;;  %v249_v45 = vmul.f32 %v510_v0, %v226_v31  ;;  %v250_v46 = vmul.f32 %v510_v0, %v227_v32  ;;  %v251_v47 = vmul.f32 %v510_v0, %v228_v33 }
  0x1a   : > { %298 = vst.msk [vmem:[%s543_s26 + $0x20] sm:$0xff] %vm293_vm0, %v281_v35  ;;  %299 = vst.msk [vmem:[%s543_s26 + $0x28] sm:$0xff] %vm293_vm0, %v282_v36  ;;  %v269_v48 = vadd.f32 %v520_v1, %v246_v40  ;;  %v270_v49 = vadd.f32 %v520_v1, %v247_v41  ;;  %v271_v50 = vadd.f32 %v520_v1, %v248_v42 }
  0x1b   : > { %300 = vst.msk [vmem:[%s543_s26 + $0x30] sm:$0xff] %vm293_vm0, %v283_v39  ;;  %v252_v51 = vmul.f32 %v510_v0, %v229_v38  ;;  %301 = vst.msk [vmem:[%s543_s26 + $0x38] sm:$0xff] %vm293_vm0, %v284_v44  ;;  %v272_v52 = vadd.f32 %v520_v1, %v249_v45  ;;  %v273_v53 = vadd.f32 %v520_v1, %v250_v46 }
  0x1c   : > { %v274_v54 = vadd.f32 %v520_v1, %v251_v47  ;;  %v253_v55 = vmul.f32 %v510_v0, %v230_v43  ;;  %v285_v56 = vmax.f32 %v269_v48, 0.0  ;;  %v286_v57 = vmax.f32 %v270_v49, 0.0 }
  0x1d   : > { %v287_v58 = vmax.f32 %v271_v50, 0.0  ;;  %v275_v59 = vadd.f32 %v520_v1, %v252_v51  ;;  %v288_v60 = vmax.f32 %v272_v52, 0.0  ;;  %v289_v61 = vmax.f32 %v273_v53, 0.0 }
  0x1e   : > { %v290_v62 = vmax.f32 %v274_v54, 0.0  ;;  %v276_v63 = vadd.f32 %v520_v1, %v253_v55  ;;  %302 = vst.msk [vmem:[%s543_s26 + $0x40] sm:$0xff] %vm293_vm0, %v285_v56  ;;  %303 = vst.msk [vmem:[%s543_s26 + $0x48] sm:$0xff] %vm293_vm0, %v286_v57 }
  0x1f   : > { %304 = vst.msk [vmem:[%s543_s26 + $0x50] sm:$0xff] %vm293_vm0, %v287_v58  ;;  %v291_v2 = vmax.f32 %v275_v59, 0.0  ;;  %305 = vst.msk [vmem:[%s543_s26 + $0x58] sm:$0xff] %vm293_vm0, %v288_v60 }
  0x20   : > { %306 = vst.msk [vmem:[%s543_s26 + $0x60] sm:$0xff] %vm293_vm0, %v289_v61  ;;  %307 = vst.msk [vmem:[%s543_s26 + $0x68] sm:$0xff] %vm293_vm0, %v290_v62  ;;  %v292_v0 = vmax.f32 %v276_v63, 0.0 }
  0x21   : > { %308 = vst.msk [vmem:[%s543_s26 + $0x70] sm:$0xff] %vm293_vm0, %v291_v2 }
  0x22   : > { %309 = vst.msk [vmem:[%s543_s26 + $0x78] sm:$0xff] %vm293_vm0, %v292_v0 }
  0x23 PF: > { %s13_s14 = sadd.s32 1, %s467_s14   ;;  %s620_s12 = smov %s463_s13 }
  0x24   : > { %p10_p5 = scmp.ge.s32.totalorder %s13_s14, 4   ;;  %s621_s13 = smov %s623_s15 }
  0x26   :  { %12 = sbr.rel (!%p10_p5) target bundleno = 2 (0x2), region = 62 }

// kernel: unet2d_down_forward.3
= control target key start
LH: loop header
LB: loop body
LE: loop exit
PB: predicated region body
PF: predicated region fallthrough
CT: control target
= control target key end

     0   :  { %s2108_s15 = smov 0   ;;  %s2110_s16 = smov 0   ;;  %s2867_s0 = inlined_call_operand.vmem [shape: f32[2,20,16,8], index: 0, kind: input, shape index: {}, may-alias: {0,1}]   ;;  %s2868_s1 = inlined_call_operand.vmem [shape: f32[2,20,16,8], index: 1, kind: input, shape index: {}, may-alias: {0,1}]   ;;  %s2869_s2 = inlined_call_operand.vmem [shape: bf16[36,8], index: 2, kind: input, shape index: {}]   ;;  %s2870_s3 = inlined_call_operand.vmem [shape: f32[2,8,16,8], index: 3, kind: output, shape index: {0}]   ;;  %s2871_s4 = inlined_call_operand.vmem [shape: f32[2,1,2,8], index: 4, kind: output, shape index: {1}]  }
   0x1   :  { %s2112_s17 = smov 0  }
   0x2 LB: > { %s27_s18 = sadd.s32 1, %s2067_s16  ;;  %p1576_p0 = scmp.ge.s32.totalorder %s2071_s17, 1  ;;  %s2071_s17 = sphi %s2112_s17, %s15_s17   ;;  %s2067_s16 = sphi %s2110_s16, %s2873_s16   ;;  %s2063_s15 = sphi %s2108_s15, %s2872_s15  }
   0x3   : > { %p29_p1 = scmp.ge.s32.totalorder %s27_s18, 2  ;;  %p225_p2 = scmp.lt.s32.totalorder %s2071_s17, 3 }
   0x5   : > { %s2875_s18 = smov (%p29_p1, %s27_s18), 0  ;;  %p226_p3 = pnand %p1576_p0, %p225_p2 }
   0x6   : > { %p291_p4 = scmp.lt.s32.totalorder (!%p226_p3), %s2063_s15, 1  ;;  %s2073_s24 = smov (!%p226_p3), 124   ;;  %vm1006_vm0 = vcmask (!%p226_p3), 64512   ;;  %vm517_vm1 = vcmask (!%p226_p3), 1046528   ;;  %vm599_vm2 = vcmask (!%p226_p3), 1045504   ;;  %vm1178_vm3 = vcmask (!%p226_p3), 1041408  }
   0x7   : > { %229 = sbr.rel (%p226_p3) target bundleno = 629 (0x275), region = 32  ;;  %s2075_s6 = smov (!%p226_p3), 12   ;;  %vm989_vm4 = vcmask (!%p226_p3), 31744   ;;  %vm1023_vm5 = vcmask (!%p226_p3), 97280   ;;  %vm1040_vm6 = vcmask (!%p226_p3), 130048   ;;  %vm1057_vm7 = vcmask (!%p226_p3), 162816  }
   0x8   : > { %s2076_s7 = smov (!%p226_p3), 24   ;;  %s2077_s8 = smov (!%p226_p3), 4   ;;  %vm1074_vm8 = vcmask (!%p226_p3), 195584   ;;  %vm1091_vm9 = vcmask (!%p226_p3), 228352   ;;  %vm1108_vm10 = vcmask (!%p226_p3), 261120   ;;  %vm1153_vm11 = vcmask (!%p226_p3), 293888  }
   0x9   : > { %s2078_s9 = smov (!%p226_p3), 8   ;;  %s2079_s12 = smov (!%p226_p3), 16   ;;  %vm1410_vm12 = vcmask (!%p226_p3), 1040384   ;;  %vm1412_vm13 = vcmask (!%p226_p3), 58368  }
   0xe   : > { %s2877_s15 = smov (!%p291_p4, %s2063_s15), 1 }
   0xf   : > { %s1639_s19 = smul.u32 320, %s2877_s15  ;;  %s1597_s28 = sshll.u32 %s2877_s15, 7 }
  0x10   : > { %s2245_s5 = scalar_lea.vmem %s2870_s3, %s1597_s28 }
  0x11   : > { %s2132_s22 = scalar_lea.vmem %s2867_s0, %s1639_s19  ;;  %s1596_s23 = sadd.s32 256, %s1639_s19 }
  0x12   : > { %v348_v0 = vld [vmem:[%s2132_s22 + $0x40] sm:$0xff]  ;;  %v349_v1 = vld [vmem:[%s2132_s22 + $0x48] sm:$0xff]  ;;  %v350_v2 = vld [vmem:[%s2132_s22 + $0x50] sm:$0xff]  ;;  %s317_s27 = scalar_lea.vmem %s2868_s1, %s1596_s23  ;;  %s2080_s19 = smov 20  }
  0x13   : > { %v351_v3 = vld [vmem:[%s2132_s22 + $0x58] sm:$0xff]  ;;  %v2138_v4 = vmax.f32 %v348_v0, %v350_v2  ;;  %v340_v5 = vld [vmem:[%s2132_s22] sm:$0xff]  ;;  %v341_v6 = vld [vmem:[%s2132_s22 + $0x8] sm:$0xff]  ;;  %s2082_s23 = smov 32  }
  0x14   : > { %v2142_v7 = vmax.f32 %v349_v1, %v351_v3  ;;  %v342_v8 = vld [vmem:[%s2132_s22 + $0x10] sm:$0xff]  ;;  %v343_v9 = vld [vmem:[%s2132_s22 + $0x18] sm:$0xff]  ;;  %v352_v10 = vld [vmem:[%s2132_s22 + $0x60] sm:$0xff] }
  0x15   : > { %v2147_v11 = vmax.f32 %v340_v5, %v342_v8  ;;  %v2149_v12 = vmax.f32 %v341_v6, %v343_v9  ;;  %v353_v13 = vld [vmem:[%s2132_s22 + $0x68] sm:$0xff]  ;;  %v354_v14 = vld [vmem:[%s2132_s22 + $0x70] sm:$0xff]  ;;  %v355_v15 = vld [vmem:[%s2132_s22 + $0x78] sm:$0xff] }
  0x16   : > { %v1686_v16 = vpack.i.bf16 %v2142_v7, %v2138_v4  ;;  %v2156_v17 = vmax.f32 %v352_v10, %v354_v14  ;;  %v2158_v18 = vmax.f32 %v353_v13, %v355_v15  ;;  %v344_v19 = vld [vmem:[%s2132_s22 + $0x20] sm:$0xff]  ;;  %v345_v20 = vld [vmem:[%s2132_s22 + $0x28] sm:$0xff]  ;;  %v346_v21 = vld [vmem:[%s2132_s22 + $0x30] sm:$0xff]  ;;  %v2074_v14 = vmov 0.0  }
  0x17   : > { %v1676_v22 = vpack.i.bf16 %v2149_v12, %v2147_v11  ;;  %v347_v23 = vld [vmem:[%s2132_s22 + $0x38] sm:$0xff]  ;;  %v2166_v24 = vmax.f32 %v344_v19, %v346_v21  ;;  %v360_v25 = vld [vmem:[%s2132_s22 + $0xa0] sm:$0xff]  ;;  %v361_v26 = vld [vmem:[%s2132_s22 + $0xa8] sm:$0xff]  ;;  %1305 = vst.msk [vmem:[%s2245_s5 + $0x8] sm:$0xff] %vm1006_vm0, %v2074_v14 }
  0x18   : > { %1687 = vrot.lane.b32.xlu1 %v1686_v16, %s2073_s24  ;;  %v1691_v27 = vpack.i.bf16 %v2158_v18, %v2156_v17  ;;  %v2173_v28 = vmax.f32 %v345_v20, %v347_v23  ;;  %v362_v29 = vld [vmem:[%s2132_s22 + $0xb0] sm:$0xff]  ;;  %v363_v30 = vld [vmem:[%s2132_s22 + $0xb8] sm:$0xff]  ;;  %v356_v31 = vld [vmem:[%s2132_s22 + $0x80] sm:$0xff] }
  0x19   : > { %1677 = vrot.lane.b32.xlu0 %v1676_v22, %s2073_s24  ;;  %v2179_v32 = vmax.f32 %v360_v25, %v362_v29  ;;  %v2181_v33 = vmax.f32 %v361_v26, %v363_v30  ;;  %v357_v34 = vld [vmem:[%s2132_s22 + $0x88] sm:$0xff]  ;;  %v358_v35 = vld [vmem:[%s2132_s22 + $0x90] sm:$0xff]  ;;  %v359_v36 = vld [vmem:[%s2132_s22 + $0x98] sm:$0xff] }
  0x1a   : > { %v1681_v37 = vpack.i.bf16 %v2173_v28, %v2166_v24  ;;  %v2191_v38 = vmax.f32 %v356_v31, %v358_v35  ;;  %v2193_v39 = vmax.f32 %v357_v34, %v359_v36  ;;  %v364_v40 = vld [vmem:[%s2132_s22 + $0xc0] sm:$0xff]  ;;  %v365_v41 = vld [vmem:[%s2132_s22 + $0xc8] sm:$0xff]  ;;  %v366_v42 = vld [vmem:[%s2132_s22 + $0xd0] sm:$0xff]  ;;  %1307 = vst.msk [vmem:[%s2245_s5 + $0x18] sm:$0xff] %vm1006_vm0, %v2074_v14 }
  0x1b   : > { %v367_v43 = vld [vmem:[%s2132_s22 + $0xd8] sm:$0xff]  ;;  %v368_v44 = vld [vmem:[%s2132_s22 + $0xe0] sm:$0xff]  ;;  %v369_v45 = vld [vmem:[%s2132_s22 + $0xe8] sm:$0xff]  ;;  %v1701_v46 = vpack.i.bf16 %v2181_v33, %v2179_v32  ;;  %v2204_v47 = vmax.f32 %v364_v40, %v366_v42  ;;  %1309 = vst.msk [vmem:[%s2245_s5 + $0x28] sm:$0xff] %vm1006_vm0, %v2074_v14 }
  0x1c   : > { %1692 = vrot.lane.b32.xlu1 %v1691_v27, %s2073_s24  ;;  %v370_v48 = vld [vmem:[%s2132_s22 + $0xf0] sm:$0xff]  ;;  %v371_v49 = vld [vmem:[%s2132_s22 + $0xf8] sm:$0xff]  ;;  %v468_v50 = vld [vmem:[%s317_s27] sm:$0xff]  ;;  %v1696_v51 = vpack.i.bf16 %v2193_v39, %v2191_v38  ;;  %v2211_v52 = vmax.f32 %v365_v41, %v367_v43  ;;  %s2081_s22 = smov 28  }
  0x1d   : > { %1682 = vrot.lane.b32.xlu0 %v1681_v37, %s2073_s24  ;;  %v2213_v53 = vmax.f32 %v368_v44, %v370_v48  ;;  %v2215_v54 = vmax.f32 %v369_v45, %v371_v49  ;;  %v469_v55 = vld [vmem:[%s317_s27 + $0x8] sm:$0xff]  ;;  %v470_v56 = vld [vmem:[%s317_s27 + $0x10] sm:$0xff]  ;;  %v471_v57 = vld [vmem:[%s317_s27 + $0x18] sm:$0xff] }
  0x1e   : > { %v472_v58 = vld [vmem:[%s317_s27 + $0x20] sm:$0xff]  ;;  %v473_v59 = vld [vmem:[%s317_s27 + $0x28] sm:$0xff]  ;;  %v474_v60 = vld [vmem:[%s317_s27 + $0x30] sm:$0xff]  ;;  %v1706_v1 = vpack.i.bf16 %v2211_v52, %v2204_v47  ;;  %v2227_v2 = vmax.f32 %v468_v50, %v470_v56  ;;  %v2229_v3 = vmax.f32 %v469_v55, %v471_v57  ;;  %1311 = vst.msk [vmem:[%s2245_s5 + $0x38] sm:$0xff] %vm1006_vm0, %v2074_v14 }
  0x1f   : > { %v475_v61 = vld [vmem:[%s317_s27 + $0x38] sm:$0xff]  ;;  %v1711_v62 = vpack.i.bf16 %v2215_v54, %v2213_v53  ;;  %v2220_v63 = vmax.f32 %v472_v58, %v474_v60  ;;  %1313 = vst.msk [vmem:[%s2245_s5 + $0x48] sm:$0xff] %vm1006_vm0, %v2074_v14  ;;  %1315 = vst.msk [vmem:[%s2245_s5 + $0x58] sm:$0xff] %vm1006_vm0, %v2074_v14 }
  0x20   : > { %1702 = vrot.lane.b32.xlu1 %v1701_v46, %s2073_s24  ;;  %v2222_v0 = vmax.f32 %v473_v59, %v475_v61  ;;  %v1716_v6 = vpack.i.bf16 %v2229_v3, %v2227_v2  ;;  %1317 = vst.msk [vmem:[%s2245_s5 + $0x68] sm:$0xff] %vm1006_vm0, %v2074_v14  ;;  %1319 = vst.msk [vmem:[%s2245_s5 + $0x78] sm:$0xff] %vm1006_vm0, %v2074_v14 }
  0x21   : > { %1697 = vrot.lane.b32.xlu0 %v1696_v51, %s2073_s24 }
  0x22   : > { %v1721_v5 = vpack.i.bf16 %v2222_v0, %v2220_v63 }
  0x24   : > { %1712 = vrot.lane.b32.xlu1 %v1711_v62, %s2073_s24 }
  0x25   : > { %1707 = vrot.lane.b32.xlu0 %v1706_v1, %s2073_s24 }
  0x28   : > { %1722 = vrot.lane.b32.xlu1 %v1721_v5, %s2073_s24 }
  0x29   : > { %1717 = vrot.lane.b32.xlu0 %v1716_v6, %s2073_s24  ;;  %s1581_s24 = sshll.u32 %s2877_s15, 1 }
  0x2a   : > { %s338_s27 = scalar_lea.vmem %s2871_s4, %s1581_s24 }
  0x8a   : > { %v1688_v8 = vpop.permute.xlu1 %1687 }
  0x8b   : > { %v1690_v9 = vunpack.i.h.bf16 %v1688_v8  ;;  %v1689_v10 = vunpack.i.l.bf16 %v1688_v8  ;;  %v2240_v13 = vpop.permute.xlu0 %1677 }
  0x8c   : > { %v1680_v56 = vunpack.i.h.bf16 %v2240_v13  ;;  %v1679_v57 = vunpack.i.l.bf16 %v2240_v13 }
  0x8d   : > { %v2272_v15 = vmax.f32 %v2142_v7, %v1690_v9  ;;  %v2275_v16 = vmax.f32 %v2138_v4, %v1689_v10  ;;  %v2364_v10 = vrot.slane %v2074_v14, 1 }
  0x8e   : > { %v1693_v19 = vpop.permute.xlu1 %1692  ;;  %v2348_v61 = vmax.f32 %v2147_v11, %v1679_v57 }
  0x8f   : > { %v1695_v20 = vunpack.i.h.bf16 %v1693_v19  ;;  %v1694_v21 = vunpack.i.l.bf16 %v1693_v19  ;;  %v1683_v22 = vpop.permute.xlu0 %1682  ;;  %v1731_v23 = vpack.i.bf16 %v2272_v15, %v2275_v16  ;;  %v525_v62 = vrot.slane %v2275_v16, 1 }
  0x90   : > { %v1685_v27 = vunpack.i.h.bf16 %v1683_v22  ;;  %v1684_v29 = vunpack.i.l.bf16 %v1683_v22  ;;  %v607_v1 = vrot.slane %v2275_v16, 2  ;;  %v518_v13 = vrot.slane %v2348_v61, 1 }
  0x91   : > { %v2280_v25 = vmax.f32 %v2158_v18, %v1695_v20  ;;  %v2283_v26 = vmax.f32 %v2156_v17, %v1694_v21  ;;  %1732 = vrot.lane.b32.xlu1 %v1731_v23, %s2075_s6 }
  0x92   : > { %v1703_v4 = vpop.permute.xlu1 %1702  ;;  %v2287_v7 = vmax.f32 %v2173_v28, %v1685_v27  ;;  %v2290_v30 = vmax.f32 %v2166_v24, %v1684_v29  ;;  %v527_v29 = vrot.slane %v2272_v15, 1 }
  0x93   : > { %v1705_v31 = vunpack.i.h.bf16 %v1703_v4  ;;  %v1704_v34 = vunpack.i.l.bf16 %v1703_v4  ;;  %v1698_v35 = vpop.permute.xlu0 %1697  ;;  %v1741_v18 = vpack.i.bf16 %v2280_v25, %v2283_v26  ;;  %v529_v4 = vrot.slane %v2283_v26, 1 }
  0x94   : > { %v1726_v37 = vpack.i.bf16 %v2287_v7, %v2290_v30  ;;  %v1700_v42 = vunpack.i.h.bf16 %v1698_v35  ;;  %v1699_v45 = vunpack.i.l.bf16 %v1698_v35  ;;  %v603_v5 = vrot.slane %v2290_v30, 2 }
  0x95   : > { %v2295_v17 = vmax.f32 %v2181_v33, %v1705_v31  ;;  %v2298_v36 = vmax.f32 %v2179_v32, %v1704_v34  ;;  %1742 = vrot.lane.b32.xlu1 %v1741_v18, %s2076_s7  ;;  %v605_v11 = vrot.slane %v2287_v7, 2  ;;  %v609_v31 = vrot.slane %v2272_v15, 2 }
  0x96   : > { %1727 = vrot.lane.b32.xlu0 %v1726_v37, %s2075_s6  ;;  %v1713_v33 = vpop.permute.xlu1 %1712  ;;  %v2317_v50 = vmax.f32 %v2193_v39, %v1700_v42  ;;  %v2324_v55 = vmax.f32 %v2191_v38, %v1699_v45  ;;  %v600_v34 = vrot.slane %v2348_v61, 2 }
  0x97   : > { %v1708_v24 = vpop.permute.xlu0 %1707  ;;  %v1751_v28 = vpack.i.bf16 %v2295_v17, %v2298_v36  ;;  %v1715_v44 = vunpack.i.h.bf16 %v1713_v33  ;;  %v1714_v48 = vunpack.i.l.bf16 %v1713_v33  ;;  %v608_v27 = vsel %vm599_vm2, %v605_v11, %v607_v1 }
  0x98   : > { %v1710_v40 = vunpack.i.h.bf16 %v1708_v24  ;;  %v1709_v41 = vunpack.i.l.bf16 %v1708_v24  ;;  %v1756_v39 = vpack.i.bf16 %v2317_v50, %v2324_v55  ;;  %v610_v45 = vsel %vm599_vm2, %v607_v1, %v609_v31 }
  0x99   : > { %1752 = vrot.lane.b32.xlu1 %v1751_v28, %s2075_s6  ;;  %v2320_v51 = vmax.f32 %v2215_v54, %v1715_v44  ;;  %v2330_v58 = vmax.f32 %v2213_v53, %v1714_v48  ;;  %v2345_v53 = vmax.f32 %v2149_v12, %v1680_v56  ;;  %v530_v44 = vsel %vm517_vm1, %v527_v29, %v529_v4 }
  0x9a   : > { %v2307_v43 = vmax.f32 %v2211_v52, %v1710_v40  ;;  %v2310_v32 = vmax.f32 %v2204_v47, %v1709_v41  ;;  %1737 = vrot.lane.b32.xlu0 %v1731_v23, %s2076_s7  ;;  %v1723_v60 = vpop.permute.xlu1 %1722  ;;  %v606_v23 = vsel %vm599_vm2, %v603_v5, %v605_v11 }
  0x9b   : > { %v1718_v46 = vpop.permute.xlu0 %1717  ;;  %v1781_v59 = vpack.i.bf16 %v2320_v51, %v2330_v58  ;;  %v1725_v6 = vunpack.i.h.bf16 %v1723_v60  ;;  %v1724_v8 = vunpack.i.l.bf16 %v1723_v60  ;;  %v519_v9 = vrot.slane %v2345_v53, 1 }
  0x9c   : > { %v1761_v49 = vpack.i.bf16 %v2307_v43, %v2310_v32  ;;  %v1720_v47 = vunpack.i.h.bf16 %v1718_v46  ;;  %v1719_v52 = vunpack.i.l.bf16 %v1718_v46  ;;  %v2389_v37 = vpack.i.bf16 %v608_v27, %v606_v23 }
  0x9d   : > { %v2370_v21 = vmax.f32 %v2222_v0, %v1725_v6  ;;  %v2373_v22 = vmax.f32 %v2220_v63, %v1724_v8  ;;  %v611_v0 = vrot.slane %v2283_v26, 2  ;;  %v601_v63 = vrot.slane %v2345_v53, 2 }
  0x9e   : > { %1762 = vrot.lane.b32.xlu1 %v1761_v49, %s2075_s6  ;;  %1747 = vrot.lane.b32.xlu0 %v1741_v18, %s2075_s6  ;;  %v2336_v54 = vmax.f32 %v2229_v3, %v1720_v47  ;;  %v2339_v38 = vmax.f32 %v2227_v2, %v1719_v52  ;;  %v521_v3 = vrot.slane %v2290_v30, 1  ;;  %v523_v2 = vrot.slane %v2287_v7, 1 }
  0x9f   : > { %v939_v18 = vrot.slane %v2074_v14, 2  ;;  %v520_v24 = vsel %vm517_vm1, %v518_v13, %v519_v9  ;;  %v885_v40 = vrot.slane %v2370_v21, 1  ;;  %v937_v41 = vrot.slane %v2370_v21, 2 }
  0xa0   : > { %v2358_v12 = vpack.i.bf16 %v2336_v54, %v2339_v38  ;;  %v524_v19 = vsel %vm517_vm1, %v521_v3, %v523_v2  ;;  %v526_v20 = vsel %vm517_vm1, %v523_v2, %v525_v62  ;;  %v733_v42 = vrot.slane %v2373_v22, 1 }
  0xa1   : > { %v2386_v35 = vpack.i.bf16 %v526_v20, %v524_v19  ;;  %v604_v33 = vsel %vm599_vm2, %v601_v63, %v603_v5  ;;  %v528_v14 = vsel %vm517_vm1, %v525_v62, %v527_v29  ;;  %v612_v46 = vsel %vm599_vm2, %v609_v31, %v611_v0  ;;  %v2046_v19 = vld [vmem:[%s2869_s2] sm:$0xff]  }
  0xa2   : > { %1772 = vrot.lane.b32.xlu1 %v1761_v49, %s2076_s7  ;;  %1757 = vrot.lane.b32.xlu0 %v1756_v39, %s2075_s6  ;;  %v785_v48 = vrot.slane %v2373_v22, 2  ;;  %v602_v47 = vsel %vm599_vm2, %v600_v34, %v601_v63  ;;  %v531_v52 = vrot.slane %v2280_v25, 1  ;;  %v545_v57 = vrot.slane %v2330_v58, 1  ;;  %v2047_v34 = vld [vmem:[%s2869_s2 + $0x8] sm:$0xff]  }
  0xa3   : > { %v1806_v56 = vpack.i.bf16 %v604_v33, %v602_v47  ;;  %v2415_v60 = vpack.i.bf16 %v612_v46, %v610_v45  ;;  %v533_v62 = vrot.slane %v2324_v55, 1  ;;  %v549_v1 = vrot.slane %v2339_v38, 1  ;;  %1609 = vmatprep.subr.bf16.mxu0 %v2046_v19  ;;  %1631 = vmatprep.subr.bf16.mxu1 %v2046_v19 }
  0xa4   : > { %v629_v5 = vrot.slane %v2320_v51, 2  ;;  %v631_v6 = vrot.slane %v2339_v38, 2  ;;  %v532_v8 = vsel %vm517_vm1, %v529_v4, %v531_v52  ;;  %v783_v13 = vrot.slane %v2336_v54, 2  ;;  %1610 = vmatpush3.bf16.msra.mxu0 %v2046_v19  ;;  %1634 = vmatpush3.bf16.msra.mxu1 %v2046_v19 }
  0xa5   : > { %v2459_v33 = vsel %vm517_vm1, %v733_v42, %v885_v40  ;;  %v2469_v45 = vsel %vm599_vm2, %v937_v41, %v939_v18  ;;  %1611 = vmatprep.subr.bf16.mxu0 %v2047_v34  ;;  %v2048_v18 = vld [vmem:[%s2869_s2 + $0x10] ss:$0 sps:$4 sm:$0x33]   ;;  %1632 = vmatprep.subr.bf16.mxu1 %v2047_v34  ;;  %v621_v19 = vrot.slane %v2295_v17, 2 }
  0xa6   : > { %1782 = vrot.lane.b32.xlu1 %v1781_v59, %s2076_s7  ;;  %1767 = vrot.lane.b32.xlu0 %v1756_v39, %s2076_s7  ;;  %v547_v39 = vrot.slane %v2320_v51, 1  ;;  %v632_v38 = vsel %vm599_vm2, %v629_v5, %v631_v6  ;;  %v784_v31 = vsel %vm599_vm2, %v631_v6, %v783_v13  ;;  %v786_v63 = vsel %vm599_vm2, %v783_v13, %v785_v48 }
  0xa8   : > { %v548_v2 = vsel %vm517_vm1, %v545_v57, %v547_v39  ;;  %v550_v11 = vsel %vm517_vm1, %v547_v39, %v549_v1  ;;  %1612 = vmatpush3.bf16.msra.mxu0 %v2047_v34  ;;  %v535_v39 = vrot.slane %v2317_v50, 1  ;;  %1635 = vmatpush3.bf16.msra.mxu1 %v2047_v34 }
  0xa9   : > { %v2433_v20 = vpack.i.bf16 %v550_v11, %v548_v2  ;;  %1637 = vmatprep.subr.msk.bf16.mxu0 %vm1178_vm3, %v2048_v18  ;;  %1638 = vmatprep.subr.msk.bf16.mxu1 %vm1178_vm3, %v2048_v18 }
  0xaa   : > { %1792 = vrot.lane.b32.xlu1 %v2358_v12, %s2075_s6  ;;  %1777 = vrot.lane.b32.xlu0 %v1751_v28, %s2076_s7  ;;  %v522_v28 = vsel %vm517_vm1, %v519_v9, %v521_v3  ;;  %v627_v3 = vrot.slane %v2330_v58, 2  ;;  %v731_v9 = vrot.slane %v2336_v54, 1 }
  0xab   : > { %v1796_v49 = vpack.i.bf16 %v522_v28, %v520_v24  ;;  %v534_v24 = vsel %vm517_vm1, %v531_v52, %v533_v62  ;;  %v2456_v28 = vpack.i.bf16 %v786_v63, %v784_v31  ;;  %v543_v31 = vrot.slane %v2307_v43, 1 }
  0xac   : > { %v630_v23 = vsel %vm599_vm2, %v627_v3, %v629_v5  ;;  %v732_v54 = vsel %vm517_vm1, %v549_v1, %v731_v9  ;;  %v734_v29 = vsel %vm517_vm1, %v731_v9, %v733_v42  ;;  %v536_v5 = vsel %vm517_vm1, %v533_v62, %v535_v39 }
  0xad   : > { %v2441_v27 = vpack.i.bf16 %v632_v38, %v630_v23  ;;  %v2446_v4 = vpack.i.bf16 %v734_v29, %v732_v54  ;;  %v623_v62 = vrot.slane %v2310_v32, 2  ;;  %v546_v34 = vsel %vm517_vm1, %v543_v31, %v545_v57 }
  0xae   : > { %1802 = vrot.lane.b32.xlu1 %v2386_v35, %s2077_s8  ;;  %1787 = vrot.lane.b32.xlu0 %v1781_v59, %s2075_s6  ;;  %v2413_v59 = vpack.i.bf16 %v530_v44, %v528_v14  ;;  %v2463_v14 = vsel %vm517_vm1, %v885_v40, %v2364_v10  ;;  %v2466_v44 = vsel %vm599_vm2, %v785_v48, %v937_v41  ;;  %v613_v40 = vrot.slane %v2280_v25, 2 }
  0xaf   : > { %v2031_v42 = vpack.i.bf16 %v2463_v14, %v2459_v33  ;;  %v2041_v46 = vpack.i.bf16 %v2469_v45, %v2466_v44  ;;  %v1841_v10 = vpack.i.bf16 %v534_v24, %v532_v8  ;;  %v615_v41 = vrot.slane %v2324_v55, 2 }
  0xb0   : > { %v537_v48 = vrot.slane %v2298_v36, 1  ;;  %v614_v47 = vsel %vm599_vm2, %v611_v0, %v613_v40  ;;  %v617_v0 = vrot.slane %v2317_v50, 2  ;;  %v619_v8 = vrot.slane %v2298_v36, 2 }
  0xb1   : > { %v616_v52 = vsel %vm599_vm2, %v613_v40, %v615_v41  ;;  %v624_v54 = vsel %vm599_vm2, %v621_v19, %v623_v62 }
  0xb2   : > { %1812 = vrot.lane.b32.xlu1 %v2389_v37, %s2078_s9  ;;  %1797 = vrot.lane.b32.xlu0 %v1796_v49, %s2077_s8  ;;  %v539_v49 = vrot.slane %v2295_v17, 1  ;;  %v538_v6 = vsel %vm517_vm1, %v535_v39, %v537_v48  ;;  %v618_v9 = vsel %vm599_vm2, %v615_v41, %v617_v0  ;;  %v620_v13 = vsel %vm599_vm2, %v617_v0, %v619_v8 }
  0xb3   : > { %v1856_v11 = vpack.i.bf16 %v538_v6, %v536_v5  ;;  %v1881_v23 = vpack.i.bf16 %v620_v13, %v618_v9  ;;  %v622_v38 = vsel %vm599_vm2, %v619_v8, %v621_v19 }
  0xb4   : > { %v540_v1 = vsel %vm517_vm1, %v537_v48, %v539_v49  ;;  %v1891_v29 = vpack.i.bf16 %v624_v54, %v622_v38 }
  0xb6   : > { %1822 = vrot.lane.b32.xlu1 %v2413_v59, %s2079_s12  ;;  %1807 = vrot.lane.b32.xlu0 %v1806_v56, %s2078_s9  ;;  %v541_v56 = vrot.slane %v2310_v32, 1 }
  0xb8   : > { %v542_v2 = vsel %vm517_vm1, %v539_v49, %v541_v56  ;;  %v544_v63 = vsel %vm517_vm1, %v541_v56, %v543_v31 }
  0xb9   : > { %v1911_v24 = vpack.i.bf16 %v546_v34, %v544_v63 }
  0xba   : > { %1832 = vrot.lane.b32.xlu1 %v2415_v60, %s2080_s19  ;;  %1817 = vrot.lane.b32.xlu0 %v2386_v35, %s2079_s12  ;;  %v1180_v35 = vsel %vm1178_vm3, %v2048_v18, 0  ;;  %v625_v18 = vrot.slane %v2307_v43, 2 }
  0xbb   : > { %1614 = vmatpush3.bf16.msra.mxu0 %v1180_v35  ;;  %1636 = vmatpush3.bf16.msra.mxu1 %v1180_v35 }
  0xbc   : > { %v626_v40 = vsel %vm599_vm2, %v623_v62, %v625_v18 }
  0xbe   : > { %1842 = vrot.lane.b32.xlu1 %v1841_v10, %s2081_s22  ;;  %1827 = vrot.lane.b32.xlu0 %v2389_v37, %s2080_s19  ;;  %v1861_v37 = vpack.i.bf16 %v616_v52, %v614_v47 }
  0xc2   : > { %1852 = vrot.lane.b32.xlu1 %v2413_v59, %s2077_s8  ;;  %1837 = vrot.lane.b32.xlu0 %v2413_v59, %s2081_s22  ;;  %v1871_v59 = vpack.i.bf16 %v542_v2, %v540_v1 }
  0xc6   : > { %1862 = vrot.lane.b32.xlu1 %v1861_v37, %s2082_s23  ;;  %1847 = vrot.lane.b32.xlu0 %v2415_v60, %s2082_s23 }
  0xca   : > { %1872 = vrot.lane.b32.xlu1 %v1871_v59, %s2077_s8  ;;  %1857 = vrot.lane.b32.xlu0 %v1856_v11, %s2077_s8 }
  0xce   : > { %1882 = vrot.lane.b32.xlu1 %v1881_v23, %s2078_s9  ;;  %1867 = vrot.lane.b32.xlu0 %v1841_v10, %s2077_s8 }
  0xd2   : > { %1892 = vrot.lane.b32.xlu1 %v1891_v29, %s2078_s9  ;;  %1877 = vrot.lane.b32.xlu0 %v2415_v60, %s2078_s9  ;;  %v628_v60 = vsel %vm599_vm2, %v625_v18, %v627_v3 }
  0xd3   : > { %v1931_v57 = vpack.i.bf16 %v628_v60, %v626_v40 }
  0xd6   : > { %1902 = vrot.lane.b32.xlu1 %v1871_v59, %s2079_s12  ;;  %1887 = vrot.lane.b32.xlu0 %v1861_v37, %s2078_s9 }
  0xda   : > { %1912 = vrot.lane.b32.xlu1 %v1911_v24, %s2079_s12  ;;  %1897 = vrot.lane.b32.xlu0 %v1841_v10, %s2079_s12  ;;  %v2021_v10 = vpack.i.bf16 %v2370_v21, %v2373_v22 }
  0xde   : > { %1922 = vrot.lane.b32.xlu1 %v1891_v29, %s2080_s19  ;;  %1907 = vrot.lane.b32.xlu0 %v1856_v11, %s2079_s12 }
  0xe2   : > { %1932 = vrot.lane.b32.xlu1 %v1931_v57, %s2080_s19  ;;  %1917 = vrot.lane.b32.xlu0 %v1861_v37, %s2080_s19 }
  0xe6   : > { %1942 = vrot.lane.b32.xlu1 %v1911_v24, %s2081_s22  ;;  %1927 = vrot.lane.b32.xlu0 %v1881_v23, %s2080_s19 }
  0xea   : > { %1957 = vrot.lane.b32.xlu1 %v1931_v57, %s2082_s23  ;;  %1937 = vrot.lane.b32.xlu0 %v1856_v11, %s2081_s22 }
  0xee   : > { %1967 = vrot.lane.b32.xlu1 %v1891_v29, %s2082_s23  ;;  %1947 = vrot.lane.b32.xlu0 %v1871_v59, %s2081_s22 }
  0xf2   : > { %1977 = vrot.lane.b32.xlu1 %v2433_v20, %s2081_s22  ;;  %1952 = vrot.lane.b32.xlu0 %v1881_v23, %s2082_s23 }
  0xf6   : > { %1987 = vrot.lane.b32.xlu1 %v2433_v20, %s2077_s8  ;;  %1962 = vrot.lane.b32.xlu0 %v1911_v24, %s2077_s8 }
  0xfa   : > { %1992 = vrot.lane.b32.xlu1 %v2441_v27, %s2078_s9  ;;  %1972 = vrot.lane.b32.xlu0 %v1931_v57, %s2078_s9 }
  0xfe   : > { %2002 = vrot.lane.b32.xlu1 %v2446_v4, %s2079_s12  ;;  %1982 = vrot.lane.b32.xlu0 %v2441_v27, %s2082_s23 }
 0x102   : > { %2012 = vrot.lane.b32.xlu1 %v2456_v28, %s2080_s19  ;;  %1997 = vrot.lane.b32.xlu0 %v2433_v20, %s2079_s12 }
 0x103   : > { %v2567_v3 = vpop.permute.xlu1 %1732 }
 0x104   : > { %v1735_v9 = vunpack.i.h.bf16 %v2567_v3  ;;  %v1734_v13 = vunpack.i.l.bf16 %v2567_v3 }
 0x106   : > { %2022 = vrot.lane.b32.xlu1 %v2021_v10, %s2076_s7  ;;  %2007 = vrot.lane.b32.xlu0 %v2441_v27, %s2080_s19 }
 0x107   : > { %v2574_v41 = vpop.permute.xlu1 %1742 }
 0x108   : > { %v2576_v35 = vpop.permute.xlu0 %1727 }
 0x109   : > { %v1730_v18 = vunpack.i.h.bf16 %v2576_v35  ;;  %v1729_v40 = vunpack.i.l.bf16 %v2576_v35 }
 0x10a   : > { %2032 = vrot.lane.b32.xlu1 %v2031_v42, %s2081_s22  ;;  %2017 = vrot.lane.b32.xlu0 %v2358_v12, %s2076_s7 }
 0x10b   : > { %v2584_v20 = vpop.permute.xlu1 %1752 }
 0x10c   : > { %v2586_v21 = vpop.permute.xlu0 %1737 }
 0x10e   : > { %2042 = vrot.lane.b32.xlu1 %v2041_v46, %s2082_s23  ;;  %2027 = vrot.lane.b32.xlu0 %v2446_v4, %s2081_s22 }
 0x110   : > { %v2594_v22 = vpop.permute.xlu1 %1762  ;;  %v2596_v27 = vpop.permute.xlu0 %1747 }
 0x112   : > { %2037 = vrot.lane.b32.xlu0 %v2456_v28, %s2082_s23 }
 0x114   : > { %v2600_v12 = vpop.permute.xlu1 %1772  ;;  %v2602_v33 = vpop.permute.xlu0 %1757 }
 0x118   : > { %v2604_v14 = vpop.permute.xlu1 %1782  ;;  %v2606_v42 = vpop.permute.xlu0 %1767 }
 0x11c   : > { %v2608_v44 = vpop.permute.xlu1 %1792  ;;  %v2610_v45 = vpop.permute.xlu0 %1777 }
 0x120   : > { %v1803_v4 = vpop.permute.xlu1 %1802  ;;  %v2612_v46 = vpop.permute.xlu0 %1787 }
 0x121   : > { %v1805_v28 = vunpack.i.h.bf16 %v1803_v4  ;;  %v1804_v56 = vunpack.i.l.bf16 %v1803_v4 }
 0x123   : > { %v993_v59 = vsel %vm989_vm4, %v2287_v7, %v1805_v28  ;;  %v992_v11 = vsel %vm989_vm4, %v2290_v30, %v1804_v56 }
 0x124   : > { %v1813_v48 = vpop.permute.xlu1 %1812  ;;  %v1798_v49 = vpop.permute.xlu0 %1797 }
 0x125   : > { %v1815_v39 = vunpack.i.h.bf16 %v1813_v48  ;;  %v1814_v37 = vunpack.i.l.bf16 %v1813_v48  ;;  %v1800_v1 = vunpack.i.h.bf16 %v1798_v49  ;;  %v1799_v0 = vunpack.i.l.bf16 %v1798_v49 }
 0x127   : > { %v1009_v19 = vsel %vm1006_vm0, %v992_v11, %v1814_v37  ;;  %v1010_v62 = vsel %vm1006_vm0, %v993_v59, %v1815_v39  ;;  %v991_v23 = vsel %vm989_vm4, %v2345_v53, %v1800_v1  ;;  %v990_v38 = vsel %vm989_vm4, %v2348_v61, %v1799_v0 }
 0x128   : > { %v1823_v47 = vpop.permute.xlu1 %1822  ;;  %v1808_v52 = vpop.permute.xlu0 %1807  ;;  %v1026_v57 = vsel %vm1023_vm5, %v1009_v19, %v1734_v13  ;;  %v1027_v61 = vsel %vm1023_vm5, %v1010_v62, %v1735_v9  ;;  %v1745_v1 = vunpack.i.h.bf16 %v2574_v41  ;;  %v1744_v0 = vunpack.i.l.bf16 %v2574_v41 }
 0x129   : > { %v1810_v5 = vunpack.i.h.bf16 %v1808_v52  ;;  %v1809_v6 = vunpack.i.l.bf16 %v1808_v52  ;;  %v1825_v7 = vunpack.i.h.bf16 %v1823_v47  ;;  %v1824_v54 = vunpack.i.l.bf16 %v1823_v47 }
 0x12a   : > { %v1740_v9 = vunpack.i.h.bf16 %v2586_v21  ;;  %v1739_v13 = vunpack.i.l.bf16 %v2586_v21 }
 0x12b   : > { %v1007_v30 = vsel %vm1006_vm0, %v990_v38, %v1809_v6  ;;  %v1008_v31 = vsel %vm1006_vm0, %v991_v23, %v1810_v5  ;;  %v1043_v4 = vsel %vm1040_vm6, %v1026_v57, %v1824_v54  ;;  %v1044_v48 = vsel %vm1040_vm6, %v1027_v61, %v1825_v7 }
 0x12c   : > { %v1833_v2 = vpop.permute.xlu1 %1832  ;;  %v1818_v8 = vpop.permute.xlu0 %1817  ;;  %v1024_v49 = vsel %vm1023_vm5, %v1007_v30, %v1729_v40  ;;  %v1025_v47 = vsel %vm1023_vm5, %v1008_v31, %v1730_v18 }
 0x12d   : > { %v1835_v63 = vunpack.i.h.bf16 %v1833_v2  ;;  %v1834_v34 = vunpack.i.l.bf16 %v1833_v2  ;;  %v1820_v60 = vunpack.i.h.bf16 %v1818_v8  ;;  %v1819_v53 = vunpack.i.l.bf16 %v1818_v8 }
 0x12f   : > { %v1060_v35 = vsel %vm1057_vm7, %v1043_v4, %v1834_v34  ;;  %v1061_v28 = vsel %vm1057_vm7, %v1044_v48, %v1835_v63  ;;  %v1041_v2 = vsel %vm1040_vm6, %v1024_v49, %v1819_v53  ;;  %v1042_v5 = vsel %vm1040_vm6, %v1025_v47, %v1820_v60 }
 0x130   : > { %v1843_v29 = vpop.permute.xlu1 %1842  ;;  %v1828_v24 = vpop.permute.xlu0 %1827  ;;  %v1077_v19 = vsel %vm1074_vm8, %v1060_v35, %v1744_v0  ;;  %v1078_v62 = vsel %vm1074_vm8, %v1061_v28, %v1745_v1  ;;  %v1755_v49 = vunpack.i.h.bf16 %v2584_v20  ;;  %v1754_v47 = vunpack.i.l.bf16 %v2584_v20 }
 0x131   : > { %v1830_v3 = vunpack.i.h.bf16 %v1828_v24  ;;  %v1829_v10 = vunpack.i.l.bf16 %v1828_v24  ;;  %v1845_v56 = vunpack.i.h.bf16 %v1843_v29  ;;  %v1844_v39 = vunpack.i.l.bf16 %v1843_v29 }
 0x132   : > { %v1765_v28 = vunpack.i.h.bf16 %v2594_v22  ;;  %v1775_v0 = vunpack.i.h.bf16 %v2600_v12  ;;  %v1785_v20 = vunpack.i.h.bf16 %v2604_v14 }
 0x133   : > { %v1058_v6 = vsel %vm1057_vm7, %v1041_v2, %v1829_v10  ;;  %v1059_v8 = vsel %vm1057_vm7, %v1042_v5, %v1830_v3  ;;  %v1094_v41 = vsel %vm1091_vm9, %v1077_v19, %v1844_v39  ;;  %v1095_v38 = vsel %vm1091_vm9, %v1078_v62, %v1845_v56 }
 0x134   : > { %v2636_v52 = vpop.permute.xlu1 %1852  ;;  %v1838_v37 = vpop.permute.xlu0 %1837  ;;  %v1075_v63 = vsel %vm1074_vm8, %v1058_v6, %v1739_v13  ;;  %v1076_v34 = vsel %vm1074_vm8, %v1059_v8, %v1740_v9  ;;  %v1764_v56 = vunpack.i.l.bf16 %v2594_v22  ;;  %v1750_v39 = vunpack.i.h.bf16 %v2596_v27 }
 0x135   : > { %v1840_v59 = vunpack.i.h.bf16 %v1838_v37  ;;  %v1839_v11 = vunpack.i.l.bf16 %v1838_v37  ;;  %v1749_v37 = vunpack.i.l.bf16 %v2596_v27  ;;  %v1774_v2 = vunpack.i.l.bf16 %v2600_v12 }
 0x136   : > { %v1760_v5 = vunpack.i.h.bf16 %v2602_v33  ;;  %v1759_v6 = vunpack.i.l.bf16 %v2602_v33  ;;  %v1784_v8 = vunpack.i.l.bf16 %v2604_v14 }
 0x137   : > { %v1092_v18 = vsel %vm1091_vm9, %v1075_v63, %v1839_v11  ;;  %v1093_v40 = vsel %vm1091_vm9, %v1076_v34, %v1840_v59 }
 0x138   : > { %v1863_v23 = vpop.permute.xlu1 %1862  ;;  %v1848_v29 = vpop.permute.xlu0 %1847 }
 0x139   : > { %v1865_v7 = vunpack.i.h.bf16 %v1863_v23  ;;  %v1864_v54 = vunpack.i.l.bf16 %v1863_v23  ;;  %v1850_v30 = vunpack.i.h.bf16 %v1848_v29  ;;  %v1849_v31 = vunpack.i.l.bf16 %v1848_v29 }
 0x13a   : > { %v1855_v23 = vunpack.i.h.bf16 %v2636_v52  ;;  %v1770_v29 = vunpack.i.h.bf16 %v2606_v42 }
 0x13b   : > { %v1111_v21 = vsel %vm1108_vm10, %v1094_v41, %v1864_v54  ;;  %v1112_v24 = vsel %vm1108_vm10, %v1095_v38, %v1865_v7  ;;  %v1109_v57 = vsel %vm1108_vm10, %v1092_v18, %v1849_v31  ;;  %v1110_v61 = vsel %vm1108_vm10, %v1093_v40, %v1850_v30 }
 0x13c   : > { %v1126_v60 = vpack.c.bf16 %v1112_v24, %v1111_v21  ;;  %v1873_v53 = vpop.permute.xlu1 %1872  ;;  %v1858_v3 = vpop.permute.xlu0 %1857  ;;  %v1125_v10 = vpack.c.bf16 %v1110_v61, %v1109_v57  ;;  %v1854_v41 = vunpack.i.l.bf16 %v2636_v52  ;;  %v1769_v30 = vunpack.i.l.bf16 %v2606_v42 }
 0x13d   : > { %v1860_v59 = vunpack.i.h.bf16 %v1858_v3  ;;  %v1859_v11 = vunpack.i.l.bf16 %v1858_v3  ;;  %v1875_v22 = vunpack.i.h.bf16 %v1873_v53  ;;  %v1874_v9 = vunpack.i.l.bf16 %v1873_v53 }
 0x13e   : > { %1615 = vmatprep.mubr.msk.bf16.mxu0 %vm1153_vm11, %v1125_v10  ;;  %v995_v61 = vsel %vm989_vm4, %v2272_v15, %v1855_v23 }
 0x13f   : > { %1616 = vmatmul.mubr.msk.bf16.vlgmr.msra.gmra.mrb[0].mxu0 %vm1153_vm11, %v1126_v60  ;;  %v999_v34 = vsel %vm989_vm4, %v2317_v50, %v1860_v59  ;;  %v998_v21 = vsel %vm989_vm4, %v2324_v55, %v1859_v11  ;;  %v1001_v52 = vsel %vm989_vm4, %v2295_v17, %v1875_v22  ;;  %v1000_v40 = vsel %vm989_vm4, %v2298_v36, %v1874_v9 }
 0x140   : > { %v1883_v4 = vpop.permute.xlu1 %1882  ;;  %v1868_v48 = vpop.permute.xlu0 %1867  ;;  %v994_v50 = vsel %vm989_vm4, %v2275_v16, %v1854_v41 }
 0x141   : > { %v1885_v13 = vunpack.i.h.bf16 %v1883_v4  ;;  %v1884_v19 = vunpack.i.l.bf16 %v1883_v4  ;;  %v1870_v31 = vunpack.i.h.bf16 %v1868_v48  ;;  %v1869_v63 = vunpack.i.l.bf16 %v1868_v48 }
 0x143   : > { %v1015_v60 = vsel %vm1006_vm0, %v998_v21, %v1884_v19  ;;  %v1016_v53 = vsel %vm1006_vm0, %v999_v34, %v1885_v13  ;;  %v997_v17 = vsel %vm989_vm4, %v2280_v25, %v1870_v31  ;;  %v996_v36 = vsel %vm989_vm4, %v2283_v26, %v1869_v63 }
 0x144   : > { %v1893_v35 = vpop.permute.xlu1 %1892  ;;  %v1878_v1 = vpop.permute.xlu0 %1877  ;;  %v1033_v16 = vsel %vm1023_vm5, %v1016_v53, %v1755_v49 }
 0x145   : > { %v1895_v38 = vunpack.i.h.bf16 %v1893_v35  ;;  %v1894_v7 = vunpack.i.l.bf16 %v1893_v35  ;;  %v1880_v24 = vunpack.i.h.bf16 %v1878_v1  ;;  %v1879_v18 = vunpack.i.l.bf16 %v1878_v1 }
 0x146   : > { %v1032_v1 = vsel %vm1023_vm5, %v1015_v60, %v1754_v47 }
 0x147   : > { %v1017_v55 = vsel %vm1006_vm0, %v1000_v40, %v1894_v7  ;;  %v1018_v3 = vsel %vm1006_vm0, %v1001_v52, %v1895_v38  ;;  %v1012_v35 = vsel %vm1006_vm0, %v995_v61, %v1880_v24  ;;  %v1011_v15 = vsel %vm1006_vm0, %v994_v50, %v1879_v18 }
 0x148   : > { %v1903_v62 = vpop.permute.xlu1 %1902  ;;  %v1888_v54 = vpop.permute.xlu0 %1887  ;;  %v1034_v22 = vsel %vm1023_vm5, %v1017_v55, %v1764_v56  ;;  %v1035_v9 = vsel %vm1023_vm5, %v1018_v3, %v1765_v28  ;;  %v1028_v49 = vsel %vm1023_vm5, %v1011_v15, %v1749_v37  ;;  %v1029_v56 = vsel %vm1023_vm5, %v1012_v35, %v1750_v39 }
 0x149   : > { %v1905_v4 = vunpack.i.h.bf16 %v1903_v62  ;;  %v1904_v48 = vunpack.i.l.bf16 %v1903_v62  ;;  %v1890_v59 = vunpack.i.h.bf16 %v1888_v54  ;;  %v1889_v11 = vunpack.i.l.bf16 %v1888_v54 }
 0x14b   : > { %v1049_v41 = vsel %vm1040_vm6, %v1032_v1, %v1904_v48  ;;  %v1050_v38 = vsel %vm1040_vm6, %v1033_v16, %v1905_v4  ;;  %v1013_v31 = vsel %vm1006_vm0, %v996_v36, %v1889_v11  ;;  %v1014_v63 = vsel %vm1006_vm0, %v997_v17, %v1890_v59 }
 0x14c   : > { %v1913_v57 = vpop.permute.xlu1 %1912  ;;  %v1898_v10 = vpop.permute.xlu0 %1897  ;;  %v1030_v36 = vsel %vm1023_vm5, %v1013_v31, %v1759_v6  ;;  %v1031_v4 = vsel %vm1023_vm5, %v1014_v63, %v1760_v5  ;;  %v1780_v16 = vunpack.i.h.bf16 %v2610_v45  ;;  %v1779_v6 = vunpack.i.l.bf16 %v2610_v45 }
 0x14d   : > { %v1915_v13 = vunpack.i.h.bf16 %v1913_v57  ;;  %v1914_v19 = vunpack.i.l.bf16 %v1913_v57  ;;  %v1900_v7 = vunpack.i.h.bf16 %v1898_v10  ;;  %v1899_v47 = vunpack.i.l.bf16 %v1898_v10 }
 0x14f   : > { %v1051_v27 = vsel %vm1040_vm6, %v1034_v22, %v1914_v19  ;;  %v1052_v39 = vsel %vm1040_vm6, %v1035_v9, %v1915_v13  ;;  %v1045_v40 = vsel %vm1040_vm6, %v1028_v49, %v1899_v47  ;;  %v1046_v60 = vsel %vm1040_vm6, %v1029_v56, %v1900_v7 }
 0x150   : > { %v1923_v25 = vpop.permute.xlu1 %1922  ;;  %v1908_v62 = vpop.permute.xlu0 %1907 }
 0x151   : > { %v1925_v26 = vunpack.i.h.bf16 %v1923_v25  ;;  %v1924_v23 = vunpack.i.l.bf16 %v1923_v25  ;;  %v1910_v61 = vunpack.i.h.bf16 %v1908_v62  ;;  %v1909_v50 = vunpack.i.l.bf16 %v1908_v62 }
 0x153   : > { %v1066_v28 = vsel %vm1057_vm7, %v1049_v41, %v1924_v23  ;;  %v1067_v54 = vsel %vm1057_vm7, %v1050_v38, %v1925_v26  ;;  %v1047_v33 = vsel %vm1040_vm6, %v1030_v36, %v1909_v50  ;;  %v1048_v5 = vsel %vm1040_vm6, %v1031_v4, %v1910_v61 }
 0x154   : > { %v1933_v34 = vpop.permute.xlu1 %1932  ;;  %v1083_v21 = vsel %vm1074_vm8, %v1066_v28, %v1774_v2  ;;  %v1084_v37 = vsel %vm1074_vm8, %v1067_v54, %v1775_v0  ;;  %v1918_v52 = vpop.permute.xlu0 %1917 }
 0x155   : > { %v1935_v24 = vunpack.i.h.bf16 %v1933_v34  ;;  %v1934_v18 = vunpack.i.l.bf16 %v1933_v34  ;;  %v1920_v53 = vunpack.i.h.bf16 %v1918_v52  ;;  %v1919_v57 = vunpack.i.l.bf16 %v1918_v52 }
 0x157   : > { %v1068_v2 = vsel %vm1057_vm7, %v1051_v27, %v1934_v18  ;;  %v1069_v12 = vsel %vm1057_vm7, %v1052_v39, %v1935_v24  ;;  %v1062_v0 = vsel %vm1057_vm7, %v1045_v40, %v1919_v57  ;;  %v1063_v55 = vsel %vm1057_vm7, %v1046_v60, %v1920_v53 }
 0x158   : > { %v1943_v3 = vpop.permute.xlu1 %1942  ;;  %v2731_v10 = vsel %vm1074_vm8, %v1068_v2, %v1784_v8  ;;  %v2736_v17 = vsel %vm1074_vm8, %v1069_v12, %v1785_v20  ;;  %v1928_v48 = vpop.permute.xlu0 %1927  ;;  %v1079_v35 = vsel %vm1074_vm8, %v1062_v0, %v1769_v30  ;;  %v1080_v14 = vsel %vm1074_vm8, %v1063_v55, %v1770_v29 }
 0x159   : > { %v1945_v8 = vunpack.i.h.bf16 %v1943_v3  ;;  %v1944_v20 = vunpack.i.l.bf16 %v1943_v3  ;;  %v1930_v15 = vunpack.i.h.bf16 %v1928_v48  ;;  %v1929_v1 = vunpack.i.l.bf16 %v1928_v48 }
 0x15b   : > { %v1064_v59 = vsel %vm1057_vm7, %v1047_v33, %v1929_v1  ;;  %v1065_v30 = vsel %vm1057_vm7, %v1048_v5, %v1930_v15  ;;  %v1100_v13 = vsel %vm1091_vm9, %v1083_v21, %v1944_v20  ;;  %v1101_v45 = vsel %vm1091_vm9, %v1084_v37, %v1945_v8 }
 0x15c   : > { %v1958_v11 = vpop.permute.xlu1 %1957  ;;  %v1938_v29 = vpop.permute.xlu0 %1937  ;;  %v1081_v9 = vsel %vm1074_vm8, %v1064_v59, %v1779_v6  ;;  %v1082_v25 = vsel %vm1074_vm8, %v1065_v30, %v1780_v16 }
 0x15d   : > { %v1960_v42 = vunpack.i.h.bf16 %v1958_v11  ;;  %v1959_v22 = vunpack.i.l.bf16 %v1958_v11  ;;  %v1940_v56 = vunpack.i.h.bf16 %v1938_v29  ;;  %v1939_v28 = vunpack.i.l.bf16 %v1938_v29 }
 0x15f   : > { %v1117_v19 = vsel %vm1108_vm10, %v1100_v13, %v1959_v22  ;;  %v1118_v26 = vsel %vm1108_vm10, %v1101_v45, %v1960_v42  ;;  %v1096_v18 = vsel %vm1091_vm9, %v1079_v35, %v1939_v28  ;;  %v1097_v52 = vsel %vm1091_vm9, %v1080_v14, %v1940_v56 }
 0x160   : > { %v1968_v23 = vpop.permute.xlu1 %1967  ;;  %v1129_v62 = vpack.c.bf16 %v1118_v26, %v1117_v19  ;;  %v1948_v7 = vpop.permute.xlu0 %1947 }
 0x161   : > { %v1970_v41 = vunpack.i.h.bf16 %v1968_v23  ;;  %v1969_v38 = vunpack.i.l.bf16 %v1968_v23  ;;  %v1950_v47 = vunpack.i.h.bf16 %v1948_v7  ;;  %v1949_v49 = vunpack.i.l.bf16 %v1948_v7 }
 0x162   : > { %1623 = vmatprep.mubr.msk.bf16.mxu1 %vm1153_vm11, %v1129_v62  ;;  %v1795_v23 = vunpack.i.h.bf16 %v2608_v44  ;;  %v1794_v62 = vunpack.i.l.bf16 %v2608_v44 }
 0x163   : > { %v1098_v54 = vsel %vm1091_vm9, %v1081_v9, %v1949_v49  ;;  %v1099_v31 = vsel %vm1091_vm9, %v1082_v25, %v1950_v47 }
 0x164   : > { %v1978_v63 = vpop.permute.xlu1 %1977  ;;  %v1953_v34 = vpop.permute.xlu0 %1952  ;;  %v1115_v21 = vsel %vm1108_vm10, %v1098_v54, %v1969_v38  ;;  %v1116_v37 = vsel %vm1108_vm10, %v1099_v31, %v1970_v41  ;;  %v1789_v38 = vunpack.i.l.bf16 %v2612_v46 }
 0x165   : > { %v1955_v27 = vunpack.i.h.bf16 %v1953_v34  ;;  %v1954_v39 = vunpack.i.l.bf16 %v1953_v34  ;;  %v1128_v24 = vpack.c.bf16 %v1116_v37, %v1115_v21  ;;  %v1980_v12 = vunpack.i.h.bf16 %v1978_v63 }
 0x166   : > { %v1979_v0 = vunpack.i.l.bf16 %v1978_v63 }
 0x167   : > { %v1113_v40 = vsel %vm1108_vm10, %v1096_v18, %v1954_v39  ;;  %v1114_v60 = vsel %vm1108_vm10, %v1097_v52, %v1955_v27  ;;  %v1103_v35 = vsel %vm1091_vm9, %v2736_v17, %v1980_v12 }
 0x168   : > { %v1988_v53 = vpop.permute.xlu1 %1987  ;;  %v1127_v57 = vpack.c.bf16 %v1114_v60, %v1113_v40  ;;  %v1963_v61 = vpop.permute.xlu0 %1962  ;;  %v1102_v48 = vsel %vm1091_vm9, %v2731_v10, %v1979_v0 }
 0x169   : > { %v1990_v16 = vunpack.i.h.bf16 %v1988_v53  ;;  %v1989_v6 = vunpack.i.l.bf16 %v1988_v53  ;;  %v1965_v33 = vunpack.i.h.bf16 %v1963_v61  ;;  %v1964_v5 = vunpack.i.l.bf16 %v1963_v61 }
 0x16a   : > { %1619 = vmatprep.mubr.msk.bf16.mxu0 %vm1153_vm11, %v1127_v57 }
 0x16b   : > { %1620 = vmatmul.mubr.msk.bf16.gmra.mrb[4].mxu0 %vm1153_vm11, %v1128_v24  ;;  %v1005_v17 = vsel %vm989_vm4, %v2320_v51, %v1990_v16  ;;  %v1004_v29 = vsel %vm989_vm4, %v2330_v58, %v1989_v6  ;;  %v1003_v9 = vsel %vm989_vm4, %v2307_v43, %v1965_v33  ;;  %v1002_v25 = vsel %vm989_vm4, %v2310_v32, %v1964_v5 }
 0x16c   : > { %v1993_v50 = vpop.permute.xlu1 %1992  ;;  %v1973_v2 = vpop.permute.xlu0 %1972  ;;  %v1790_v43 = vunpack.i.h.bf16 %v2612_v46 }
 0x16d   : > { %v1995_v59 = vunpack.i.h.bf16 %v1993_v50  ;;  %v1994_v30 = vunpack.i.l.bf16 %v1993_v50  ;;  %v1975_v11 = vunpack.i.h.bf16 %v1973_v2  ;;  %v1974_v10 = vunpack.i.l.bf16 %v1973_v2 }
 0x16f   : > { %v1021_v13 = vsel %vm1006_vm0, %v1004_v29, %v1994_v30  ;;  %v1022_v45 = vsel %vm1006_vm0, %v1005_v17, %v1995_v59  ;;  %v1019_v51 = vsel %vm1006_vm0, %v1002_v25, %v1974_v10  ;;  %v1020_v58 = vsel %vm1006_vm0, %v1003_v9, %v1975_v11 }
 0x170   : > { %v2003_v55 = vpop.permute.xlu1 %2002  ;;  %v1983_v3 = vpop.permute.xlu0 %1982  ;;  %v1038_v7 = vsel %vm1023_vm5, %v1021_v13, %v1794_v62  ;;  %v1039_v47 = vsel %vm1023_vm5, %v1022_v45, %v1795_v23  ;;  %v1036_v54 = vsel %vm1023_vm5, %v1019_v51, %v1789_v38  ;;  %v1037_v31 = vsel %vm1023_vm5, %v1020_v58, %v1790_v43 }
 0x171   : > { %v1985_v36 = vunpack.i.h.bf16 %v1983_v3  ;;  %v1984_v4 = vunpack.i.l.bf16 %v1983_v3  ;;  %v2005_v19 = vunpack.i.h.bf16 %v2003_v55  ;;  %v2004_v26 = vunpack.i.l.bf16 %v2003_v55 }
 0x173   : > { %v1120_v14 = vsel %vm1108_vm10, %v1103_v35, %v1985_v36  ;;  %v1119_v8 = vsel %vm1108_vm10, %v1102_v48, %v1984_v4  ;;  %v1055_v28 = vsel %vm1040_vm6, %v1038_v7, %v2004_v26  ;;  %v1056_v44 = vsel %vm1040_vm6, %v1039_v47, %v2005_v19 }
 0x174   : > { %v2013_v20 = vpop.permute.xlu1 %2012  ;;  %v1130_v15 = vpack.c.bf16 %v1120_v14, %v1119_v8  ;;  %v1998_v1 = vpop.permute.xlu0 %1997 }
 0x175   : > { %v2015_v49 = vunpack.i.h.bf16 %v2013_v20  ;;  %v2014_v56 = vunpack.i.l.bf16 %v2013_v20  ;;  %v2000_v63 = vunpack.i.h.bf16 %v1998_v1  ;;  %v1999_v34 = vunpack.i.l.bf16 %v1998_v1 }
 0x176   : > { %1624 = vmatmul.mubr.msk.bf16.vlgmr.msra.gmra.mrb[0].mxu1 %vm1153_vm11, %v1130_v15 }
 0x177   : > { %v1072_v40 = vsel %vm1057_vm7, %v1055_v28, %v2014_v56  ;;  %v1073_v60 = vsel %vm1057_vm7, %v1056_v44, %v2015_v49  ;;  %v1053_v0 = vsel %vm1040_vm6, %v1036_v54, %v1999_v34  ;;  %v1054_v55 = vsel %vm1040_vm6, %v1037_v31, %v2000_v63 }
 0x178   : > { %v2023_v42 = vpop.permute.xlu1 %2022  ;;  %v2008_v22 = vpop.permute.xlu0 %2007 }
 0x179   : > { %v2025_v21 = vunpack.i.h.bf16 %v2023_v42  ;;  %v2024_v37 = vunpack.i.l.bf16 %v2023_v42  ;;  %v2010_v27 = vunpack.i.h.bf16 %v2008_v22  ;;  %v2009_v39 = vunpack.i.l.bf16 %v2008_v22 }
 0x17b   : > { %v1089_v3 = vsel %vm1074_vm8, %v1072_v40, %v2024_v37  ;;  %v1090_v36 = vsel %vm1074_vm8, %v1073_v60, %v2025_v21  ;;  %v1070_v4 = vsel %vm1057_vm7, %v1053_v0, %v2009_v39  ;;  %v1071_v48 = vsel %vm1057_vm7, %v1054_v55, %v2010_v27 }
 0x17c   : > { %v2033_v41 = vpop.permute.xlu1 %2032  ;;  %v2018_v32 = vpop.permute.xlu0 %2017 }
 0x17d   : > { %v2035_v24 = vunpack.i.h.bf16 %v2033_v41  ;;  %v2034_v18 = vunpack.i.l.bf16 %v2033_v41  ;;  %v2020_v53 = vunpack.i.h.bf16 %v2018_v32  ;;  %v2019_v57 = vunpack.i.l.bf16 %v2018_v32 }
 0x17f   : > { %v1106_v35 = vsel %vm1091_vm9, %v1089_v3, %v2034_v18  ;;  %v1107_v14 = vsel %vm1091_vm9, %v1090_v36, %v2035_v24  ;;  %v1087_v20 = vsel %vm1074_vm8, %v1070_v4, %v2019_v57  ;;  %v1088_v15 = vsel %vm1074_vm8, %v1071_v48, %v2020_v53 }
 0x180   : > { %v2043_v46 = vpop.permute.xlu1 %2042  ;;  %v2028_v52 = vpop.permute.xlu0 %2027 }
 0x181   : > { %v2045_v61 = vunpack.i.h.bf16 %v2043_v46  ;;  %v2044_v50 = vunpack.i.l.bf16 %v2043_v46  ;;  %v2030_v2 = vunpack.i.h.bf16 %v2028_v52  ;;  %v2029_v12 = vunpack.i.l.bf16 %v2028_v52 }
 0x183   : > { %v1123_v6 = vsel %vm1108_vm10, %v1106_v35, %v2044_v50  ;;  %v1124_v33 = vsel %vm1108_vm10, %v1107_v14, %v2045_v61  ;;  %v1104_v5 = vsel %vm1091_vm9, %v1087_v20, %v2029_v12  ;;  %v1105_v59 = vsel %vm1091_vm9, %v1088_v15, %v2030_v2 }
 0x184   : > { %v2038_v8 = vpop.permute.xlu0 %2037  ;;  %v1132_v42 = vpack.c.bf16 %v1124_v33, %v1123_v6 }
 0x185   : > { %v2040_v1 = vunpack.i.h.bf16 %v2038_v8  ;;  %v2039_v16 = vunpack.i.l.bf16 %v2038_v8 }
 0x187   : > { %v1121_v30 = vsel %vm1108_vm10, %v1104_v5, %v2039_v16  ;;  %v1122_v11 = vsel %vm1108_vm10, %v1105_v59, %v2040_v1 }
 0x188   : > { %v1131_v10 = vpack.c.bf16 %v1122_v11, %v1121_v30 }
 0x18a   : > { %1627 = vmatprep.mubr.msk.bf16.mxu1 %vm1153_vm11, %v1131_v10 }
 0x18b   : > { %1628 = vmatmul.mubr.msk.bf16.gmra.mrb[4].mxu1 %vm1153_vm11, %v1132_v42 }
 0x212   : > { %v1617_v22 = vpop.f32.mrb[0].mxu0 }
 0x213   : > { %1306 = vst.msk [vmem:[%s2245_s5 + $0x10] sm:$0xff] %vm1006_vm0, %v1617_v22  ;;  %v1323_v17 = vsel %vm1006_vm0, %v1617_v22, 0.0  ;;  %v1359_v29 = vmul.f32 %v1617_v22, %v1617_v22  ;;  %v1216_v9 = vpop.f32.mrb[1].mxu0 }
 0x214   : > { %1304 = vst.msk [vmem:[%s2245_s5] sm:$0xff] %vm1006_vm0, %v1216_v9  ;;  %v1320_v25 = vsel %vm1006_vm0, %v1216_v9, 0.0  ;;  %v1357_v13 = vmul.f32 %v1216_v9, %v1216_v9  ;;  %v1618_v45 = vpop.f32.mrb[2].mxu0 }
 0x215   : > { %v1376_v19 = vsel %vm1006_vm0, %v1359_v29, 0.0  ;;  %v1324_v26 = vadd.f32 %v1323_v17, %v1320_v25  ;;  %v1219_v23 = vpop.f32.mrb[3].mxu0 }
 0x216   : > { %v1373_v62 = vsel %vm1006_vm0, %v1357_v13, 0.0 }
 0x217   : > { %v1377_v51 = vadd.f32 %v1376_v19, %v1373_v62 }
 0x23e   : > { %v1621_v58 = vpop.f32.mrb[4].mxu0 }
 0x23f   : > { %1310 = vst.msk [vmem:[%s2245_s5 + $0x30] sm:$0xff] %vm1006_vm0, %v1621_v58  ;;  %v1232_v41 = vpop.f32.mrb[5].mxu0  ;;  %v1363_v43 = vmul.f32 %v1621_v58, %v1621_v58  ;;  %v1331_v56 = vsel %vm1006_vm0, %v1621_v58, 0.0 }
 0x240   : > { %1308 = vst.msk [vmem:[%s2245_s5 + $0x20] sm:$0xff] %vm1006_vm0, %v1232_v41  ;;  %v1327_v38 = vsel %vm1006_vm0, %v1232_v41, 0.0  ;;  %v1361_v32 = vmul.f32 %v1232_v41, %v1232_v41  ;;  %v1622_v7 = vpop.f32.mrb[6].mxu0 }
 0x241   : > { %v1328_v47 = vadd.f32 %v1327_v38, %v1324_v26  ;;  %v1235_v49 = vpop.f32.mrb[7].mxu0  ;;  %v1384_v31 = vsel %vm1006_vm0, %v1363_v43, 0.0 }
 0x242   : > { %v1380_v28 = vsel %vm1006_vm0, %v1361_v32, 0.0 }
 0x243   : > { %v1381_v44 = vadd.f32 %v1380_v28, %v1377_v51  ;;  %v1332_v54 = vadd.f32 %v1331_v56, %v1328_v47 }
 0x245   : > { %v1385_v63 = vadd.f32 %v1384_v31, %v1381_v44 }
 0x249   : > { %v1625_v34 = vpop.f32.mrb[0].mxu1 }
 0x24a   : > { %1314 = vst.msk [vmem:[%s2245_s5 + $0x50] sm:$0xff] %vm1006_vm0, %v1625_v34  ;;  %v1248_v21 = vpop.f32.mrb[1].mxu1  ;;  %v1367_v37 = vmul.f32 %v1625_v34, %v1625_v34  ;;  %v1339_v52 = vsel %vm1006_vm0, %v1625_v34, 0.0 }
 0x24b   : > { %1312 = vst.msk [vmem:[%s2245_s5 + $0x40] sm:$0xff] %vm1006_vm0, %v1248_v21  ;;  %v1335_v46 = vsel %vm1006_vm0, %v1248_v21, 0.0  ;;  %v1365_v27 = vmul.f32 %v1248_v21, %v1248_v21  ;;  %v1626_v39 = vpop.f32.mrb[2].mxu1 }
 0x24c   : > { %v1336_v24 = vadd.f32 %v1335_v46, %v1332_v54  ;;  %v1251_v18 = vpop.f32.mrb[3].mxu1  ;;  %v1392_v57 = vsel %vm1006_vm0, %v1367_v37, 0.0 }
 0x24d   : > { %v1388_v40 = vsel %vm1006_vm0, %v1365_v27, 0.0 }
 0x24e   : > { %v1389_v60 = vadd.f32 %v1388_v40, %v1385_v63  ;;  %v1340_v53 = vadd.f32 %v1339_v52, %v1336_v24 }
 0x250   : > { %v1393_v61 = vadd.f32 %v1392_v57, %v1389_v60 }
 0x25e   : > { %v1629_v50 = vpop.f32.mrb[4].mxu1 }
 0x25f   : > { %1318 = vst.msk [vmem:[%s2245_s5 + $0x70] sm:$0xff] %vm1006_vm0, %v1629_v50  ;;  %v1264_v2 = vpop.f32.mrb[5].mxu1  ;;  %v1371_v12 = vmul.f32 %v1629_v50, %v1629_v50  ;;  %v1347_v48 = vsel %vm1006_vm0, %v1629_v50, 0.0 }
 0x260   : > { %1316 = vst.msk [vmem:[%s2245_s5 + $0x60] sm:$0xff] %vm1006_vm0, %v1264_v2  ;;  %v1343_v0 = vsel %vm1006_vm0, %v1264_v2, 0.0  ;;  %v1369_v55 = vmul.f32 %v1264_v2, %v1264_v2  ;;  %v1630_v3 = vpop.f32.mrb[6].mxu1 }
 0x261   : > { %v1344_v36 = vadd.f32 %v1343_v0, %v1340_v53  ;;  %v1267_v4 = vpop.f32.mrb[7].mxu1  ;;  %v1400_v20 = vsel %vm1006_vm0, %v1371_v12, 0.0 }
 0x262   : > { %v1396_v35 = vsel %vm1006_vm0, %v1369_v55, 0.0 }
 0x263   : > { %v1348_v14 = vadd.f32 %v1347_v48, %v1344_v36  ;;  %v1397_v8 = vadd.f32 %v1396_v35, %v1393_v61 }
 0x265   : > { %v1351_v15 = vrot.slane %v1348_v14, 4  ;;  %v1401_v1 = vadd.f32 %v1400_v20, %v1397_v8 }
 0x267   : > { %v1352_v16 = vadd.f32 %v1351_v15, %v1348_v14  ;;  %v1404_v6 = vrot.slane %v1401_v1, 4 }
 0x269   : > { %v1353_v33 = vrot.slane %v1352_v16, 2  ;;  %v1405_v5 = vadd.f32 %v1404_v6, %v1401_v1 }
 0x26b   : > { %v1354_v59 = vadd.f32 %v1353_v33, %v1352_v16  ;;  %v1406_v30 = vrot.slane %v1405_v5, 2 }
 0x26d   : > { %v1355_v11 = vrot.slane %v1354_v59, 1  ;;  %v1407_v10 = vadd.f32 %v1406_v30, %v1405_v5 }
 0x26f   : > { %v1408_v42 = vrot.slane %v1407_v10, 1  ;;  %v1356_v22 = vadd.f32 %v1355_v11, %v1354_v59 }
 0x271   : > { %v1409_v17 = vadd.f32 %v1408_v42, %v1407_v10 }
 0x273   : > { %v1411_v29 = vsel %vm1410_vm12, %v1356_v22, %v1409_v17 }
 0x274   : > { %1413 = vst.msk [vmem:[%s338_s27] sm:$0x3] %vm1412_vm13, %v1411_v29 }
 0x275 PF: > { %s15_s17 = sadd.s32 1, %s2071_s17   ;;  %s2872_s15 = smov %s2067_s16 }
 0x276   : > { %p12_p5 = scmp.ge.s32.totalorder %s15_s17, 4   ;;  %s2873_s16 = smov %s2875_s18 }
 0x278   :  { %14 = sbr.rel (!%p12_p5) target bundleno = 2 (0x2), region = 77 }

// kernel: unet2d_down_forward.4
= control target key start
LH: loop header
LB: loop body
LE: loop exit
PB: predicated region body
PF: predicated region fallthrough
CT: control target
= control target key end

     0   :  { %s2293_s24 = smov 0   ;;  %s2295_s1 = smov 0   ;;  %s3014_s0 = inlined_call_operand.vmem [shape: f32[2,8,16,8], index: 0, kind: input, shape index: {}, may-alias: {0,1,2}]   ;;  %s3015_s1 = inlined_call_operand.vmem [shape: f32[2,8,16,8], index: 1, kind: input, shape index: {}, may-alias: {0,1,2}]   ;;  %s3016_s2 = inlined_call_operand.vmem [shape: f32[2,8,16,8], index: 2, kind: input, shape index: {}, may-alias: {0,1,2}]   ;;  %s3017_s3 = inlined_call_operand.vmem [shape: f32[1,8], index: 3, kind: input, shape index: {}]   ;;  %s3018_s4 = inlined_call_operand.vmem [shape: f32[1,8], index: 4, kind: input, shape index: {}]   ;;  %s3019_s5 = inlined_call_operand.vmem [shape: bf16[72,8], index: 5, kind: input, shape index: {}]   ;;  %s3020_s6 = inlined_call_operand.vmem [shape: f32[2,8,16,8], index: 6, kind: output, shape index: {0}]   ;;  %s3021_s7 = inlined_call_operand.vmem [shape: f32[2,1,2,8], index: 7, kind: output, shape index: {1}]  }
   0x1   :  { %s2297_s2 = smov 0  }
   0x2 LB: > { %s30_s25 = sadd.s32 1, %s2238_s1  ;;  %p1779_p0 = scmp.ge.s32.totalorder %s2242_s2, 1  ;;  %s2242_s2 = sphi %s2297_s2, %s18_s2   ;;  %s2238_s1 = sphi %s2295_s1, %s3023_s1   ;;  %s2234_s24 = sphi %s2293_s24, %s3022_s24  }
   0x3   : > { %p32_p1 = scmp.ge.s32.totalorder %s30_s25, 2  ;;  %p328_p2 = scmp.lt.s32.totalorder %s2242_s2, 3 }
   0x5   : > { %s3025_s25 = smov (%p32_p1, %s30_s25), 0  ;;  %p329_p3 = pnand %p1779_p0, %p328_p2 }
   0x6   : > { %p404_p4 = scmp.lt.s32.totalorder (!%p329_p3), %s2234_s24, 1  ;;  %vm632_vm0 = vcmask (!%p329_p3), 1040384   ;;  %v2244_v0 = vmov (!%p329_p3), 0.0   ;;  %v2319_v2 = vld [vmem:[%s3017_s3] ss:$0 sm:$0xff] (!%p329_p3)  ;;  %vm1161_vm1 = vcmask (!%p329_p3), 64512  }
   0x7   : > { %332 = sbr.rel (%p329_p3) target bundleno = 508 (0x1fc), region = 44  ;;  %v2313_v1 = vrot.slane (!%p329_p3), %v2244_v0, 7  ;;  %v2334_v3 = vld [vmem:[%s3018_s4] ss:$0 sm:$0xff] (!%p329_p3)  ;;  %vm774_vm2 = vcmask (!%p329_p3), 1045504   ;;  %vm692_vm3 = vcmask (!%p329_p3), 1046528  }
   0x8   : > { %s2245_s14 = smov (!%p329_p3), 24   ;;  %v2215_v62 = vld [vmem:[%s3019_s5] sm:$0xff] (!%p329_p3)   ;;  %s2246_s17 = smov (!%p329_p3), 16   ;;  %vm1366_vm4 = vcmask (!%p329_p3), 1043456   ;;  %vm1178_vm5 = vcmask (!%p329_p3), 130048   ;;  %vm1195_vm6 = vcmask (!%p329_p3), 195584  }
   0x9   : > { %v2338_v4 = vsel (!%p329_p3), %vm632_vm0, 0.0, %v2313_v1  ;;  %v2362_v10 = vrot.slane (!%p329_p3), %v2313_v1, 2  ;;  %v2368_v14 = vrot.slane (!%p329_p3), %v2313_v1, 1  ;;  %s2247_s18 = smov (!%p329_p3), 8   ;;  %1824 = vmatprep.subr.bf16.mxu0 (!%p329_p3), %v2215_v62  ;;  %1850 = vmatprep.subr.bf16.mxu1 (!%p329_p3), %v2215_v62  ;;  %s2248_s23 = smov (!%p329_p3), 32   ;;  %vm1212_vm7 = vcmask (!%p329_p3), 261120  }
   0xa   : > { %v775_v12 = vrot.slane (!%p329_p3), %v2338_v4, 2  ;;  %v693_v13 = vrot.slane (!%p329_p3), %v2338_v4, 1  ;;  %1825 = vmatpush3.bf16.msra.mxu0 (!%p329_p3), %v2215_v62  ;;  %1855 = vmatpush3.bf16.msra.mxu1 (!%p329_p3), %v2215_v62  ;;  %s2249_s28 = smov (!%p329_p3), 40   ;;  %s2250_s29 = smov (!%p329_p3), 48   ;;  %vm1229_vm8 = vcmask (!%p329_p3), 326656   ;;  %vm1246_vm9 = vcmask (!%p329_p3), 392192  }
   0xb   : > { %s2251_s30 = smov (!%p329_p3), 56   ;;  %vm1263_vm10 = vcmask (!%p329_p3), 457728   ;;  %vm1280_vm11 = vcmask (!%p329_p3), 523264   ;;  %vm1341_vm12 = vcmask (!%p329_p3), 588800   ;;  %vm1594_vm13 = vcmask (!%p329_p3), 58368  }
   0xc   : > { %v777_v30 = vsel (!%p329_p3), %vm774_vm2, %v775_v12, %v2362_v10  ;;  %v695_v31 = vsel (!%p329_p3), %vm692_vm3, %v693_v13, %v2368_v14 }
   0xe   : > { %s3027_s24 = smov (!%p404_p4, %s2234_s24), 1 }
   0xf   : > { %s1806_s26 = sshll.u32 %s3027_s24, 7 }
  0x10   : > { %s2324_s8 = scalar_lea.vmem %s3014_s0, %s1806_s26  ;;  %s2329_s11 = scalar_lea.vmem %s3020_s6, %s1806_s26 }
  0x11   : > { %v471_v5 = vld [vmem:[%s2324_s8 + $0x10] sm:$0xff]  ;;  %1488 = vst.msk [vmem:[%s2329_s11 + $0x8] sm:$0xff] %vm1161_vm1, %v2244_v0  ;;  %1490 = vst.msk [vmem:[%s2329_s11 + $0x18] sm:$0xff] %vm1161_vm1, %v2244_v0  ;;  %v469_v6 = vld [vmem:[%s2324_s8] sm:$0xff] }
  0x12   : > { %1492 = vst.msk [vmem:[%s2329_s11 + $0x28] sm:$0xff] %vm1161_vm1, %v2244_v0  ;;  %1494 = vst.msk [vmem:[%s2329_s11 + $0x38] sm:$0xff] %vm1161_vm1, %v2244_v0  ;;  %v473_v7 = vld [vmem:[%s2324_s8 + $0x20] sm:$0xff]  ;;  %v498_v8 = vmul.f32 %v2319_v2, %v471_v5  ;;  %v496_v9 = vmul.f32 %v2319_v2, %v469_v6  ;;  %v475_v11 = vld [vmem:[%s2324_s8 + $0x30] sm:$0xff] }
  0x13   : > { %1496 = vst.msk [vmem:[%s2329_s11 + $0x48] sm:$0xff] %vm1161_vm1, %v2244_v0  ;;  %1498 = vst.msk [vmem:[%s2329_s11 + $0x58] sm:$0xff] %vm1161_vm1, %v2244_v0  ;;  %v500_v15 = vmul.f32 %v2319_v2, %v473_v7  ;;  %v483_v16 = vld [vmem:[%s2324_s8 + $0x70] sm:$0xff]  ;;  %v502_v21 = vmul.f32 %v2319_v2, %v475_v11  ;;  %v477_v24 = vld [vmem:[%s2324_s8 + $0x40] sm:$0xff] }
  0x14   : > { %1500 = vst.msk [vmem:[%s2329_s11 + $0x68] sm:$0xff] %vm1161_vm1, %v2244_v0  ;;  %1502 = vst.msk [vmem:[%s2329_s11 + $0x78] sm:$0xff] %vm1161_vm1, %v2244_v0  ;;  %v525_v17 = vadd.f32 %v2334_v3, %v498_v8  ;;  %v523_v18 = vadd.f32 %v2334_v3, %v496_v9  ;;  %v510_v19 = vmul.f32 %v2319_v2, %v483_v16  ;;  %v479_v25 = vld [vmem:[%s2324_s8 + $0x50] sm:$0xff]  ;;  %v481_v61 = vld [vmem:[%s2324_s8 + $0x60] sm:$0xff]  ;;  %s2252_s8 = smov 64  }
  0x15   : > { %v527_v20 = vadd.f32 %v2334_v3, %v500_v15  ;;  %v529_v33 = vadd.f32 %v2334_v3, %v502_v21  ;;  %v504_v34 = vmul.f32 %v2319_v2, %v477_v24  ;;  %v506_v35 = vmul.f32 %v2319_v2, %v479_v25  ;;  %v2216_v15 = vld [vmem:[%s3019_s5 + $0x8] sm:$0xff]  }
  0x16   : > { %v545_v22 = vmax.f32 %v525_v17, 0.0  ;;  %v543_v23 = vmax.f32 %v523_v18, 0.0  ;;  %v2380_v26 = vadd.f32 %v2334_v3, %v510_v19  ;;  %v508_v13 = vmul.f32 %v2319_v2, %v481_v61  ;;  %1826 = vmatprep.subr.bf16.mxu0 %v2216_v15  ;;  %1851 = vmatprep.subr.bf16.mxu1 %v2216_v15 }
  0x17   : > { %v547_v27 = vmax.f32 %v527_v20, 0.0  ;;  %v549_v58 = vmax.f32 %v529_v33, 0.0  ;;  %v531_v59 = vadd.f32 %v2334_v3, %v504_v34  ;;  %v533_v12 = vadd.f32 %v2334_v3, %v506_v35  ;;  %1827 = vmatpush3.bf16.msra.mxu0 %v2216_v15  ;;  %1856 = vmatpush3.bf16.msra.mxu1 %v2216_v15 }
  0x18   : > { %v640_v28 = vrot.slane %v545_v22, 7  ;;  %v636_v29 = vrot.slane %v543_v23, 7  ;;  %v535_v22 = vadd.f32 %v2334_v3, %v508_v13  ;;  %v2217_v23 = vld [vmem:[%s3019_s5 + $0x10] sm:$0xff]  }
  0x19   : > { %v644_v32 = vrot.slane %v547_v27, 7  ;;  %v648_v9 = vrot.slane %v549_v58, 7  ;;  %v551_v11 = vmax.f32 %v531_v59, 0.0  ;;  %v553_v21 = vmax.f32 %v533_v12, 0.0  ;;  %1828 = vmatprep.subr.bf16.mxu0 %v2217_v23  ;;  %1852 = vmatprep.subr.bf16.mxu1 %v2217_v23 }
  0x1a   : > { %v2391_v36 = vsel %vm632_vm0, %v2313_v1, %v640_v28  ;;  %v2395_v37 = vsel %vm632_vm0, %v640_v28, %v2313_v1  ;;  %v2399_v38 = vsel %vm632_vm0, %v2313_v1, %v636_v29  ;;  %v2403_v39 = vsel %vm632_vm0, %v636_v29, %v2313_v1 }
  0x1b   : > { %v2407_v40 = vpack.i.bf16 %v2395_v37, %v2391_v36  ;;  %v1895_v41 = vpack.i.bf16 %v2403_v39, %v2399_v38  ;;  %v778_v42 = vrot.slane %v2399_v38, 2  ;;  %v696_v43 = vrot.slane %v2399_v38, 1  ;;  %1829 = vmatpush3.bf16.msra.mxu0 %v2217_v23  ;;  %1857 = vmatpush3.bf16.msra.mxu1 %v2217_v23 }
  0x1c   : > { %v780_v44 = vrot.slane %v2403_v39, 2  ;;  %v782_v45 = vrot.slane %v2391_v36, 2  ;;  %v698_v46 = vrot.slane %v2403_v39, 1  ;;  %v700_v47 = vrot.slane %v2391_v36, 1 }
  0x1d   : > { %1901 = vrot.lane.b32.xlu1 %v2407_v40, %s2245_s14  ;;  %1896 = vrot.lane.b32.xlu0 %v1895_v41, %s2245_s14  ;;  %v779_v48 = vsel %vm774_vm2, %v2362_v10, %v778_v42  ;;  %v697_v49 = vsel %vm692_vm3, %v2368_v14, %v696_v43  ;;  %v2426_v50 = vsel %vm632_vm0, %v2313_v1, %v644_v32  ;;  %v702_v51 = vrot.slane %v2395_v37, 1 }
  0x1e   : > { %v1915_v52 = vpack.i.bf16 %v779_v48, %v777_v30  ;;  %v1905_v53 = vpack.i.bf16 %v697_v49, %v695_v31  ;;  %v781_v54 = vsel %vm774_vm2, %v778_v42, %v780_v44  ;;  %v783_v55 = vsel %vm774_vm2, %v780_v44, %v782_v45  ;;  %v2218_v31 = vld [vmem:[%s3019_s5 + $0x18] sm:$0xff]  }
  0x1f   : > { %v699_v56 = vsel %vm692_vm3, %v696_v43, %v698_v46  ;;  %v701_v57 = vsel %vm692_vm3, %v698_v46, %v700_v47  ;;  %v704_v60 = vrot.slane %v2426_v50, 1  ;;  %v1920_v63 = vpack.i.bf16 %v783_v55, %v781_v54  ;;  %1830 = vmatprep.subr.bf16.mxu0 %v2218_v31  ;;  %1853 = vmatprep.subr.bf16.mxu1 %v2218_v31 }
  0x20   : > { %v1910_v0 = vpack.i.bf16 %v701_v57, %v699_v56  ;;  %v703_v5 = vsel %vm692_vm3, %v700_v47, %v702_v51  ;;  %v784_v7 = vrot.slane %v2395_v37, 2  ;;  %v786_v8 = vrot.slane %v2426_v50, 2  ;;  %1831 = vmatpush3.bf16.msra.mxu0 %v2218_v31  ;;  %1858 = vmatpush3.bf16.msra.mxu1 %v2218_v31 }
  0x21   : > { %1916 = vrot.lane.b32.xlu1 %v1915_v52, %s2246_s17  ;;  %1906 = vrot.lane.b32.xlu0 %v1905_v53, %s2247_s18  ;;  %v705_v6 = vsel %vm692_vm3, %v702_v51, %v704_v60  ;;  %v2460_v2 = vsel %vm632_vm0, %v644_v32, %v2313_v1  ;;  %v2464_v19 = vsel %vm632_vm0, %v2313_v1, %v648_v9  ;;  %v652_v20 = vrot.slane %v551_v11, 7 }
  0x22   : > { %v2452_v16 = vpack.i.bf16 %v705_v6, %v703_v5  ;;  %v785_v17 = vsel %vm774_vm2, %v782_v45, %v784_v7  ;;  %v787_v18 = vsel %vm774_vm2, %v784_v7, %v786_v8  ;;  %v706_v25 = vrot.slane %v2460_v2, 1 }
  0x23   : > { %v2473_v24 = vpack.i.bf16 %v787_v18, %v785_v17  ;;  %v708_v27 = vrot.slane %v2464_v19, 1  ;;  %v2479_v3 = vsel %vm632_vm0, %v648_v9, %v2313_v1  ;;  %v2483_v28 = vsel %vm632_vm0, %v2313_v1, %v652_v20 }
  0x24   : > { %v2485_v29 = vrot.slane %v553_v21, 7  ;;  %v555_v30 = vmax.f32 %v535_v22, 0.0  ;;  %v2495_v32 = vpack.i.bf16 %v2460_v2, %v2426_v50  ;;  %v707_v33 = vsel %vm692_vm3, %v704_v60, %v706_v25 }
  0x25   : > { %1921 = vrot.lane.b32.xlu1 %v1920_v63, %s2246_s17  ;;  %1911 = vrot.lane.b32.xlu0 %v1910_v0, %s2247_s18  ;;  %v788_v34 = vrot.slane %v2460_v2, 2  ;;  %v790_v35 = vrot.slane %v2464_v19, 2  ;;  %v709_v41 = vsel %vm692_vm3, %v706_v25, %v708_v27  ;;  %v710_v42 = vrot.slane %v2479_v3, 1 }
  0x26   : > { %v712_v43 = vrot.slane %v2483_v28, 1  ;;  %v2505_v44 = vsel %vm632_vm0, %v652_v20, %v2313_v1  ;;  %v2510_v45 = vsel %vm632_vm0, %v2313_v1, %v2485_v29  ;;  %v660_v46 = vrot.slane %v555_v30, 7 }
  0x27   : > { %v557_v47 = vmax.f32 %v2380_v26, 0.0  ;;  %v2515_v48 = vsel %vm632_vm0, %v2313_v1, 0.0  ;;  %v2521_v49 = vpack.i.bf16 %v709_v41, %v707_v33  ;;  %v789_v51 = vsel %vm774_vm2, %v786_v8, %v788_v34 }
  0x28   : > { %v791_v26 = vsel %vm774_vm2, %v788_v34, %v790_v35  ;;  %v714_v52 = vrot.slane %v2505_v44, 1  ;;  %v711_v53 = vsel %vm692_vm3, %v708_v27, %v710_v42  ;;  %v713_v54 = vsel %vm692_vm3, %v710_v42, %v712_v43 }
  0x29   : > { %1931 = vrot.lane.b32.xlu1 %v2452_v16, %s2248_s23  ;;  %1926 = vrot.lane.b32.xlu0 %v1910_v0, %s2248_s23  ;;  %v716_v55 = vrot.slane %v2510_v45, 1  ;;  %v792_v56 = vrot.slane %v2479_v3, 2  ;;  %v1059_v57 = vrot.slane %v2515_v48, 1  ;;  %v2537_v58 = vpack.i.bf16 %v791_v26, %v789_v51  ;;  %v2219_v26 = vld [vmem:[%s3019_s5 + $0x20] ss:$0 sps:$4 sm:$0xff]  }
  0x2a   : > { %v2541_v59 = vsel %vm632_vm0, %v660_v46, %v2313_v1  ;;  %v2547_v60 = vpack.i.bf16 %v713_v54, %v711_v53  ;;  %v715_v61 = vsel %vm692_vm3, %v712_v43, %v714_v52  ;;  %v664_v62 = vrot.slane %v557_v47, 7  ;;  %1860 = vmatprep.subr.msk.bf16.mxu0 %vm1366_vm4, %v2219_v26  ;;  %1861 = vmatprep.subr.msk.bf16.mxu1 %vm1366_vm4, %v2219_v26 }
  0x2b   : > { %v717_v0 = vsel %vm692_vm3, %v714_v52, %v716_v55  ;;  %v793_v5 = vsel %vm774_vm2, %v790_v35, %v792_v56  ;;  %v794_v6 = vrot.slane %v2483_v28, 2  ;;  %v796_v8 = vrot.slane %v2505_v44, 2 }
  0x2c   : > { %v2561_v11 = vsel %vm632_vm0, %v2313_v1, %v664_v62  ;;  %v804_v12 = vrot.slane %v2541_v59, 2  ;;  %v2571_v18 = vsel %vm632_vm0, %v664_v62, %v2313_v1  ;;  %v798_v20 = vrot.slane %v2510_v45, 2 }
  0x2d   : > { %1946 = vrot.lane.b32.xlu1 %v2473_v24, %s2249_s28  ;;  %1936 = vrot.lane.b32.xlu0 %v1920_v63, %s2249_s28  ;;  %v722_v63 = vrot.slane %v2541_v59, 1  ;;  %v724_v15 = vrot.slane %v2561_v11, 1  ;;  %v806_v17 = vrot.slane %v2561_v11, 2  ;;  %v904_v22 = vrot.slane %v2571_v18, 1 }
  0x2e   : > { %v956_v23 = vrot.slane %v2571_v18, 2  ;;  %v2583_v25 = vpack.i.bf16 %v717_v0, %v715_v61  ;;  %v795_v27 = vsel %vm774_vm2, %v792_v56, %v794_v6  ;;  %v2609_v51 = vsel %vm692_vm3, %v2368_v14, %v1059_v57 }
  0x2f   : > { %v807_v30 = vsel %vm774_vm2, %v804_v12, %v806_v17  ;;  %v905_v34 = vsel %vm692_vm3, %v724_v15, %v904_v22  ;;  %v907_v35 = vsel %vm692_vm3, %v904_v22, %v2368_v14  ;;  %v2200_v52 = vpack.i.bf16 %v2609_v51, %v2368_v14 }
  0x30   : > { %v957_v41 = vsel %vm774_vm2, %v806_v17, %v956_v23  ;;  %v2600_v42 = vpack.i.bf16 %v907_v35, %v905_v34  ;;  %v959_v43 = vsel %vm774_vm2, %v956_v23, %v2362_v10  ;;  %v2000_v54 = vpack.i.bf16 %v795_v27, %v793_v5 }
  0x31   : > { %1951 = vrot.lane.b32.xlu1 %v2495_v32, %s2250_s29  ;;  %1941 = vrot.lane.b32.xlu0 %v2407_v40, %s2250_s29  ;;  %v2534_v40 = vsel %vm632_vm0, %v2313_v1, %v660_v46  ;;  %v1111_v46 = vrot.slane %v2515_v48, 2  ;;  %v2605_v47 = vpack.i.bf16 %v959_v43, %v957_v41  ;;  %v797_v56 = vsel %vm774_vm2, %v794_v6, %v796_v8 }
  0x32   : > { %v720_v7 = vrot.slane %v2534_v40, 1  ;;  %v802_v9 = vrot.slane %v2534_v40, 2  ;;  %v799_v57 = vsel %vm774_vm2, %v796_v8, %v798_v20  ;;  %v1368_v61 = vsel %vm1366_vm4, %v2219_v26, 0 }
  0x33   : > { %v2618_v53 = vsel %vm774_vm2, %v2362_v10, %v1111_v46  ;;  %1833 = vmatpush3.bf16.msra.mxu0 %v1368_v61  ;;  %1859 = vmatpush3.bf16.msra.mxu1 %v1368_v61  ;;  %v2010_v62 = vpack.i.bf16 %v799_v57, %v797_v56  ;;  %v2639_v0 = vsel %vm632_vm0, %v2485_v29, %v2313_v1 }
  0x34   : > { %v723_v13 = vsel %vm692_vm3, %v720_v7, %v722_v63  ;;  %v805_v21 = vsel %vm774_vm2, %v802_v9, %v804_v12  ;;  %v2210_v48 = vpack.i.bf16 %v2618_v53, %v2362_v10  ;;  %v2025_v5 = vpack.i.bf16 %v2479_v3, %v2464_v19 }
  0x35   : > { %1961 = vrot.lane.b32.xlu1 %v2521_v49, %s2251_s30  ;;  %1956 = vrot.lane.b32.xlu0 %v2452_v16, %s2251_s30  ;;  %v2590_v33 = vpack.i.bf16 %v807_v30, %v805_v21  ;;  %v718_v6 = vrot.slane %v2639_v0, 1  ;;  %v800_v12 = vrot.slane %v2639_v0, 2 }
  0x37   : > { %v719_v29 = vsel %vm692_vm3, %v716_v55, %v718_v6  ;;  %v801_v55 = vsel %vm774_vm2, %v798_v20, %v800_v12 }
  0x39   : > { %1971 = vrot.lane.b32.xlu1 %v2452_v16, %s2247_s18  ;;  %1966 = vrot.lane.b32.xlu0 %v2473_v24, %s2252_s8  ;;  %v725_v16 = vsel %vm692_vm3, %v722_v63, %v724_v15  ;;  %v2020_v63 = vpack.i.bf16 %v2505_v44, %v2483_v28 }
  0x3a   : > { %v2588_v31 = vpack.i.bf16 %v725_v16, %v723_v13  ;;  %v2090_v13 = vpack.i.bf16 %v2541_v59, %v2534_v40 }
  0x3d   : > { %1981 = vrot.lane.b32.xlu1 %v2537_v58, %s2252_s8  ;;  %1976 = vrot.lane.b32.xlu0 %v2547_v60, %s2247_s18 }
  0x41   : > { %1991 = vrot.lane.b32.xlu1 %v2583_v25, %s2247_s18  ;;  %1986 = vrot.lane.b32.xlu0 %v2521_v49, %s2247_s18 }
  0x45   : > { %2001 = vrot.lane.b32.xlu1 %v2000_v54, %s2246_s17  ;;  %1996 = vrot.lane.b32.xlu0 %v2473_v24, %s2246_s17  ;;  %v2030_v24 = vpack.i.bf16 %v2639_v0, %v2510_v45 }
  0x49   : > { %2011 = vrot.lane.b32.xlu1 %v2010_v62, %s2246_s17  ;;  %2006 = vrot.lane.b32.xlu0 %v2537_v58, %s2246_s17 }
  0x4d   : > { %2021 = vrot.lane.b32.xlu1 %v2020_v63, %s2245_s14  ;;  %2016 = vrot.lane.b32.xlu0 %v2495_v32, %s2245_s14  ;;  %v721_v32 = vsel %vm692_vm3, %v718_v6, %v720_v7  ;;  %v803_v7 = vsel %vm774_vm2, %v800_v12, %v802_v9 }
  0x4e   : > { %v2050_v8 = vpack.i.bf16 %v721_v32, %v719_v29 }
  0x51   : > { %2031 = vrot.lane.b32.xlu1 %v2030_v24, %s2245_s14  ;;  %2026 = vrot.lane.b32.xlu0 %v2025_v5, %s2245_s14 }
  0x55   : > { %2041 = vrot.lane.b32.xlu1 %v2583_v25, %s2248_s23  ;;  %2036 = vrot.lane.b32.xlu0 %v2521_v49, %s2248_s23  ;;  %v2070_v49 = vpack.i.bf16 %v803_v7, %v801_v55 }
  0x59   : > { %2051 = vrot.lane.b32.xlu1 %v2050_v8, %s2248_s23  ;;  %2046 = vrot.lane.b32.xlu0 %v2547_v60, %s2248_s23 }
  0x5d   : > { %2061 = vrot.lane.b32.xlu1 %v2010_v62, %s2249_s28  ;;  %2056 = vrot.lane.b32.xlu0 %v2537_v58, %s2249_s28  ;;  %v2160_v58 = vpack.i.bf16 %v2571_v18, %v2561_v11 }
  0x61   : > { %2071 = vrot.lane.b32.xlu1 %v2070_v49, %s2249_s28  ;;  %2066 = vrot.lane.b32.xlu0 %v2000_v54, %s2249_s28 }
  0x65   : > { %2081 = vrot.lane.b32.xlu1 %v2030_v24, %s2250_s29  ;;  %2076 = vrot.lane.b32.xlu0 %v2025_v5, %s2250_s29 }
  0x69   : > { %2091 = vrot.lane.b32.xlu1 %v2090_v13, %s2250_s29  ;;  %2086 = vrot.lane.b32.xlu0 %v2020_v63, %s2250_s29 }
  0x6d   : > { %2101 = vrot.lane.b32.xlu1 %v2050_v8, %s2251_s30  ;;  %2096 = vrot.lane.b32.xlu0 %v2547_v60, %s2251_s30  ;;  %v2190_v60 = vpack.i.bf16 %v2313_v1, %v2313_v1 }
  0x71   : > { %2111 = vrot.lane.b32.xlu1 %v2588_v31, %s2251_s30  ;;  %2106 = vrot.lane.b32.xlu0 %v2583_v25, %s2251_s30 }
  0x75   : > { %2121 = vrot.lane.b32.xlu1 %v2070_v49, %s2252_s8  ;;  %2116 = vrot.lane.b32.xlu0 %v2000_v54, %s2252_s8 }
  0x79   : > { %2131 = vrot.lane.b32.xlu1 %v2010_v62, %s2252_s8  ;;  %2126 = vrot.lane.b32.xlu0 %v2050_v8, %s2247_s18 }
  0x7d   : > { %2141 = vrot.lane.b32.xlu1 %v2588_v31, %s2247_s18  ;;  %2136 = vrot.lane.b32.xlu0 %v2590_v33, %s2252_s8 }
  0x81   : > { %2151 = vrot.lane.b32.xlu1 %v2590_v33, %s2246_s17  ;;  %2146 = vrot.lane.b32.xlu0 %v2070_v49, %s2246_s17 }
  0x85   : > { %2161 = vrot.lane.b32.xlu1 %v2160_v58, %s2245_s14  ;;  %2156 = vrot.lane.b32.xlu0 %v2090_v13, %s2245_s14 }
  0x89   : > { %2171 = vrot.lane.b32.xlu1 %v2600_v42, %s2248_s23  ;;  %2166 = vrot.lane.b32.xlu0 %v2588_v31, %s2248_s23 }
  0x8d   : > { %2181 = vrot.lane.b32.xlu1 %v2605_v47, %s2249_s28  ;;  %2176 = vrot.lane.b32.xlu0 %v2590_v33, %s2249_s28 }
  0x8f   : > { %v1902_v9 = vpop.permute.xlu1 %1901  ;;  %v1897_v11 = vpop.permute.xlu0 %1896 }
  0x90   : > { %v1903_v26 = vunpack.i.l.bf16 %v1902_v9  ;;  %v1898_v53 = vunpack.i.l.bf16 %v1897_v11 }
  0x91   : > { %2191 = vrot.lane.b32.xlu1 %v2190_v60, %s2250_s29  ;;  %2186 = vrot.lane.b32.xlu0 %v2160_v58, %s2250_s29 }
  0x93   : > { %v1917_v15 = vpop.permute.xlu1 %1916  ;;  %v1907_v17 = vpop.permute.xlu0 %1906 }
  0x94   : > { %v1909_v23 = vunpack.i.h.bf16 %v1907_v17  ;;  %v1908_v25 = vunpack.i.l.bf16 %v1907_v17  ;;  %v1919_v31 = vunpack.i.h.bf16 %v1917_v15  ;;  %v1918_v33 = vunpack.i.l.bf16 %v1917_v15 }
  0x95   : > { %2201 = vrot.lane.b32.xlu1 %v2200_v52, %s2251_s30  ;;  %2196 = vrot.lane.b32.xlu0 %v2600_v42, %s2251_s30  ;;  %v1899_v52 = vunpack.i.h.bf16 %v1897_v11 }
  0x96   : > { %v1163_v10 = vsel %vm1161_vm1, %v2313_v1, %v1909_v23  ;;  %v1162_v34 = vsel %vm1161_vm1, %v2338_v4, %v1908_v25  ;;  %v1904_v4 = vunpack.i.h.bf16 %v1902_v9 }
  0x97   : > { %v1922_v18 = vpop.permute.xlu1 %1921  ;;  %v1912_v20 = vpop.permute.xlu0 %1911  ;;  %v1180_v51 = vsel %vm1178_vm5, %v1163_v10, %v1919_v31  ;;  %v1179_v1 = vsel %vm1178_vm5, %v1162_v34, %v1918_v33 }
  0x98   : > { %v1914_v14 = vunpack.i.h.bf16 %v1912_v20  ;;  %v1913_v27 = vunpack.i.l.bf16 %v1912_v20  ;;  %v1924_v35 = vunpack.i.h.bf16 %v1922_v18  ;;  %v1923_v41 = vunpack.i.l.bf16 %v1922_v18 }
  0x99   : > { %2211 = vrot.lane.b32.xlu1 %v2210_v48, %s2252_s8  ;;  %2206 = vrot.lane.b32.xlu0 %v2605_v47, %s2252_s8  ;;  %v1196_v56 = vsel %vm1195_vm6, %v1179_v1, %v1898_v53  ;;  %v1197_v57 = vsel %vm1195_vm6, %v1180_v51, %v1899_v52 }
  0x9a   : > { %v1165_v42 = vsel %vm1161_vm1, %v2403_v39, %v1914_v14  ;;  %v1164_v43 = vsel %vm1161_vm1, %v2399_v38, %v1913_v27 }
  0x9b   : > { %v2726_v21 = vpop.permute.xlu1 %1931  ;;  %v1927_v22 = vpop.permute.xlu0 %1926  ;;  %v1182_v48 = vsel %vm1178_vm5, %v1165_v42, %v1924_v35  ;;  %v1181_v39 = vsel %vm1178_vm5, %v1164_v43, %v1923_v41 }
  0x9c   : > { %v1929_v54 = vunpack.i.h.bf16 %v1927_v22  ;;  %v1928_v38 = vunpack.i.l.bf16 %v1927_v22  ;;  %v1934_v5 = vunpack.i.h.bf16 %v2726_v21  ;;  %v1933_v6 = vunpack.i.l.bf16 %v2726_v21 }
  0x9d   : > { %v1198_v8 = vsel %vm1195_vm6, %v1181_v39, %v1903_v26  ;;  %v1199_v12 = vsel %vm1195_vm6, %v1182_v48, %v1904_v4 }
  0x9e   : > { %v1213_v49 = vsel %vm1212_vm7, %v1196_v56, %v1928_v38  ;;  %v1214_v13 = vsel %vm1212_vm7, %v1197_v57, %v1929_v54  ;;  %v1215_v31 = vsel %vm1212_vm7, %v1198_v8, %v1933_v6  ;;  %v1216_v33 = vsel %vm1212_vm7, %v1199_v12, %v1934_v5 }
  0x9f   : > { %v2728_v16 = vpop.permute.xlu1 %1946  ;;  %v1937_v30 = vpop.permute.xlu0 %1936 }
  0xa0   : > { %v1939_v61 = vunpack.i.h.bf16 %v1937_v30  ;;  %v1938_v62 = vunpack.i.l.bf16 %v1937_v30  ;;  %v1949_v58 = vunpack.i.h.bf16 %v2728_v16  ;;  %v1948_v60 = vunpack.i.l.bf16 %v2728_v16 }
  0xa2   : > { %v1230_v9 = vsel %vm1229_vm8, %v1213_v49, %v1938_v62  ;;  %v1231_v11 = vsel %vm1229_vm8, %v1214_v13, %v1939_v61  ;;  %v1232_v35 = vsel %vm1229_vm8, %v1215_v31, %v1948_v60  ;;  %v1233_v41 = vsel %vm1229_vm8, %v1216_v33, %v1949_v58 }
  0xa3   : > { %v1952_v46 = vpop.permute.xlu1 %1951  ;;  %v1942_v47 = vpop.permute.xlu0 %1941 }
  0xa4   : > { %v1944_v29 = vunpack.i.h.bf16 %v1942_v47  ;;  %v1943_v32 = vunpack.i.l.bf16 %v1942_v47  ;;  %v1954_v15 = vunpack.i.h.bf16 %v1952_v46  ;;  %v1953_v17 = vunpack.i.l.bf16 %v1952_v46 }
  0xa6   : > { %v1247_v21 = vsel %vm1246_vm9, %v1230_v9, %v1943_v32  ;;  %v1248_v22 = vsel %vm1246_vm9, %v1231_v11, %v1944_v29  ;;  %v1249_v47 = vsel %vm1246_vm9, %v1232_v35, %v1953_v17  ;;  %v1250_v51 = vsel %vm1246_vm9, %v1233_v41, %v1954_v15 }
  0xa7   : > { %v1962_v63 = vpop.permute.xlu1 %1961  ;;  %v1957_v24 = vpop.permute.xlu0 %1956 }
  0xa8   : > { %v1959_v55 = vunpack.i.h.bf16 %v1957_v24  ;;  %v1958_v7 = vunpack.i.l.bf16 %v1957_v24  ;;  %v1964_v14 = vunpack.i.h.bf16 %v1962_v63  ;;  %v1963_v27 = vunpack.i.l.bf16 %v1962_v63 }
  0xaa   : > { %v1264_v30 = vsel %vm1263_vm10, %v1247_v21, %v1958_v7  ;;  %v1265_v16 = vsel %vm1263_vm10, %v1248_v22, %v1959_v55  ;;  %v1266_v26 = vsel %vm1263_vm10, %v1249_v47, %v1963_v27  ;;  %v1267_v52 = vsel %vm1263_vm10, %v1250_v51, %v1964_v14 }
  0xab   : > { %v2754_v18 = vpop.permute.xlu1 %1971  ;;  %v1967_v20 = vpop.permute.xlu0 %1966 }
  0xac   : > { %v1969_v23 = vunpack.i.h.bf16 %v1967_v20  ;;  %v1968_v25 = vunpack.i.l.bf16 %v1967_v20  ;;  %v1974_v49 = vunpack.i.h.bf16 %v2754_v18  ;;  %v1973_v13 = vunpack.i.l.bf16 %v2754_v18 }
  0xae   : > { %v1281_v10 = vsel %vm1280_vm11, %v1264_v30, %v1968_v25  ;;  %v1282_v34 = vsel %vm1280_vm11, %v1265_v16, %v1969_v23  ;;  %v1167_v27 = vsel %vm1161_vm1, %v2395_v37, %v1974_v49  ;;  %v1166_v18 = vsel %vm1161_vm1, %v2391_v36, %v1973_v13 }
  0xaf   : > { %v1982_v42 = vpop.permute.xlu1 %1981  ;;  %v1977_v43 = vpop.permute.xlu0 %1976  ;;  %v1297_v46 = vpack.c.bf16 %v1282_v34, %v1281_v10 }
  0xb0   : > { %v1984_v1 = vunpack.i.h.bf16 %v1982_v42  ;;  %v1983_v4 = vunpack.i.l.bf16 %v1982_v42  ;;  %v1979_v58 = vunpack.i.h.bf16 %v1977_v43  ;;  %v1978_v60 = vunpack.i.l.bf16 %v1977_v43 }
  0xb1   : > { %1834 = vmatprep.mubr.msk.bf16.mxu0 %vm1341_vm12, %v1297_v46 }
  0xb2   : > { %v1283_v53 = vsel %vm1280_vm11, %v1266_v26, %v1983_v4  ;;  %v1284_v48 = vsel %vm1280_vm11, %v1267_v52, %v1984_v1  ;;  %v1171_v30 = vsel %vm1161_vm1, %v2479_v3, %v1979_v58  ;;  %v1170_v16 = vsel %vm1161_vm1, %v2464_v19, %v1978_v60 }
  0xb3   : > { %v1298_v39 = vpack.c.bf16 %v1284_v48, %v1283_v53  ;;  %v1992_v54 = vpop.permute.xlu1 %1991  ;;  %v1987_v38 = vpop.permute.xlu0 %1986 }
  0xb4   : > { %v1994_v9 = vunpack.i.h.bf16 %v1992_v54  ;;  %v1993_v11 = vunpack.i.l.bf16 %v1992_v54  ;;  %v1989_v15 = vunpack.i.h.bf16 %v1987_v38  ;;  %v1988_v17 = vunpack.i.l.bf16 %v1987_v38 }
  0xb5   : > { %1835 = vmatmul.mubr.msk.bf16.vlgmr.msra.gmra.mrb[0].mxu0 %vm1341_vm12, %v1298_v39 }
  0xb6   : > { %v1173_v31 = vsel %vm1161_vm1, %v2505_v44, %v1994_v9  ;;  %v1172_v33 = vsel %vm1161_vm1, %v2483_v28, %v1993_v11  ;;  %v1169_v37 = vsel %vm1161_vm1, %v2460_v2, %v1989_v15  ;;  %v1168_v36 = vsel %vm1161_vm1, %v2426_v50, %v1988_v17 }
  0xb7   : > { %v2002_v56 = vpop.permute.xlu1 %2001  ;;  %v1997_v57 = vpop.permute.xlu0 %1996 }
  0xb8   : > { %v2004_v20 = vunpack.i.h.bf16 %v2002_v56  ;;  %v2003_v21 = vunpack.i.l.bf16 %v2002_v56  ;;  %v1999_v22 = vunpack.i.h.bf16 %v1997_v57  ;;  %v1998_v23 = vunpack.i.l.bf16 %v1997_v57 }
  0xba   : > { %v1187_v35 = vsel %vm1178_vm5, %v1170_v16, %v2003_v21  ;;  %v1188_v3 = vsel %vm1178_vm5, %v1171_v30, %v2004_v20  ;;  %v1184_v19 = vsel %vm1178_vm5, %v1167_v27, %v1999_v22  ;;  %v1183_v41 = vsel %vm1178_vm5, %v1166_v18, %v1998_v23 }
  0xbb   : > { %v2012_v61 = vpop.permute.xlu1 %2011  ;;  %v2007_v62 = vpop.permute.xlu0 %2006 }
  0xbc   : > { %v2014_v10 = vunpack.i.h.bf16 %v2012_v61  ;;  %v2013_v34 = vunpack.i.l.bf16 %v2012_v61  ;;  %v2009_v44 = vunpack.i.h.bf16 %v2007_v62  ;;  %v2008_v42 = vunpack.i.l.bf16 %v2007_v62 }
  0xbe   : > { %v1189_v51 = vsel %vm1178_vm5, %v1172_v33, %v2013_v34  ;;  %v1190_v1 = vsel %vm1178_vm5, %v1173_v31, %v2014_v10  ;;  %v1185_v54 = vsel %vm1178_vm5, %v1168_v36, %v2008_v42  ;;  %v1186_v38 = vsel %vm1178_vm5, %v1169_v37, %v2009_v44 }
  0xbf   : > { %v2774_v63 = vpop.permute.xlu1 %2021  ;;  %v2776_v24 = vpop.permute.xlu0 %2016 }
  0xc0   : > { %v2024_v46 = vunpack.i.h.bf16 %v2774_v63  ;;  %v2023_v2 = vunpack.i.l.bf16 %v2774_v63  ;;  %v2019_v50 = vunpack.i.h.bf16 %v2776_v24  ;;  %v2018_v47 = vunpack.i.l.bf16 %v2776_v24 }
  0xc2   : > { %v1204_v63 = vsel %vm1195_vm6, %v1187_v35, %v2023_v2  ;;  %v1205_v24 = vsel %vm1195_vm6, %v1188_v3, %v2024_v46 }
  0xc3   : > { %v2778_v5 = vpop.permute.xlu1 %2031  ;;  %v2780_v6 = vpop.permute.xlu0 %2026 }
  0xc4   : > { %v2034_v4 = vunpack.i.h.bf16 %v2778_v5  ;;  %v2033_v26 = vunpack.i.l.bf16 %v2778_v5  ;;  %v2029_v52 = vunpack.i.h.bf16 %v2780_v6  ;;  %v2028_v53 = vunpack.i.l.bf16 %v2780_v6 }
  0xc5   : > { %v1200_v5 = vsel %vm1195_vm6, %v1183_v41, %v2018_v47  ;;  %v1201_v6 = vsel %vm1195_vm6, %v1184_v19, %v2019_v50 }
  0xc6   : > { %v2852_v49 = vsel %vm1195_vm6, %v1190_v1, %v2034_v4  ;;  %v1202_v58 = vsel %vm1195_vm6, %v1185_v54, %v2028_v53  ;;  %v1203_v60 = vsel %vm1195_vm6, %v1186_v38, %v2029_v52 }
  0xc7   : > { %v2782_v29 = vpop.permute.xlu1 %2041  ;;  %v2784_v32 = vpop.permute.xlu0 %2036 }
  0xc8   : > { %v2044_v48 = vunpack.i.h.bf16 %v2782_v29  ;;  %v2043_v39 = vunpack.i.l.bf16 %v2782_v29  ;;  %v2039_v56 = vunpack.i.h.bf16 %v2784_v32  ;;  %v2038_v57 = vunpack.i.l.bf16 %v2784_v32 }
  0xc9   : > { %v2849_v29 = vsel %vm1195_vm6, %v1189_v51, %v2033_v26 }
  0xca   : > { %v1221_v9 = vsel %vm1212_vm7, %v1204_v63, %v2043_v39  ;;  %v1222_v11 = vsel %vm1212_vm7, %v1205_v24, %v2044_v48  ;;  %v1217_v15 = vsel %vm1212_vm7, %v1200_v5, %v2038_v57  ;;  %v1218_v17 = vsel %vm1212_vm7, %v1201_v6, %v2039_v56 }
  0xcb   : > { %v2786_v8 = vpop.permute.xlu1 %2051  ;;  %v2788_v12 = vpop.permute.xlu0 %2046 }
  0xcc   : > { %v2049_v32 = vunpack.i.h.bf16 %v2788_v12  ;;  %v2048_v13 = vunpack.i.l.bf16 %v2788_v12  ;;  %v2054_v12 = vunpack.i.h.bf16 %v2786_v8  ;;  %v2053_v27 = vunpack.i.l.bf16 %v2786_v8 }
  0xce   : > { %v1219_v16 = vsel %vm1212_vm7, %v1202_v58, %v2048_v13  ;;  %v1220_v31 = vsel %vm1212_vm7, %v1203_v60, %v2049_v32 }
  0xcf   : > { %v2790_v55 = vpop.permute.xlu1 %2061  ;;  %v2792_v7 = vpop.permute.xlu0 %2056 }
  0xd0   : > { %v2064_v20 = vunpack.i.h.bf16 %v2790_v55  ;;  %v2063_v21 = vunpack.i.l.bf16 %v2790_v55  ;;  %v2059_v18 = vunpack.i.h.bf16 %v2792_v7  ;;  %v2058_v30 = vunpack.i.l.bf16 %v2792_v7 }
  0xd2   : > { %v1238_v35 = vsel %vm1229_vm8, %v1221_v9, %v2063_v21  ;;  %v1239_v7 = vsel %vm1229_vm8, %v1222_v11, %v2064_v20  ;;  %v1234_v42 = vsel %vm1229_vm8, %v1217_v15, %v2058_v30 }
  0xd3   : > { %v2796_v25 = vpop.permute.xlu1 %2071  ;;  %v2798_v14 = vpop.permute.xlu0 %2066 }
  0xd4   : > { %v2069_v33 = vunpack.i.h.bf16 %v2798_v14  ;;  %v2068_v10 = vunpack.i.l.bf16 %v2798_v14  ;;  %v1235_v14 = vsel %vm1229_vm8, %v1218_v17, %v2059_v18  ;;  %v2074_v46 = vunpack.i.h.bf16 %v2796_v25 }
  0xd6   : > { %v1236_v2 = vsel %vm1229_vm8, %v1219_v16, %v2068_v10 }
  0xd7   : > { %v2820_v43 = vpop.permute.xlu1 %2081  ;;  %v2822_v28 = vpop.permute.xlu0 %2076 }
  0xd8   : > { %v2084_v55 = vunpack.i.h.bf16 %v2820_v43  ;;  %v2083_v34 = vunpack.i.l.bf16 %v2820_v43  ;;  %v2079_v37 = vunpack.i.h.bf16 %v2822_v28  ;;  %v2078_v36 = vunpack.i.l.bf16 %v2822_v28 }
  0xd9   : > { %v2073_v43 = vunpack.i.l.bf16 %v2796_v25  ;;  %v1237_v28 = vsel %vm1229_vm8, %v1220_v31, %v2069_v33 }
  0xda   : > { %v1255_v51 = vsel %vm1246_vm9, %v1238_v35, %v2083_v34  ;;  %v1256_v1 = vsel %vm1246_vm9, %v1239_v7, %v2084_v55  ;;  %v1251_v4 = vsel %vm1246_vm9, %v1234_v42, %v2078_v36  ;;  %v1252_v26 = vsel %vm1246_vm9, %v1235_v14, %v2079_v37 }
  0xdb   : > { %v2840_v61 = vpop.permute.xlu1 %2091  ;;  %v2842_v62 = vpop.permute.xlu0 %2086  ;;  %v1224_v55 = vsel %vm1212_vm7, %v2852_v49, %v2054_v12 }
  0xdc   : > { %v2089_v52 = vunpack.i.h.bf16 %v2842_v62  ;;  %v2088_v53 = vunpack.i.l.bf16 %v2842_v62  ;;  %v2094_v9 = vunpack.i.h.bf16 %v2840_v61  ;;  %v2093_v11 = vunpack.i.l.bf16 %v2840_v61 }
  0xdd   : > { %v1223_v61 = vsel %vm1212_vm7, %v2849_v29, %v2053_v27  ;;  %v1241_v35 = vsel %vm1229_vm8, %v1224_v55, %v2074_v46 }
  0xde   : > { %v1240_v36 = vsel %vm1229_vm8, %v1223_v61, %v2073_v43  ;;  %v1258_v29 = vsel %vm1246_vm9, %v1241_v35, %v2094_v9 }
  0xdf   : > { %v2102_v22 = vpop.permute.xlu1 %2101  ;;  %v2097_v23 = vpop.permute.xlu0 %2096 }
  0xe0   : > { %v2099_v3 = vunpack.i.h.bf16 %v2097_v23  ;;  %v2098_v19 = vunpack.i.l.bf16 %v2097_v23  ;;  %v2104_v50 = vunpack.i.h.bf16 %v2102_v22  ;;  %v2103_v47 = vunpack.i.l.bf16 %v2102_v22 }
  0xe1   : > { %v1253_v22 = vsel %vm1246_vm9, %v1236_v2, %v2088_v53  ;;  %v1254_v23 = vsel %vm1246_vm9, %v1237_v28, %v2089_v52 }
  0xe2   : > { %v1268_v25 = vsel %vm1263_vm10, %v1251_v4, %v2098_v19  ;;  %v1269_v48 = vsel %vm1263_vm10, %v1252_v26, %v2099_v3  ;;  %v1272_v6 = vsel %vm1263_vm10, %v1255_v51, %v2103_v47  ;;  %v1273_v32 = vsel %vm1263_vm10, %v1256_v1, %v2104_v50 }
  0xe3   : > { %v2878_v41 = vpop.permute.xlu1 %2111  ;;  %v2107_v44 = vpop.permute.xlu0 %2106 }
  0xe4   : > { %v2109_v24 = vunpack.i.h.bf16 %v2107_v44  ;;  %v2108_v5 = vunpack.i.l.bf16 %v2107_v44  ;;  %v2114_v16 = vunpack.i.h.bf16 %v2878_v41  ;;  %v2113_v31 = vunpack.i.l.bf16 %v2878_v41 }
  0xe5   : > { %v1257_v41 = vsel %vm1246_vm9, %v1240_v36, %v2093_v11 }
  0xe6   : > { %v1270_v33 = vsel %vm1263_vm10, %v1253_v22, %v2108_v5  ;;  %v1271_v10 = vsel %vm1263_vm10, %v1254_v23, %v2109_v24  ;;  %v1274_v44 = vsel %vm1263_vm10, %v1257_v41, %v2113_v31  ;;  %v1275_v49 = vsel %vm1263_vm10, %v1258_v29, %v2114_v16 }
  0xe7   : > { %v2122_v39 = vpop.permute.xlu1 %2121  ;;  %v2117_v54 = vpop.permute.xlu0 %2116 }
  0xe8   : > { %v2124_v38 = vunpack.i.h.bf16 %v2122_v39  ;;  %v2123_v56 = vunpack.i.l.bf16 %v2122_v39  ;;  %v2119_v57 = vunpack.i.h.bf16 %v2117_v54  ;;  %v2118_v63 = vunpack.i.l.bf16 %v2117_v54 }
  0xea   : > { %v1285_v13 = vsel %vm1280_vm11, %v1268_v25, %v2118_v63  ;;  %v1286_v62 = vsel %vm1280_vm11, %v1269_v48, %v2119_v57  ;;  %v1289_v58 = vsel %vm1280_vm11, %v1272_v6, %v2123_v56  ;;  %v1290_v60 = vsel %vm1280_vm11, %v1273_v32, %v2124_v38 }
  0xeb   : > { %v1299_v15 = vpack.c.bf16 %v1286_v62, %v1285_v13  ;;  %v2132_v17 = vpop.permute.xlu1 %2131  ;;  %v2127_v20 = vpop.permute.xlu0 %2126  ;;  %v1301_v21 = vpack.c.bf16 %v1290_v60, %v1289_v58 }
  0xec   : > { %v2134_v18 = vunpack.i.h.bf16 %v2132_v17  ;;  %v2133_v30 = vunpack.i.l.bf16 %v2132_v17  ;;  %v2129_v51 = vunpack.i.h.bf16 %v2127_v20  ;;  %v2128_v1 = vunpack.i.l.bf16 %v2127_v20 }
  0xed   : > { %1838 = vmatprep.mubr.msk.bf16.mxu0 %vm1341_vm12, %v1299_v15  ;;  %1842 = vmatprep.mubr.msk.bf16.mxu1 %vm1341_vm12, %v1301_v21 }
  0xee   : > { %v1287_v34 = vsel %vm1280_vm11, %v1270_v33, %v2133_v30  ;;  %v1288_v37 = vsel %vm1280_vm11, %v1271_v10, %v2134_v18  ;;  %v1175_v24 = vsel %vm1161_vm1, %v2639_v0, %v2129_v51  ;;  %v1174_v5 = vsel %vm1161_vm1, %v2510_v45, %v2128_v1 }
  0xef   : > { %v1300_v7 = vpack.c.bf16 %v1288_v37, %v1287_v34  ;;  %v2142_v3 = vpop.permute.xlu1 %2141  ;;  %v2137_v19 = vpop.permute.xlu0 %2136 }
  0xf0   : > { %v2139_v27 = vunpack.i.h.bf16 %v2137_v19  ;;  %v2138_v8 = vunpack.i.l.bf16 %v2137_v19  ;;  %v2144_v4 = vunpack.i.h.bf16 %v2142_v3  ;;  %v2143_v26 = vunpack.i.l.bf16 %v2142_v3 }
  0xf1   : > { %1839 = vmatmul.mubr.msk.bf16.gmra.mrb[4].mxu0 %vm1341_vm12, %v1300_v7 }
  0xf2   : > { %v1292_v12 = vsel %vm1280_vm11, %v1275_v49, %v2139_v27  ;;  %v1291_v42 = vsel %vm1280_vm11, %v1274_v44, %v2138_v8  ;;  %v1177_v6 = vsel %vm1161_vm1, %v2541_v59, %v2144_v4  ;;  %v1176_v32 = vsel %vm1161_vm1, %v2534_v40, %v2143_v26 }
  0xf3   : > { %v1302_v14 = vpack.c.bf16 %v1292_v12, %v1291_v42  ;;  %v2152_v46 = vpop.permute.xlu1 %2151  ;;  %v2147_v43 = vpop.permute.xlu0 %2146 }
  0xf4   : > { %v2154_v52 = vunpack.i.h.bf16 %v2152_v46  ;;  %v2153_v53 = vunpack.i.l.bf16 %v2152_v46  ;;  %v2149_v25 = vunpack.i.h.bf16 %v2147_v43  ;;  %v2148_v48 = vunpack.i.l.bf16 %v2147_v43 }
  0xf5   : > { %1843 = vmatmul.mubr.msk.bf16.vlgmr.msra.gmra.mrb[0].mxu1 %vm1341_vm12, %v1302_v14 }
  0xf6   : > { %v1193_v13 = vsel %vm1178_vm5, %v1176_v32, %v2153_v53  ;;  %v1194_v62 = vsel %vm1178_vm5, %v1177_v6, %v2154_v52  ;;  %v1191_v58 = vsel %vm1178_vm5, %v1174_v5, %v2148_v48  ;;  %v1192_v60 = vsel %vm1178_vm5, %v1175_v24, %v2149_v25 }
  0xf7   : > { %v2162_v2 = vpop.permute.xlu1 %2161  ;;  %v2157_v28 = vpop.permute.xlu0 %2156 }
  0xf8   : > { %v2164_v38 = vunpack.i.h.bf16 %v2162_v2  ;;  %v2163_v56 = vunpack.i.l.bf16 %v2162_v2  ;;  %v2159_v57 = vunpack.i.h.bf16 %v2157_v28  ;;  %v2158_v63 = vunpack.i.l.bf16 %v2157_v28 }
  0xfa   : > { %v1210_v20 = vsel %vm1195_vm6, %v1193_v13, %v2163_v56  ;;  %v1211_v59 = vsel %vm1195_vm6, %v1194_v62, %v2164_v38  ;;  %v1208_v40 = vsel %vm1195_vm6, %v1191_v58, %v2158_v63  ;;  %v1209_v21 = vsel %vm1195_vm6, %v1192_v60, %v2159_v57 }
  0xfb   : > { %v2172_v50 = vpop.permute.xlu1 %2171  ;;  %v2167_v47 = vpop.permute.xlu0 %2166 }
  0xfc   : > { %v2174_v0 = vunpack.i.h.bf16 %v2172_v50  ;;  %v2173_v15 = vunpack.i.l.bf16 %v2172_v50  ;;  %v2169_v17 = vunpack.i.h.bf16 %v2167_v47  ;;  %v2168_v45 = vunpack.i.l.bf16 %v2167_v47 }
  0xfe   : > { %v1227_v34 = vsel %vm1212_vm7, %v1210_v20, %v2173_v15  ;;  %v1228_v37 = vsel %vm1212_vm7, %v1211_v59, %v2174_v0  ;;  %v1225_v36 = vsel %vm1212_vm7, %v1208_v40, %v2168_v45  ;;  %v1226_v35 = vsel %vm1212_vm7, %v1209_v21, %v2169_v17 }
  0xff   : > { %v2182_v39 = vpop.permute.xlu1 %2181  ;;  %v2177_v54 = vpop.permute.xlu0 %2176 }
 0x100   : > { %v2184_v22 = vunpack.i.h.bf16 %v2182_v39  ;;  %v2183_v23 = vunpack.i.l.bf16 %v2182_v39  ;;  %v2179_v18 = vunpack.i.h.bf16 %v2177_v54  ;;  %v2178_v30 = vunpack.i.l.bf16 %v2177_v54 }
 0x102   : > { %v1244_v29 = vsel %vm1229_vm8, %v1227_v34, %v2183_v23  ;;  %v1245_v27 = vsel %vm1229_vm8, %v1228_v37, %v2184_v22  ;;  %v1242_v8 = vsel %vm1229_vm8, %v1225_v36, %v2178_v30  ;;  %v1243_v44 = vsel %vm1229_vm8, %v1226_v35, %v2179_v18 }
 0x103   : > { %v2192_v9 = vpop.permute.xlu1 %2191  ;;  %v2187_v11 = vpop.permute.xlu0 %2186 }
 0x104   : > { %v2194_v16 = vunpack.i.h.bf16 %v2192_v9  ;;  %v2193_v31 = vunpack.i.l.bf16 %v2192_v9  ;;  %v2189_v33 = vunpack.i.h.bf16 %v2187_v11  ;;  %v2188_v10 = vunpack.i.l.bf16 %v2187_v11 }
 0x106   : > { %v1261_v49 = vsel %vm1246_vm9, %v1244_v29, %v2193_v31  ;;  %v1262_v12 = vsel %vm1246_vm9, %v1245_v27, %v2194_v16  ;;  %v1259_v42 = vsel %vm1246_vm9, %v1242_v8, %v2188_v10  ;;  %v1260_v14 = vsel %vm1246_vm9, %v1243_v44, %v2189_v33 }
 0x107   : > { %v2202_v61 = vpop.permute.xlu1 %2201  ;;  %v2197_v55 = vpop.permute.xlu0 %2196 }
 0x108   : > { %v2204_v7 = vunpack.i.h.bf16 %v2202_v61  ;;  %v2203_v3 = vunpack.i.l.bf16 %v2202_v61  ;;  %v2199_v19 = vunpack.i.h.bf16 %v2197_v55  ;;  %v2198_v41 = vunpack.i.l.bf16 %v2197_v55 }
 0x10a   : > { %v1278_v51 = vsel %vm1263_vm10, %v1261_v49, %v2203_v3  ;;  %v1279_v1 = vsel %vm1263_vm10, %v1262_v12, %v2204_v7  ;;  %v1276_v4 = vsel %vm1263_vm10, %v1259_v42, %v2198_v41  ;;  %v1277_v26 = vsel %vm1263_vm10, %v1260_v14, %v2199_v19 }
 0x10b   : > { %v2212_v46 = vpop.permute.xlu1 %2211  ;;  %v2207_v43 = vpop.permute.xlu0 %2206 }
 0x10c   : > { %v2214_v2 = vunpack.i.h.bf16 %v2212_v46  ;;  %v2213_v28 = vunpack.i.l.bf16 %v2212_v46  ;;  %v2209_v50 = vunpack.i.h.bf16 %v2207_v43  ;;  %v2208_v47 = vunpack.i.l.bf16 %v2207_v43 }
 0x10e   : > { %v1295_v52 = vsel %vm1280_vm11, %v1278_v51, %v2213_v28  ;;  %v1296_v53 = vsel %vm1280_vm11, %v1279_v1, %v2214_v2  ;;  %v1293_v25 = vsel %vm1280_vm11, %v1276_v4, %v2208_v47  ;;  %v1294_v48 = vsel %vm1280_vm11, %v1277_v26, %v2209_v50 }
 0x10f   : > { %v1304_v39 = vpack.c.bf16 %v1296_v53, %v1295_v52  ;;  %v1303_v54 = vpack.c.bf16 %v1294_v48, %v1293_v25 }
 0x111   : > { %1846 = vmatprep.mubr.msk.bf16.mxu1 %vm1341_vm12, %v1303_v54 }
 0x112   : > { %1847 = vmatmul.mubr.msk.bf16.gmra.mrb[4].mxu1 %vm1341_vm12, %v1304_v39 }
 0x188   : > { %v1836_v38 = vpop.f32.mrb[0].mxu0 }
 0x189   : > { %1489 = vst.msk [vmem:[%s2329_s11 + $0x10] sm:$0xff] %vm1161_vm1, %v1836_v38  ;;  %v1506_v56 = vsel %vm1161_vm1, %v1836_v38, 0.0  ;;  %v1542_v57 = vmul.f32 %v1836_v38, %v1836_v38  ;;  %v1404_v63 = vpop.f32.mrb[1].mxu0 }
 0x18a   : > { %1487 = vst.msk [vmem:[%s2329_s11] sm:$0xff] %vm1161_vm1, %v1404_v63  ;;  %v1503_v24 = vsel %vm1161_vm1, %v1404_v63, 0.0  ;;  %v1540_v5 = vmul.f32 %v1404_v63, %v1404_v63  ;;  %v1837_v6 = vpop.f32.mrb[2].mxu0 }
 0x18b   : > { %v1559_v32 = vsel %vm1161_vm1, %v1542_v57, 0.0  ;;  %v1507_v13 = vadd.f32 %v1506_v56, %v1503_v24  ;;  %v1407_v62 = vpop.f32.mrb[3].mxu0 }
 0x18c   : > { %v1556_v58 = vsel %vm1161_vm1, %v1540_v5, 0.0 }
 0x18d   : > { %v1560_v60 = vadd.f32 %v1559_v32, %v1556_v58 }
 0x1c4   : > { %v1840_v9 = vpop.f32.mrb[4].mxu0 }
 0x1c5   : > { %1493 = vst.msk [vmem:[%s2329_s11 + $0x30] sm:$0xff] %vm1161_vm1, %v1840_v9  ;;  %v1420_v11 = vpop.f32.mrb[5].mxu0  ;;  %v1546_v0 = vmul.f32 %v1840_v9, %v1840_v9  ;;  %v1514_v40 = vsel %vm1161_vm1, %v1840_v9, 0.0 }
 0x1c6   : > { %1491 = vst.msk [vmem:[%s2329_s11 + $0x20] sm:$0xff] %vm1161_vm1, %v1420_v11  ;;  %v1510_v15 = vsel %vm1161_vm1, %v1420_v11, 0.0  ;;  %v1544_v17 = vmul.f32 %v1420_v11, %v1420_v11  ;;  %v1841_v45 = vpop.f32.mrb[6].mxu0 }
 0x1c7   : > { %v1511_v20 = vadd.f32 %v1510_v15, %v1507_v13  ;;  %v1423_v59 = vpop.f32.mrb[7].mxu0  ;;  %v1567_v16 = vsel %vm1161_vm1, %v1546_v0, 0.0 }
 0x1c8   : > { %v1563_v21 = vsel %vm1161_vm1, %v1544_v17, 0.0  ;;  %v1844_v22 = vpop.f32.mrb[0].mxu1 }
 0x1c9   : > { %v1564_v23 = vadd.f32 %v1563_v21, %v1560_v60  ;;  %1497 = vst.msk [vmem:[%s2329_s11 + $0x50] sm:$0xff] %vm1161_vm1, %v1844_v22  ;;  %v1436_v18 = vpop.f32.mrb[1].mxu1  ;;  %v1515_v30 = vadd.f32 %v1514_v40, %v1511_v20  ;;  %v1550_v31 = vmul.f32 %v1844_v22, %v1844_v22  ;;  %v1522_v36 = vsel %vm1161_vm1, %v1844_v22, 0.0 }
 0x1ca   : > { %1495 = vst.msk [vmem:[%s2329_s11 + $0x40] sm:$0xff] %vm1161_vm1, %v1436_v18  ;;  %v1518_v33 = vsel %vm1161_vm1, %v1436_v18, 0.0  ;;  %v1548_v10 = vmul.f32 %v1436_v18, %v1436_v18  ;;  %v1845_v61 = vpop.f32.mrb[2].mxu1 }
 0x1cb   : > { %v1519_v55 = vadd.f32 %v1518_v33, %v1515_v30  ;;  %v1568_v34 = vadd.f32 %v1567_v16, %v1564_v23  ;;  %v1439_v37 = vpop.f32.mrb[3].mxu1  ;;  %v1575_v19 = vsel %vm1161_vm1, %v1550_v31, 0.0 }
 0x1cc   : > { %v1571_v35 = vsel %vm1161_vm1, %v1548_v10, 0.0 }
 0x1cd   : > { %v1572_v7 = vadd.f32 %v1571_v35, %v1568_v34  ;;  %v1523_v3 = vadd.f32 %v1522_v36, %v1519_v55 }
 0x1cf   : > { %v1576_v41 = vadd.f32 %v1575_v19, %v1572_v7 }
 0x1e5   : > { %v1848_v29 = vpop.f32.mrb[4].mxu1 }
 0x1e6   : > { %1501 = vst.msk [vmem:[%s2329_s11 + $0x70] sm:$0xff] %vm1161_vm1, %v1848_v29  ;;  %v1452_v27 = vpop.f32.mrb[5].mxu1  ;;  %v1554_v8 = vmul.f32 %v1848_v29, %v1848_v29  ;;  %v1530_v46 = vsel %vm1161_vm1, %v1848_v29, 0.0 }
 0x1e7   : > { %1499 = vst.msk [vmem:[%s2329_s11 + $0x60] sm:$0xff] %vm1161_vm1, %v1452_v27  ;;  %v1526_v44 = vsel %vm1161_vm1, %v1452_v27, 0.0  ;;  %v1552_v49 = vmul.f32 %v1452_v27, %v1452_v27  ;;  %v1849_v12 = vpop.f32.mrb[6].mxu1  ;;  %s1788_s11 = sshll.u32 %s3027_s24, 1 }
 0x1e8   : > { %v1527_v42 = vadd.f32 %v1526_v44, %v1523_v3  ;;  %v1455_v14 = vpop.f32.mrb[7].mxu1  ;;  %v1583_v50 = vsel %vm1161_vm1, %v1554_v8, 0.0  ;;  %s465_s14 = scalar_lea.vmem %s3021_s7, %s1788_s11 }
 0x1e9   : > { %v1579_v43 = vsel %vm1161_vm1, %v1552_v49, 0.0 }
 0x1ea   : > { %v1531_v2 = vadd.f32 %v1530_v46, %v1527_v42  ;;  %v1580_v28 = vadd.f32 %v1579_v43, %v1576_v41 }
 0x1ec   : > { %v1534_v47 = vrot.slane %v1531_v2, 4  ;;  %v1584_v51 = vadd.f32 %v1583_v50, %v1580_v28 }
 0x1ee   : > { %v1535_v1 = vadd.f32 %v1534_v47, %v1531_v2  ;;  %v1587_v4 = vrot.slane %v1584_v51, 4 }
 0x1f0   : > { %v1536_v26 = vrot.slane %v1535_v1, 2  ;;  %v1588_v52 = vadd.f32 %v1587_v4, %v1584_v51 }
 0x1f2   : > { %v1537_v53 = vadd.f32 %v1536_v26, %v1535_v1  ;;  %v1589_v25 = vrot.slane %v1588_v52, 2 }
 0x1f4   : > { %v1538_v48 = vrot.slane %v1537_v53, 1  ;;  %v1590_v39 = vadd.f32 %v1589_v25, %v1588_v52 }
 0x1f6   : > { %v1591_v54 = vrot.slane %v1590_v39, 1  ;;  %v1539_v38 = vadd.f32 %v1538_v48, %v1537_v53 }
 0x1f8   : > { %v1592_v56 = vadd.f32 %v1591_v54, %v1590_v39 }
 0x1fa   : > { %v1593_v57 = vsel %vm632_vm0, %v1539_v38, %v1592_v56 }
 0x1fb   : > { %1595 = vst.msk [vmem:[%s465_s14] sm:$0x3] %vm1594_vm13, %v1593_v57 }
 0x1fc PF: > { %s18_s2 = sadd.s32 1, %s2242_s2   ;;  %s3022_s24 = smov %s2238_s1 }
 0x1fd   : > { %p15_p5 = scmp.ge.s32.totalorder %s18_s2, 4   ;;  %s3023_s1 = smov %s3025_s25 }
 0x1ff   :  { %17 = sbr.rel (!%p15_p5) target bundleno = 2 (0x2), region = 92 }

</bundles_post_ra>
